<compile_context>
chip_gen: v7x
topology: tpu7x:2x2x1
jax: 0.10.0
libtpu: 0.0.40
codegen_flags: <defaults>
</compile_context>

<pallas_src>
import jax
import jax.numpy as jnp
from jax import lax
from jax.experimental import pallas as pl
from jax.experimental.pallas import tpu as pltpu

# ---------------- config (small, lane-dense, consistent with GPT2Config) ----
SEQ = 64              # number of tokens
HIDDEN = 128          # config.hidden_size (multiple of 128 -> lane-dense blocks)
NUM_HEADS = 4         # config.num_attention_heads
HEAD_DIM = HIDDEN // NUM_HEADS
INNER = 4 * HIDDEN    # config.n_inner default
EPS = 1e-5            # config.layer_norm_epsilon
SCALE = HEAD_DIM ** (-0.5)

TILE_Q = 16           # query-token tile   (scale to 256+ for real shapes)
TILE_KV = 16          # KV-token tile      (must equal TILE_Q for causal clamp)
TILE_T = 16           # token tile for the QKV / MLP phases

# Raise for real shapes (v6e: up to ~100 MiB; v5e default is only 16 MiB).
VMEM_LIMIT = 32 * 1024 * 1024


def _layernorm(x, w, b):
    mu = jnp.mean(x, axis=-1, keepdims=True)
    var = jnp.mean((x - mu) * (x - mu), axis=-1, keepdims=True)
    return (x - mu) * lax.rsqrt(var + EPS) * w + b


def _gelu_new(x):
    # GPT-2 "gelu_new" (tanh approximation), kept in f32.
    return 0.5 * x * (1.0 + jnp.tanh(
        0.7978845608028654 * (x + 0.044715 * x * x * x)))


# ---------------------------- phase 1: LN1 + QKV -----------------------------
def qkv_kernel(x_ref, ln1w_ref, ln1b_ref, wqkv_ref, bqkv_ref,
               q_ref, k_ref, v_ref):
    h = _layernorm(x_ref[...], ln1w_ref[...], ln1b_ref[...]).astype(jnp.bfloat16)
    # One full-width matmul against the un-split QKV weight (uses MXU N dim).
    qkv = jnp.dot(h, wqkv_ref[...],
                  preferred_element_type=jnp.float32) + bqkv_ref[...]
    # Lane-aligned static slices (HIDDEN is a multiple of 128).
    q_ref[...] = (qkv[:, 0 * HIDDEN:1 * HIDDEN] * SCALE).astype(jnp.bfloat16)
    k_ref[...] = qkv[:, 1 * HIDDEN:2 * HIDDEN].astype(jnp.bfloat16)
    v_ref[...] = qkv[:, 2 * HIDDEN:3 * HIDDEN].astype(jnp.bfloat16)


# ------------------------ phase 2: causal flash attention --------------------
def flash_attn_kernel(q_ref, k_ref, v_ref, o_ref, m_sc, l_sc, acc_sc):
    qi = pl.program_id(0)
    ki = pl.program_id(1)
    nk = pl.num_programs(1)

    @pl.when(ki == 0)
    def _init():
        m_sc[...] = jnp.full(m_sc.shape, -jnp.inf, dtype=m_sc.dtype)
        l_sc[...] = jnp.zeros(l_sc.shape, dtype=l_sc.dtype)
        acc_sc[...] = jnp.zeros(acc_sc.shape, dtype=acc_sc.dtype)

    def scores():
        # q is pre-scaled; heads batched with canonical leading-batch einsum.
        return jnp.einsum('hqd,hkd->hqk', q_ref[...], k_ref[...],
                          preferred_element_type=jnp.float32)

    def flash_update(s):
        m_prev = m_sc[...]
        m_new = jnp.maximum(m_prev, jnp.max(s, axis=-1, keepdims=True))
        alpha = jnp.exp(m_prev - m_new)
        p = jnp.exp(s - m_new)
        l_sc[...] = alpha * l_sc[...] + jnp.sum(p, axis=-1, keepdims=True)
        acc_sc[...] = alpha * acc_sc[...] + jnp.einsum(
            'hqk,hkd->hqd', p.astype(jnp.bfloat16), v_ref[...],
            preferred_element_type=jnp.float32)
        m_sc[...] = m_new

    # Fully-past KV tile: no mask needed (TILE_Q == TILE_KV).
    @pl.when(ki < qi)
    def _attend_past():
        flash_update(scores())

    # Diagonal tile: build the causal mask only here.
    @pl.when(ki == qi)
    def _attend_diag():
        s = scores()
        row = lax.broadcasted_iota(jnp.int32, (TILE_Q, TILE_KV), 0)
        col = lax.broadcasted_iota(jnp.int32, (TILE_Q, TILE_KV), 1)
        flash_update(jnp.where((col <= row)[None], s, -1e30))

    # ki > qi (causal future): no compute; KV index_map is clamped so the
    # already-resident block is reused and no new DMA is issued.

    @pl.when(ki == nk - 1)
    def _finalize():
        inv_l = pl.reciprocal(l_sc[...], approx=True)   # EUP; exact enough for fwd
        o_ref[...] = (acc_sc[...] * inv_l).astype(o_ref.dtype)


# -------------------- phase 3: c_proj + residual + LN2 + MLP -----------------
def proj_mlp_kernel(attn_ref, x_ref, wo_ref, bo_ref, ln2w_ref, ln2b_ref,
                    wfc_ref, bfc_ref, wmo_ref, bmo_ref, out_ref):
    # attn c_proj as ONE (TILE, HIDDEN) @ (HIDDEN, HIDDEN) matmul on the
    # concat-head layout; residual 1 kept in f32.
    h1 = (jnp.dot(attn_ref[...], wo_ref[...],
                  preferred_element_type=jnp.float32)
          + bo_ref[...] + x_ref[...])
    h2 = _layernorm(h1, ln2w_ref[...], ln2b_ref[...]).astype(jnp.bfloat16)
    fc = jnp.dot(h2, wfc_ref[...],
                 preferred_element_type=jnp.float32) + bfc_ref[...]
    act = _gelu_new(fc).astype(jnp.bfloat16)
    mlp = jnp.dot(act, wmo_ref[...],
                  preferred_element_type=jnp.float32) + bmo_ref[...]
    out_ref[...] = (h1 + mlp).astype(out_ref.dtype)


# ------------------------------- wrapper --------------------------------------
def _prepare_params(params):
    (ln1w, ln1b, wqkv, bqkv, wao, bao, ln2w, ln2b, wfc, bfc, wmo, bmo) = params
    bf16 = jnp.bfloat16
    return dict(ln1w=ln1w, ln1b=ln1b,
                wqkv=wqkv.astype(bf16), bqkv=bqkv,
                wo=wao.astype(bf16), bo=bao,
                ln2w=ln2w, ln2b=ln2b,
                wfc=wfc.astype(bf16), bfc=bfc,
                wmo=wmo.astype(bf16), bmo=bmo)


def _gpt2_block_impl(x, params):
    seq, hidden = x.shape
    assert hidden == HIDDEN
    assert TILE_Q == TILE_KV
    assert seq % TILE_Q == 0 and seq % TILE_T == 0
    nq = seq // TILE_Q
    nkv = seq // TILE_KV
    nt = seq // TILE_T
    p = _prepare_params(params)

    def rep(shape):  # index-invariant (resident) block for a 1-D grid
        return pl.BlockSpec(shape, lambda i: (0,) * len(shape))

    # ---- phase 1: LN1 + fused QKV projection, computed once per token ------
    q2d, k2d, v2d = pl.pallas_call(
        qkv_kernel,
        out_shape=(jax.ShapeDtypeStruct((seq, HIDDEN), jnp.bfloat16),
                   jax.ShapeDtypeStruct((seq, HIDDEN), jnp.bfloat16),
                   jax.ShapeDtypeStruct((seq, HIDDEN), jnp.bfloat16)),
        grid_spec=pltpu.PrefetchScalarGridSpec(
            num_scalar_prefetch=0,
            grid=(nt,),
            in_specs=[
                pl.BlockSpec((TILE_T, HIDDEN), lambda i: (i, 0)),     # x
                rep((1, HIDDEN)), rep((1, HIDDEN)),                   # ln_1
                rep((HIDDEN, 3 * HIDDEN)), rep((1, 3 * HIDDEN)),      # c_attn
            ],
            out_specs=[
                pl.BlockSpec((TILE_T, HIDDEN), lambda i: (i, 0)),
                pl.BlockSpec((TILE_T, HIDDEN), lambda i: (i, 0)),
                pl.BlockSpec((TILE_T, HIDDEN), lambda i: (i, 0)),
            ],
        ),
        compiler_params=pltpu.CompilerParams(
            dimension_semantics=("parallel",), vmem_limit_bytes=VMEM_LIMIT),
    )(x, p['ln1w'], p['ln1b'], p['wqkv'], p['bqkv'])

    # Head-major layout for the flash loop: (NH, S, HD).  Wrapper-side layout
    # plumbing (plain XLA transpose) — keeps the kernels transpose-free.
    def to_heads(t):
        return t.reshape(seq, NUM_HEADS, HEAD_DIM).transpose(1, 0, 2)
    q3, k3, v3 = to_heads(q2d), to_heads(k2d), to_heads(v2d)

    # ---- phase 2: causal flash attention ------------------------------------
    def q_map(qi, ki):
        return (0, qi, 0)

    def kv_map(qi, ki):
        # Causal clamp: future tiles map to the already-resident block, so
        # Pallas skips the re-DMA for fully-masked steps.
        return (0, jnp.minimum(ki, qi), 0)

    attn3 = pl.pallas_call(
        flash_attn_kernel,
        out_shape=jax.ShapeDtypeStruct((NUM_HEADS, seq, HEAD_DIM), jnp.bfloat16),
        grid_spec=pltpu.PrefetchScalarGridSpec(
            num_scalar_prefetch=0,
            grid=(nq, nkv),
            in_specs=[
                pl.BlockSpec((NUM_HEADS, TILE_Q, HEAD_DIM), q_map),
                pl.BlockSpec((NUM_HEADS, TILE_KV, HEAD_DIM), kv_map),
                pl.BlockSpec((NUM_HEADS, TILE_KV, HEAD_DIM), kv_map),
            ],
            out_specs=pl.BlockSpec((NUM_HEADS, TILE_Q, HEAD_DIM), q_map),
            scratch_shapes=[
                pltpu.VMEM((NUM_HEADS, TILE_Q, 1), jnp.float32),        # running max
                pltpu.VMEM((NUM_HEADS, TILE_Q, 1), jnp.float32),        # running denom
                pltpu.VMEM((NUM_HEADS, TILE_Q, HEAD_DIM), jnp.float32), # acc
            ],
        ),
        compiler_params=pltpu.CompilerParams(
            dimension_semantics=("parallel", "arbitrary"),
            vmem_limit_bytes=VMEM_LIMIT),
    )(q3, k3, v3)

    # Back to concat-head (S, HIDDEN) for the full-width output projection.
    attn2d = attn3.transpose(1, 0, 2).reshape(seq, HIDDEN)

    # ---- phase 3: c_proj + residual + LN2 + MLP + residual -------------------
    out = pl.pallas_call(
        proj_mlp_kernel,
        out_shape=jax.ShapeDtypeStruct((seq, HIDDEN), jnp.float32),
        grid_spec=pltpu.PrefetchScalarGridSpec(
            num_scalar_prefetch=0,
            grid=(nt,),
            in_specs=[
                pl.BlockSpec((TILE_T, HIDDEN), lambda i: (i, 0)),   # attn (concat heads)
                pl.BlockSpec((TILE_T, HIDDEN), lambda i: (i, 0)),   # x (residual)
                rep((HIDDEN, HIDDEN)), rep((1, HIDDEN)),            # attn c_proj
                rep((1, HIDDEN)), rep((1, HIDDEN)),                 # ln_2
                rep((HIDDEN, INNER)), rep((1, INNER)),              # mlp c_fc
                rep((INNER, HIDDEN)), rep((1, HIDDEN)),             # mlp c_proj
            ],
            out_specs=pl.BlockSpec((TILE_T, HIDDEN), lambda i: (i, 0)),
        ),
        compiler_params=pltpu.CompilerParams(
            dimension_semantics=("parallel",), vmem_limit_bytes=VMEM_LIMIT),
    )(attn2d, x, p['wo'], p['bo'], p['ln2w'], p['ln2b'],
      p['wfc'], p['bfc'], p['wmo'], p['bmo'])
    return out


gpt2_block = jax.jit(_gpt2_block_impl)


# ------------------------ pure-JAX f32 reference -----------------------------
def gpt2_block_ref(x, params):
    (ln1w, ln1b, wqkv, bqkv, wao, bao, ln2w, ln2b, wfc, bfc, wmo, bmo) = params
    seq = x.shape[0]
    h = _layernorm(x, ln1w, ln1b)
    qkv = h @ wqkv + bqkv
    q, k, v = jnp.split(qkv, 3, axis=-1)
    qh = q.reshape(seq, NUM_HEADS, HEAD_DIM).transpose(1, 0, 2)
    kh = k.reshape(seq, NUM_HEADS, HEAD_DIM).transpose(1, 0, 2)
    vh = v.reshape(seq, NUM_HEADS, HEAD_DIM).transpose(1, 0, 2)
    s = jnp.einsum('hqd,hkd->hqk', qh, kh) * SCALE
    mask = jnp.tril(jnp.ones((seq, seq), dtype=bool))
    s = jnp.where(mask[None], s, -1e30)
    p = jax.nn.softmax(s, axis=-1)
    a = jnp.einsum('hqk,hkd->hqd', p, vh).transpose(1, 0, 2).reshape(seq, HIDDEN)
    attn = a @ wao + bao
    h1 = attn + x
    h2 = _layernorm(h1, ln2w, ln2b)
    mlp = _gelu_new(h2 @ wfc + bfc) @ wmo + bmo
    return h1 + mlp


def init_params(key):
    ks = jax.random.split(key, 8)
    f32 = jnp.float32
    ln1w = jnp.ones((1, HIDDEN), f32)
    ln1b = jnp.zeros((1, HIDDEN), f32)
    ln2w = jnp.ones((1, HIDDEN), f32)
    ln2b = jnp.zeros((1, HIDDEN), f32)
    # Linear weights stored (in, out); biases (1, out)  [GPT-2 Conv1D convention]
    wqkv = 0.02 * jax.random.normal(ks[0], (HIDDEN, 3 * HIDDEN), f32)
    bqkv = 0.01 * jax.random.normal(ks[1], (1, 3 * HIDDEN), f32)
    wao = 0.02 * jax.random.normal(ks[2], (HIDDEN, HIDDEN), f32)
    bao = 0.01 * jax.random.normal(ks[3], (1, HIDDEN), f32)
    wfc = 0.02 * jax.random.normal(ks[4], (HIDDEN, INNER), f32)
    bfc = 0.01 * jax.random.normal(ks[5], (1, INNER), f32)
    wmo = 0.02 * jax.random.normal(ks[6], (INNER, HIDDEN), f32)
    bmo = 0.01 * jax.random.normal(ks[7], (1, HIDDEN), f32)
    return (ln1w, ln1b, wqkv, bqkv, wao, bao, ln2w, ln2b, wfc, bfc, wmo, bmo)


if __name__ == "__main__":
    key = jax.random.PRNGKey(0)
    kx, kp = jax.random.split(key)
    x = jax.random.normal(kx, (SEQ, HIDDEN), jnp.float32)
    params = init_params(kp)

    out = jax.block_until_ready(gpt2_block(x, params))
    ref = jax.block_until_ready(gpt2_block_ref(x, params))

    assert out.shape == (SEQ, HIDDEN)
    err = jnp.max(jnp.abs(out - ref))
    # bf16 matmul inputs + approx reciprocal => loosened tolerance vs f32 ref.
    assert jnp.allclose(out, ref, atol=2e-2, rtol=2e-2), f"max err {err}"
    print("KERNEL_OK")
</pallas_src>

<mosaic_0001>
module attributes {stable_mosaic.version = 11 : i64} {
  func.func @qkv_kernel(%arg0: i32, %arg1: memref<16x128xf32, #tpu.memory_space<vmem>>, %arg2: memref<1x128xf32, #tpu.memory_space<vmem>>, %arg3: memref<1x128xf32, #tpu.memory_space<vmem>>, %arg4: memref<128x384xbf16, #tpu.memory_space<vmem>>, %arg5: memref<1x384xf32, #tpu.memory_space<vmem>>, %arg6: memref<16x128xbf16, #tpu.memory_space<vmem>>, %arg7: memref<16x128xbf16, #tpu.memory_space<vmem>>, %arg8: memref<16x128xbf16, #tpu.memory_space<vmem>>) attributes {dimension_semantics = [#tpu.dimension_semantics<parallel>], iteration_bounds = array<i64: 4>, scalar_prefetch = 0 : i64, scratch_operands = 0 : i64, tpu.core_type = #tpu.core_type<tc>, window_params = [{transform_indices = @transform_0, window_bounds = array<i64: 16, 128>}, {pipeline_mode = #tpu.pipeline_mode<synchronous>, transform_indices = @transform_1, window_bounds = array<i64: 1, 128>}, {pipeline_mode = #tpu.pipeline_mode<synchronous>, transform_indices = @transform_2, window_bounds = array<i64: 1, 128>}, {pipeline_mode = #tpu.pipeline_mode<synchronous>, transform_indices = @transform_3, window_bounds = array<i64: 128, 384>}, {pipeline_mode = #tpu.pipeline_mode<synchronous>, transform_indices = @transform_4, window_bounds = array<i64: 1, 384>}, {transform_indices = @transform_5, window_bounds = array<i64: 16, 128>}, {transform_indices = @transform_6, window_bounds = array<i64: 16, 128>}, {transform_indices = @transform_7, window_bounds = array<i64: 16, 128>}]} {
    %c0 = arith.constant 0 : index
    %c0_0 = arith.constant 0 : index
    %0 = vector.load %arg1[%c0, %c0_0] : memref<16x128xf32, #tpu.memory_space<vmem>>, vector<16x128xf32>
    %c0_1 = arith.constant 0 : index
    %c0_2 = arith.constant 0 : index
    %1 = vector.load %arg2[%c0_1, %c0_2] : memref<1x128xf32, #tpu.memory_space<vmem>>, vector<1x128xf32>
    %c0_3 = arith.constant 0 : index
    %c0_4 = arith.constant 0 : index
    %2 = vector.load %arg3[%c0_3, %c0_4] : memref<1x128xf32, #tpu.memory_space<vmem>>, vector<1x128xf32>
    %cst = arith.constant dense<0.000000e+00> : vector<16xf32>
    %3 = vector.multi_reduction <add>, %0, %cst [1] : vector<16x128xf32> to vector<16xf32>
    %4 = vector.shape_cast %3 : vector<16xf32> to vector<16x1xf32>
    %cst_5 = arith.constant 1.280000e+02 : f32
    %5 = vector.broadcast %cst_5 : f32 to vector<16x1xf32>
    %6 = arith.divf %4, %5 : vector<16x1xf32>
    %7 = vector.broadcast %6 : vector<16x1xf32> to vector<16x128xf32>
    %8 = arith.subf %0, %7 : vector<16x128xf32>
    %9 = vector.broadcast %6 : vector<16x1xf32> to vector<16x128xf32>
    %10 = arith.subf %0, %9 : vector<16x128xf32>
    %11 = arith.mulf %8, %10 : vector<16x128xf32>
    %cst_6 = arith.constant dense<0.000000e+00> : vector<16xf32>
    %12 = vector.multi_reduction <add>, %11, %cst_6 [1] : vector<16x128xf32> to vector<16xf32>
    %13 = vector.shape_cast %12 : vector<16xf32> to vector<16x1xf32>
    %cst_7 = arith.constant 1.280000e+02 : f32
    %14 = vector.broadcast %cst_7 : f32 to vector<16x1xf32>
    %15 = arith.divf %13, %14 : vector<16x1xf32>
    %16 = vector.broadcast %6 : vector<16x1xf32> to vector<16x128xf32>
    %17 = arith.subf %0, %16 : vector<16x128xf32>
    %cst_8 = arith.constant 9.99999974E-6 : f32
    %18 = vector.broadcast %cst_8 : f32 to vector<16x1xf32>
    %19 = arith.addf %15, %18 : vector<16x1xf32>
    %20 = math.rsqrt %19 : vector<16x1xf32>
    %21 = vector.broadcast %20 : vector<16x1xf32> to vector<16x128xf32>
    %22 = arith.mulf %17, %21 : vector<16x128xf32>
    %23 = vector.broadcast %1 : vector<1x128xf32> to vector<16x128xf32>
    %24 = arith.mulf %22, %23 : vector<16x128xf32>
    %25 = vector.broadcast %2 : vector<1x128xf32> to vector<16x128xf32>
    %26 = arith.addf %24, %25 : vector<16x128xf32>
    %27 = arith.truncf %26 : vector<16x128xf32> to vector<16x128xbf16>
    %c0_9 = arith.constant 0 : index
    %c0_10 = arith.constant 0 : index
    %28 = vector.load %arg4[%c0_9, %c0_10] : memref<128x384xbf16, #tpu.memory_space<vmem>>, vector<128x384xbf16>
    %cst_11 = arith.constant dense<0.000000e+00> : vector<16x384xf32>
    %29 = tpu.matmul %27, %28, %cst_11 {dimension_numbers = #tpu.dot_dimension_numbers<[1], [0], [0], [1], [0, 0, 1, 1], [], []>} : vector<16x128xbf16>, vector<128x384xbf16>, vector<16x384xf32> -> vector<16x384xf32>
    %c0_12 = arith.constant 0 : index
    %c0_13 = arith.constant 0 : index
    %30 = vector.load %arg5[%c0_12, %c0_13] : memref<1x384xf32, #tpu.memory_space<vmem>>, vector<1x384xf32>
    %31 = vector.broadcast %30 : vector<1x384xf32> to vector<16x384xf32>
    %32 = arith.addf %29, %31 : vector<16x384xf32>
    %33 = vector.extract_strided_slice %32 {offsets = [0, 0], sizes = [16, 128], strides = [1, 1]} : vector<16x384xf32> to vector<16x128xf32>
    %cst_14 = arith.constant 0.176776692 : f32
    %34 = vector.broadcast %cst_14 : f32 to vector<16x128xf32>
    %35 = arith.mulf %33, %34 : vector<16x128xf32>
    %36 = arith.truncf %35 : vector<16x128xf32> to vector<16x128xbf16>
    %c0_15 = arith.constant 0 : index
    %c0_16 = arith.constant 0 : index
    %37 = vector.load %arg6[%c0_15, %c0_16] : memref<16x128xbf16, #tpu.memory_space<vmem>>, vector<16x128xbf16>
    tpu.vector_store %arg6[%c0_15, %c0_16], %36 {strides = array<i32>} : memref<16x128xbf16, #tpu.memory_space<vmem>>, vector<16x128xbf16>,
    %38 = vector.extract_strided_slice %32 {offsets = [0, 128], sizes = [16, 128], strides = [1, 1]} : vector<16x384xf32> to vector<16x128xf32>
    %39 = arith.truncf %38 : vector<16x128xf32> to vector<16x128xbf16>
    %c0_17 = arith.constant 0 : index
    %c0_18 = arith.constant 0 : index
    %40 = vector.load %arg7[%c0_17, %c0_18] : memref<16x128xbf16, #tpu.memory_space<vmem>>, vector<16x128xbf16>
    tpu.vector_store %arg7[%c0_17, %c0_18], %39 {strides = array<i32>} : memref<16x128xbf16, #tpu.memory_space<vmem>>, vector<16x128xbf16>,
    %41 = vector.extract_strided_slice %32 {offsets = [0, 256], sizes = [16, 128], strides = [1, 1]} : vector<16x384xf32> to vector<16x128xf32>
    %42 = arith.truncf %41 : vector<16x128xf32> to vector<16x128xbf16>
    %c0_19 = arith.constant 0 : index
    %c0_20 = arith.constant 0 : index
    %43 = vector.load %arg8[%c0_19, %c0_20] : memref<16x128xbf16, #tpu.memory_space<vmem>>, vector<16x128xbf16>
    tpu.vector_store %arg8[%c0_19, %c0_20], %42 {strides = array<i32>} : memref<16x128xbf16, #tpu.memory_space<vmem>>, vector<16x128xbf16>,
    return
  }
  func.func @transform_0(%arg0: i32) -> (i32, i32) {
    %c0_i32 = arith.constant 0 : i32
    %c0_i32_0 = arith.constant 0 : i32
    return %arg0, %c0_i32 : i32, i32
  }
  func.func @transform_1(%arg0: i32) -> (i32, i32) {
    %c0_i32 = arith.constant 0 : i32
    %c0_i32_0 = arith.constant 0 : i32
    %c0_i32_1 = arith.constant 0 : i32
    return %c0_i32, %c0_i32_0 : i32, i32
  }
  func.func @transform_2(%arg0: i32) -> (i32, i32) {
    %c0_i32 = arith.constant 0 : i32
    %c0_i32_0 = arith.constant 0 : i32
    %c0_i32_1 = arith.constant 0 : i32
    return %c0_i32, %c0_i32_0 : i32, i32
  }
  func.func @transform_3(%arg0: i32) -> (i32, i32) {
    %c0_i32 = arith.constant 0 : i32
    %c0_i32_0 = arith.constant 0 : i32
    %c0_i32_1 = arith.constant 0 : i32
    return %c0_i32, %c0_i32_0 : i32, i32
  }
  func.func @transform_4(%arg0: i32) -> (i32, i32) {
    %c0_i32 = arith.constant 0 : i32
    %c0_i32_0 = arith.constant 0 : i32
    %c0_i32_1 = arith.constant 0 : i32
    return %c0_i32, %c0_i32_0 : i32, i32
  }
  func.func @transform_5(%arg0: i32) -> (i32, i32) {
    %c0_i32 = arith.constant 0 : i32
    %c0_i32_0 = arith.constant 0 : i32
    return %arg0, %c0_i32 : i32, i32
  }
  func.func @transform_6(%arg0: i32) -> (i32, i32) {
    %c0_i32 = arith.constant 0 : i32
    %c0_i32_0 = arith.constant 0 : i32
    return %arg0, %c0_i32 : i32, i32
  }
  func.func @transform_7(%arg0: i32) -> (i32, i32) {
    %c0_i32 = arith.constant 0 : i32
    %c0_i32_0 = arith.constant 0 : i32
    return %arg0, %c0_i32 : i32, i32
  }
}

module attributes {stable_mosaic.version = 11 : i64} {
  func.func @flash_attn_kernel(%arg0: i32, %arg1: i32, %arg2: memref<4x16x32xbf16, #tpu.memory_space<vmem>>, %arg3: memref<4x16x32xbf16, #tpu.memory_space<vmem>>, %arg4: memref<4x16x32xbf16, #tpu.memory_space<vmem>>, %arg5: memref<4x16x32xbf16, #tpu.memory_space<vmem>>, %arg6: memref<4x16x1xf32, #tpu.memory_space<vmem>>, %arg7: memref<4x16x1xf32, #tpu.memory_space<vmem>>, %arg8: memref<4x16x32xf32, #tpu.memory_space<vmem>>) attributes {dimension_semantics = [#tpu.dimension_semantics<parallel>, #tpu.dimension_semantics<arbitrary>], iteration_bounds = array<i64: 4, 4>, scalar_prefetch = 0 : i64, scratch_operands = 3 : i64, tpu.core_type = #tpu.core_type<tc>, window_params = [{transform_indices = @transform_0, window_bounds = array<i64: 4, 16, 32>}, {transform_indices = @transform_1, window_bounds = array<i64: 4, 16, 32>}, {transform_indices = @transform_2, window_bounds = array<i64: 4, 16, 32>}, {transform_indices = @transform_3, window_bounds = array<i64: 4, 16, 32>}]} {
    %c0_i32 = arith.constant 0 : i32
    %0 = arith.cmpi eq, %arg1, %c0_i32 : i32
    %1 = arith.extui %0 : i1 to i32
    %c0_i32_0 = arith.constant 0 : i32
    %2 = arith.cmpi ne, %1, %c0_i32_0 : i32
    scf.if %2 {
      %cst = arith.constant 0xFF800000 : f32
      %12 = vector.broadcast %cst : f32 to vector<4x16x1xf32>
      %c0 = arith.constant 0 : index
      %c0_4 = arith.constant 0 : index
      %c0_5 = arith.constant 0 : index
      %13 = vector.load %arg6[%c0, %c0_4, %c0_5] : memref<4x16x1xf32, #tpu.memory_space<vmem>>, vector<4x16x1xf32>
      tpu.vector_store %arg6[%c0, %c0_4, %c0_5], %12 {strides = array<i32>} : memref<4x16x1xf32, #tpu.memory_space<vmem>>, vector<4x16x1xf32>,
      %cst_6 = arith.constant 0.000000e+00 : f32
      %14 = vector.broadcast %cst_6 : f32 to vector<4x16x1xf32>
      %c0_7 = arith.constant 0 : index
      %c0_8 = arith.constant 0 : index
      %c0_9 = arith.constant 0 : index
      %15 = vector.load %arg7[%c0_7, %c0_8, %c0_9] : memref<4x16x1xf32, #tpu.memory_space<vmem>>, vector<4x16x1xf32>
      tpu.vector_store %arg7[%c0_7, %c0_8, %c0_9], %14 {strides = array<i32>} : memref<4x16x1xf32, #tpu.memory_space<vmem>>, vector<4x16x1xf32>,
      %cst_10 = arith.constant 0.000000e+00 : f32
      %16 = vector.broadcast %cst_10 : f32 to vector<4x16x32xf32>
      %c0_11 = arith.constant 0 : index
      %c0_12 = arith.constant 0 : index
      %c0_13 = arith.constant 0 : index
      %17 = vector.load %arg8[%c0_11, %c0_12, %c0_13] : memref<4x16x32xf32, #tpu.memory_space<vmem>>, vector<4x16x32xf32>
      tpu.vector_store %arg8[%c0_11, %c0_12, %c0_13], %16 {strides = array<i32>} : memref<4x16x32xf32, #tpu.memory_space<vmem>>, vector<4x16x32xf32>,
    } else {
    }
    %3 = arith.cmpi slt, %arg1, %arg0 : i32
    %4 = arith.extui %3 : i1 to i32
    %c0_i32_1 = arith.constant 0 : i32
    %5 = arith.cmpi ne, %4, %c0_i32_1 : i32
    scf.if %5 {
      %c0 = arith.constant 0 : index
      %c0_4 = arith.constant 0 : index
      %c0_5 = arith.constant 0 : index
      %12 = vector.load %arg2[%c0, %c0_4, %c0_5] : memref<4x16x32xbf16, #tpu.memory_space<vmem>>, vector<4x16x32xbf16>
      %c0_6 = arith.constant 0 : index
      %c0_7 = arith.constant 0 : index
      %c0_8 = arith.constant 0 : index
      %13 = vector.load %arg3[%c0_6, %c0_7, %c0_8] : memref<4x16x32xbf16, #tpu.memory_space<vmem>>, vector<4x16x32xbf16>
      "tpu.trace_start"() <{level = 10 : i32, message = "hqd,hkd->hqk"}> : () -> ()
      %cst = arith.constant dense<0.000000e+00> : vector<4x16x16xf32>
      %14 = tpu.matmul %12, %13, %cst {dimension_numbers = #tpu.dot_dimension_numbers<[2], [2], [1], [1], [0, 0, 0, 1, 1, 1], [0], [0]>} : vector<4x16x32xbf16>, vector<4x16x32xbf16>, vector<4x16x16xf32> -> vector<4x16x16xf32>
      "tpu.trace_stop"() : () -> ()
      %c0_9 = arith.constant 0 : index
      %c0_10 = arith.constant 0 : index
      %c0_11 = arith.constant 0 : index
      %15 = vector.load %arg6[%c0_9, %c0_10, %c0_11] : memref<4x16x1xf32, #tpu.memory_space<vmem>>, vector<4x16x1xf32>
      %cst_12 = arith.constant dense<0xFF800000> : vector<4x16xf32>
      %16 = vector.multi_reduction <maximumf>, %14, %cst_12 [2] : vector<4x16x16xf32> to vector<4x16xf32>
      %17 = vector.shape_cast %16 : vector<4x16xf32> to vector<4x16x1xf32>
      %18 = arith.maximumf %15, %17 : vector<4x16x1xf32>
      %19 = arith.subf %15, %18 : vector<4x16x1xf32>
      %20 = math.exp %19 : vector<4x16x1xf32>
      %21 = vector.broadcast %18 : vector<4x16x1xf32> to vector<4x16x16xf32>
      %22 = arith.subf %14, %21 : vector<4x16x16xf32>
      %23 = math.exp %22 : vector<4x16x16xf32>
      %c0_13 = arith.constant 0 : index
      %c0_14 = arith.constant 0 : index
      %c0_15 = arith.constant 0 : index
      %24 = vector.load %arg7[%c0_13, %c0_14, %c0_15] : memref<4x16x1xf32, #tpu.memory_space<vmem>>, vector<4x16x1xf32>
      %25 = arith.mulf %20, %24 : vector<4x16x1xf32>
      %cst_16 = arith.constant dense<0.000000e+00> : vector<4x16xf32>
      %26 = vector.multi_reduction <add>, %23, %cst_16 [2] : vector<4x16x16xf32> to vector<4x16xf32>
      %27 = vector.shape_cast %26 : vector<4x16xf32> to vector<4x16x1xf32>
      %28 = arith.addf %25, %27 : vector<4x16x1xf32>
      %c0_17 = arith.constant 0 : index
      %c0_18 = arith.constant 0 : index
      %c0_19 = arith.constant 0 : index
      %29 = vector.load %arg7[%c0_17, %c0_18, %c0_19] : memref<4x16x1xf32, #tpu.memory_space<vmem>>, vector<4x16x1xf32>
      tpu.vector_store %arg7[%c0_17, %c0_18, %c0_19], %28 {strides = array<i32>} : memref<4x16x1xf32, #tpu.memory_space<vmem>>, vector<4x16x1xf32>,
      %c0_20 = arith.constant 0 : index
      %c0_21 = arith.constant 0 : index
      %c0_22 = arith.constant 0 : index
      %30 = vector.load %arg8[%c0_20, %c0_21, %c0_22] : memref<4x16x32xf32, #tpu.memory_space<vmem>>, vector<4x16x32xf32>
      %31 = vector.broadcast %20 : vector<4x16x1xf32> to vector<4x16x32xf32>
      %32 = arith.mulf %31, %30 : vector<4x16x32xf32>
      %33 = arith.truncf %23 : vector<4x16x16xf32> to vector<4x16x16xbf16>
      %c0_23 = arith.constant 0 : index
      %c0_24 = arith.constant 0 : index
      %c0_25 = arith.constant 0 : index
      %34 = vector.load %arg4[%c0_23, %c0_24, %c0_25] : memref<4x16x32xbf16, #tpu.memory_space<vmem>>, vector<4x16x32xbf16>
      "tpu.trace_start"() <{level = 10 : i32, message = "hqk,hkd->hqd"}> : () -> ()
      %cst_26 = arith.constant dense<0.000000e+00> : vector<4x16x32xf32>
      %35 = tpu.matmul %33, %34, %cst_26 {dimension_numbers = #tpu.dot_dimension_numbers<[2], [1], [1], [2], [0, 0, 0, 1, 1, 2], [0], [0]>} : vector<4x16x16xbf16>, vector<4x16x32xbf16>, vector<4x16x32xf32> -> vector<4x16x32xf32>
      "tpu.trace_stop"() : () -> ()
      %36 = arith.addf %32, %35 : vector<4x16x32xf32>
      %c0_27 = arith.constant 0 : index
      %c0_28 = arith.constant 0 : index
      %c0_29 = arith.constant 0 : index
      %37 = vector.load %arg8[%c0_27, %c0_28, %c0_29] : memref<4x16x32xf32, #tpu.memory_space<vmem>>, vector<4x16x32xf32>
      tpu.vector_store %arg8[%c0_27, %c0_28, %c0_29], %36 {strides = array<i32>} : memref<4x16x32xf32, #tpu.memory_space<vmem>>, vector<4x16x32xf32>,
      %c0_30 = arith.constant 0 : index
      %c0_31 = arith.constant 0 : index
      %c0_32 = arith.constant 0 : index
      %38 = vector.load %arg6[%c0_30, %c0_31, %c0_32] : memref<4x16x1xf32, #tpu.memory_space<vmem>>, vector<4x16x1xf32>
      tpu.vector_store %arg6[%c0_30, %c0_31, %c0_32], %18 {strides = array<i32>} : memref<4x16x1xf32, #tpu.memory_space<vmem>>, vector<4x16x1xf32>,
    } else {
    }
    %6 = arith.cmpi eq, %arg1, %arg0 : i32
    %7 = arith.extui %6 : i1 to i32
    %c0_i32_2 = arith.constant 0 : i32
    %8 = arith.cmpi ne, %7, %c0_i32_2 : i32
    scf.if %8 {
      %c0 = arith.constant 0 : index
      %c0_4 = arith.constant 0 : index
      %c0_5 = arith.constant 0 : index
      %12 = vector.load %arg2[%c0, %c0_4, %c0_5] : memref<4x16x32xbf16, #tpu.memory_space<vmem>>, vector<4x16x32xbf16>
      %c0_6 = arith.constant 0 : index
      %c0_7 = arith.constant 0 : index
      %c0_8 = arith.constant 0 : index
      %13 = vector.load %arg3[%c0_6, %c0_7, %c0_8] : memref<4x16x32xbf16, #tpu.memory_space<vmem>>, vector<4x16x32xbf16>
      "tpu.trace_start"() <{level = 10 : i32, message = "hqd,hkd->hqk"}> : () -> ()
      %cst = arith.constant dense<0.000000e+00> : vector<4x16x16xf32>
      %14 = tpu.matmul %12, %13, %cst {dimension_numbers = #tpu.dot_dimension_numbers<[2], [2], [1], [1], [0, 0, 0, 1, 1, 1], [0], [0]>} : vector<4x16x32xbf16>, vector<4x16x32xbf16>, vector<4x16x16xf32> -> vector<4x16x16xf32>
      "tpu.trace_stop"() : () -> ()
      %15 = tpu.iota {dimensions = array<i32: 0>} : vector<16x16xi32>
      %16 = tpu.iota {dimensions = array<i32: 1>} : vector<16x16xi32>
      %17 = arith.cmpi sle, %16, %15 : vector<16x16xi32>
      %18 = vector.shape_cast %17 : vector<16x16xi1> to vector<1x16x16xi1>
      %cst_9 = arith.constant -1.000000e+30 : f32
      %19 = vector.shape_cast %18 : vector<1x16x16xi1> to vector<1x16x16xi1>
      %20 = vector.broadcast %19 : vector<1x16x16xi1> to vector<4x16x16xi1>
      %21 = vector.broadcast %cst_9 : f32 to vector<4x16x16xf32>
      %22 = arith.select %20, %14, %21 : vector<4x16x16xi1>, vector<4x16x16xf32>
      %c0_10 = arith.constant 0 : index
      %c0_11 = arith.constant 0 : index
      %c0_12 = arith.constant 0 : index
      %23 = vector.load %arg6[%c0_10, %c0_11, %c0_12] : memref<4x16x1xf32, #tpu.memory_space<vmem>>, vector<4x16x1xf32>
      %cst_13 = arith.constant dense<0xFF800000> : vector<4x16xf32>
      %24 = vector.multi_reduction <maximumf>, %22, %cst_13 [2] : vector<4x16x16xf32> to vector<4x16xf32>
      %25 = vector.shape_cast %24 : vector<4x16xf32> to vector<4x16x1xf32>
      %26 = arith.maximumf %23, %25 : vector<4x16x1xf32>
      %27 = arith.subf %23, %26 : vector<4x16x1xf32>
      %28 = math.exp %27 : vector<4x16x1xf32>
      %29 = vector.broadcast %26 : vector<4x16x1xf32> to vector<4x16x16xf32>
      %30 = arith.subf %22, %29 : vector<4x16x16xf32>
      %31 = math.exp %30 : vector<4x16x16xf32>
      %c0_14 = arith.constant 0 : index
      %c0_15 = arith.constant 0 : index
      %c0_16 = arith.constant 0 : index
      %32 = vector.load %arg7[%c0_14, %c0_15, %c0_16] : memref<4x16x1xf32, #tpu.memory_space<vmem>>, vector<4x16x1xf32>
      %33 = arith.mulf %28, %32 : vector<4x16x1xf32>
      %cst_17 = arith.constant dense<0.000000e+00> : vector<4x16xf32>
      %34 = vector.multi_reduction <add>, %31, %cst_17 [2] : vector<4x16x16xf32> to vector<4x16xf32>
      %35 = vector.shape_cast %34 : vector<4x16xf32> to vector<4x16x1xf32>
      %36 = arith.addf %33, %35 : vector<4x16x1xf32>
      %c0_18 = arith.constant 0 : index
      %c0_19 = arith.constant 0 : index
      %c0_20 = arith.constant 0 : index
      %37 = vector.load %arg7[%c0_18, %c0_19, %c0_20] : memref<4x16x1xf32, #tpu.memory_space<vmem>>, vector<4x16x1xf32>
      tpu.vector_store %arg7[%c0_18, %c0_19, %c0_20], %36 {strides = array<i32>} : memref<4x16x1xf32, #tpu.memory_space<vmem>>, vector<4x16x1xf32>,
      %c0_21 = arith.constant 0 : index
      %c0_22 = arith.constant 0 : index
      %c0_23 = arith.constant 0 : index
      %38 = vector.load %arg8[%c0_21, %c0_22, %c0_23] : memref<4x16x32xf32, #tpu.memory_space<vmem>>, vector<4x16x32xf32>
      %39 = vector.broadcast %28 : vector<4x16x1xf32> to vector<4x16x32xf32>
      %40 = arith.mulf %39, %38 : vector<4x16x32xf32>
      %41 = arith.truncf %31 : vector<4x16x16xf32> to vector<4x16x16xbf16>
      %c0_24 = arith.constant 0 : index
      %c0_25 = arith.constant 0 : index
      %c0_26 = arith.constant 0 : index
      %42 = vector.load %arg4[%c0_24, %c0_25, %c0_26] : memref<4x16x32xbf16, #tpu.memory_space<vmem>>, vector<4x16x32xbf16>
      "tpu.trace_start"() <{level = 10 : i32, message = "hqk,hkd->hqd"}> : () -> ()
      %cst_27 = arith.constant dense<0.000000e+00> : vector<4x16x32xf32>
      %43 = tpu.matmul %41, %42, %cst_27 {dimension_numbers = #tpu.dot_dimension_numbers<[2], [1], [1], [2], [0, 0, 0, 1, 1, 2], [0], [0]>} : vector<4x16x16xbf16>, vector<4x16x32xbf16>, vector<4x16x32xf32> -> vector<4x16x32xf32>
      "tpu.trace_stop"() : () -> ()
      %44 = arith.addf %40, %43 : vector<4x16x32xf32>
      %c0_28 = arith.constant 0 : index
      %c0_29 = arith.constant 0 : index
      %c0_30 = arith.constant 0 : index
      %45 = vector.load %arg8[%c0_28, %c0_29, %c0_30] : memref<4x16x32xf32, #tpu.memory_space<vmem>>, vector<4x16x32xf32>
      tpu.vector_store %arg8[%c0_28, %c0_29, %c0_30], %44 {strides = array<i32>} : memref<4x16x32xf32, #tpu.memory_space<vmem>>, vector<4x16x32xf32>,
      %c0_31 = arith.constant 0 : index
      %c0_32 = arith.constant 0 : index
      %c0_33 = arith.constant 0 : index
      %46 = vector.load %arg6[%c0_31, %c0_32, %c0_33] : memref<4x16x1xf32, #tpu.memory_space<vmem>>, vector<4x16x1xf32>
      tpu.vector_store %arg6[%c0_31, %c0_32, %c0_33], %26 {strides = array<i32>} : memref<4x16x1xf32, #tpu.memory_space<vmem>>, vector<4x16x1xf32>,
    } else {
    }
    %c3_i32 = arith.constant 3 : i32
    %9 = arith.cmpi eq, %arg1, %c3_i32 : i32
    %10 = arith.extui %9 : i1 to i32
    %c0_i32_3 = arith.constant 0 : i32
    %11 = arith.cmpi ne, %10, %c0_i32_3 : i32
    scf.if %11 {
      %c0 = arith.constant 0 : index
      %c0_4 = arith.constant 0 : index
      %c0_5 = arith.constant 0 : index
      %12 = vector.load %arg7[%c0, %c0_4, %c0_5] : memref<4x16x1xf32, #tpu.memory_space<vmem>>, vector<4x16x1xf32>
      %13 = tpu.reciprocal %12 {approx = true} : vector<4x16x1xf32> -> vector<4x16x1xf32>
      %c0_6 = arith.constant 0 : index
      %c0_7 = arith.constant 0 : index
      %c0_8 = arith.constant 0 : index
      %14 = vector.load %arg8[%c0_6, %c0_7, %c0_8] : memref<4x16x32xf32, #tpu.memory_space<vmem>>, vector<4x16x32xf32>
      %15 = vector.broadcast %13 : vector<4x16x1xf32> to vector<4x16x32xf32>
      %16 = arith.mulf %14, %15 : vector<4x16x32xf32>
      %17 = arith.truncf %16 : vector<4x16x32xf32> to vector<4x16x32xbf16>
      %c0_9 = arith.constant 0 : index
      %c0_10 = arith.constant 0 : index
      %c0_11 = arith.constant 0 : index
      %18 = vector.load %arg5[%c0_9, %c0_10, %c0_11] : memref<4x16x32xbf16, #tpu.memory_space<vmem>>, vector<4x16x32xbf16>
      tpu.vector_store %arg5[%c0_9, %c0_10, %c0_11], %17 {strides = array<i32>} : memref<4x16x32xbf16, #tpu.memory_space<vmem>>, vector<4x16x32xbf16>,
    } else {
    }
    return
  }
  func.func @transform_0(%arg0: i32, %arg1: i32) -> (i32, i32, i32) {
    %c0_i32 = arith.constant 0 : i32
    %c0_i32_0 = arith.constant 0 : i32
    %c0_i32_1 = arith.constant 0 : i32
    return %c0_i32, %arg0, %c0_i32_0 : i32, i32, i32
  }
  func.func @transform_1(%arg0: i32, %arg1: i32) -> (i32, i32, i32) {
    %0 = arith.minsi %arg1, %arg0 : i32
    %c0_i32 = arith.constant 0 : i32
    %c0_i32_0 = arith.constant 0 : i32
    %c0_i32_1 = arith.constant 0 : i32
    return %c0_i32, %0, %c0_i32_0 : i32, i32, i32
  }
  func.func @transform_2(%arg0: i32, %arg1: i32) -> (i32, i32, i32) {
    %0 = arith.minsi %arg1, %arg0 : i32
    %c0_i32 = arith.constant 0 : i32
    %c0_i32_0 = arith.constant 0 : i32
    %c0_i32_1 = arith.constant 0 : i32
    return %c0_i32, %0, %c0_i32_0 : i32, i32, i32
  }
  func.func @transform_3(%arg0: i32, %arg1: i32) -> (i32, i32, i32) {
    %c0_i32 = arith.constant 0 : i32
    %c0_i32_0 = arith.constant 0 : i32
    %c0_i32_1 = arith.constant 0 : i32
    return %c0_i32, %arg0, %c0_i32_0 : i32, i32, i32
  }
}

module attributes {stable_mosaic.version = 11 : i64} {
  func.func @proj_mlp_kernel(%arg0: i32, %arg1: memref<16x128xbf16, #tpu.memory_space<vmem>>, %arg2: memref<16x128xf32, #tpu.memory_space<vmem>>, %arg3: memref<128x128xbf16, #tpu.memory_space<vmem>>, %arg4: memref<1x128xf32, #tpu.memory_space<vmem>>, %arg5: memref<1x128xf32, #tpu.memory_space<vmem>>, %arg6: memref<1x128xf32, #tpu.memory_space<vmem>>, %arg7: memref<128x512xbf16, #tpu.memory_space<vmem>>, %arg8: memref<1x512xf32, #tpu.memory_space<vmem>>, %arg9: memref<512x128xbf16, #tpu.memory_space<vmem>>, %arg10: memref<1x128xf32, #tpu.memory_space<vmem>>, %arg11: memref<16x128xf32, #tpu.memory_space<vmem>>) attributes {dimension_semantics = [#tpu.dimension_semantics<parallel>], iteration_bounds = array<i64: 4>, scalar_prefetch = 0 : i64, scratch_operands = 0 : i64, tpu.core_type = #tpu.core_type<tc>, window_params = [{transform_indices = @transform_0, window_bounds = array<i64: 16, 128>}, {transform_indices = @transform_1, window_bounds = array<i64: 16, 128>}, {pipeline_mode = #tpu.pipeline_mode<synchronous>, transform_indices = @transform_2, window_bounds = array<i64: 128, 128>}, {pipeline_mode = #tpu.pipeline_mode<synchronous>, transform_indices = @transform_3, window_bounds = array<i64: 1, 128>}, {pipeline_mode = #tpu.pipeline_mode<synchronous>, transform_indices = @transform_4, window_bounds = array<i64: 1, 128>}, {pipeline_mode = #tpu.pipeline_mode<synchronous>, transform_indices = @transform_5, window_bounds = array<i64: 1, 128>}, {pipeline_mode = #tpu.pipeline_mode<synchronous>, transform_indices = @transform_6, window_bounds = array<i64: 128, 512>}, {pipeline_mode = #tpu.pipeline_mode<synchronous>, transform_indices = @transform_7, window_bounds = array<i64: 1, 512>}, {pipeline_mode = #tpu.pipeline_mode<synchronous>, transform_indices = @transform_8, window_bounds = array<i64: 512, 128>}, {pipeline_mode = #tpu.pipeline_mode<synchronous>, transform_indices = @transform_9, window_bounds = array<i64: 1, 128>}, {transform_indices = @transform_10, window_bounds = array<i64: 16, 128>}]} {
    %c0 = arith.constant 0 : index
    %c0_0 = arith.constant 0 : index
    %0 = vector.load %arg1[%c0, %c0_0] : memref<16x128xbf16, #tpu.memory_space<vmem>>, vector<16x128xbf16>
    %c0_1 = arith.constant 0 : index
    %c0_2 = arith.constant 0 : index
    %1 = vector.load %arg3[%c0_1, %c0_2] : memref<128x128xbf16, #tpu.memory_space<vmem>>, vector<128x128xbf16>
    %cst = arith.constant dense<0.000000e+00> : vector<16x128xf32>
    %2 = tpu.matmul %0, %1, %cst {dimension_numbers = #tpu.dot_dimension_numbers<[1], [0], [0], [1], [0, 0, 1, 1], [], []>} : vector<16x128xbf16>, vector<128x128xbf16>, vector<16x128xf32> -> vector<16x128xf32>
    %c0_3 = arith.constant 0 : index
    %c0_4 = arith.constant 0 : index
    %3 = vector.load %arg4[%c0_3, %c0_4] : memref<1x128xf32, #tpu.memory_space<vmem>>, vector<1x128xf32>
    %4 = vector.broadcast %3 : vector<1x128xf32> to vector<16x128xf32>
    %5 = arith.addf %2, %4 : vector<16x128xf32>
    %c0_5 = arith.constant 0 : index
    %c0_6 = arith.constant 0 : index
    %6 = vector.load %arg2[%c0_5, %c0_6] : memref<16x128xf32, #tpu.memory_space<vmem>>, vector<16x128xf32>
    %7 = arith.addf %5, %6 : vector<16x128xf32>
    %c0_7 = arith.constant 0 : index
    %c0_8 = arith.constant 0 : index
    %8 = vector.load %arg5[%c0_7, %c0_8] : memref<1x128xf32, #tpu.memory_space<vmem>>, vector<1x128xf32>
    %c0_9 = arith.constant 0 : index
    %c0_10 = arith.constant 0 : index
    %9 = vector.load %arg6[%c0_9, %c0_10] : memref<1x128xf32, #tpu.memory_space<vmem>>, vector<1x128xf32>
    %cst_11 = arith.constant dense<0.000000e+00> : vector<16xf32>
    %10 = vector.multi_reduction <add>, %7, %cst_11 [1] : vector<16x128xf32> to vector<16xf32>
    %11 = vector.shape_cast %10 : vector<16xf32> to vector<16x1xf32>
    %cst_12 = arith.constant 1.280000e+02 : f32
    %12 = vector.broadcast %cst_12 : f32 to vector<16x1xf32>
    %13 = arith.divf %11, %12 : vector<16x1xf32>
    %14 = vector.broadcast %13 : vector<16x1xf32> to vector<16x128xf32>
    %15 = arith.subf %7, %14 : vector<16x128xf32>
    %16 = vector.broadcast %13 : vector<16x1xf32> to vector<16x128xf32>
    %17 = arith.subf %7, %16 : vector<16x128xf32>
    %18 = arith.mulf %15, %17 : vector<16x128xf32>
    %cst_13 = arith.constant dense<0.000000e+00> : vector<16xf32>
    %19 = vector.multi_reduction <add>, %18, %cst_13 [1] : vector<16x128xf32> to vector<16xf32>
    %20 = vector.shape_cast %19 : vector<16xf32> to vector<16x1xf32>
    %cst_14 = arith.constant 1.280000e+02 : f32
    %21 = vector.broadcast %cst_14 : f32 to vector<16x1xf32>
    %22 = arith.divf %20, %21 : vector<16x1xf32>
    %23 = vector.broadcast %13 : vector<16x1xf32> to vector<16x128xf32>
    %24 = arith.subf %7, %23 : vector<16x128xf32>
    %cst_15 = arith.constant 9.99999974E-6 : f32
    %25 = vector.broadcast %cst_15 : f32 to vector<16x1xf32>
    %26 = arith.addf %22, %25 : vector<16x1xf32>
    %27 = math.rsqrt %26 : vector<16x1xf32>
    %28 = vector.broadcast %27 : vector<16x1xf32> to vector<16x128xf32>
    %29 = arith.mulf %24, %28 : vector<16x128xf32>
    %30 = vector.broadcast %8 : vector<1x128xf32> to vector<16x128xf32>
    %31 = arith.mulf %29, %30 : vector<16x128xf32>
    %32 = vector.broadcast %9 : vector<1x128xf32> to vector<16x128xf32>
    %33 = arith.addf %31, %32 : vector<16x128xf32>
    %34 = arith.truncf %33 : vector<16x128xf32> to vector<16x128xbf16>
    %c0_16 = arith.constant 0 : index
    %c0_17 = arith.constant 0 : index
    %35 = vector.load %arg7[%c0_16, %c0_17] : memref<128x512xbf16, #tpu.memory_space<vmem>>, vector<128x512xbf16>
    %cst_18 = arith.constant dense<0.000000e+00> : vector<16x512xf32>
    %36 = tpu.matmul %34, %35, %cst_18 {dimension_numbers = #tpu.dot_dimension_numbers<[1], [0], [0], [1], [0, 0, 1, 1], [], []>} : vector<16x128xbf16>, vector<128x512xbf16>, vector<16x512xf32> -> vector<16x512xf32>
    %c0_19 = arith.constant 0 : index
    %c0_20 = arith.constant 0 : index
    %37 = vector.load %arg8[%c0_19, %c0_20] : memref<1x512xf32, #tpu.memory_space<vmem>>, vector<1x512xf32>
    %38 = vector.broadcast %37 : vector<1x512xf32> to vector<16x512xf32>
    %39 = arith.addf %36, %38 : vector<16x512xf32>
    %cst_21 = arith.constant 5.000000e-01 : f32
    %40 = vector.broadcast %cst_21 : f32 to vector<16x512xf32>
    %41 = arith.mulf %40, %39 : vector<16x512xf32>
    %cst_22 = arith.constant 4.471500e-02 : f32
    %42 = vector.broadcast %cst_22 : f32 to vector<16x512xf32>
    %43 = arith.mulf %42, %39 : vector<16x512xf32>
    %44 = arith.mulf %43, %39 : vector<16x512xf32>
    %45 = arith.mulf %44, %39 : vector<16x512xf32>
    %46 = arith.addf %39, %45 : vector<16x512xf32>
    %cst_23 = arith.constant 0.797884583 : f32
    %47 = vector.broadcast %cst_23 : f32 to vector<16x512xf32>
    %48 = arith.mulf %47, %46 : vector<16x512xf32>
    %49 = math.tanh %48 : vector<16x512xf32>
    %cst_24 = arith.constant 1.000000e+00 : f32
    %50 = vector.broadcast %cst_24 : f32 to vector<16x512xf32>
    %51 = arith.addf %50, %49 : vector<16x512xf32>
    %52 = arith.mulf %41, %51 : vector<16x512xf32>
    %53 = arith.truncf %52 : vector<16x512xf32> to vector<16x512xbf16>
    %c0_25 = arith.constant 0 : index
    %c0_26 = arith.constant 0 : index
    %54 = vector.load %arg9[%c0_25, %c0_26] : memref<512x128xbf16, #tpu.memory_space<vmem>>, vector<512x128xbf16>
    %cst_27 = arith.constant dense<0.000000e+00> : vector<16x128xf32>
    %55 = tpu.matmul %53, %54, %cst_27 {dimension_numbers = #tpu.dot_dimension_numbers<[1], [0], [0], [1], [0, 0, 1, 1], [], []>} : vector<16x512xbf16>, vector<512x128xbf16>, vector<16x128xf32> -> vector<16x128xf32>
    %c0_28 = arith.constant 0 : index
    %c0_29 = arith.constant 0 : index
    %56 = vector.load %arg10[%c0_28, %c0_29] : memref<1x128xf32, #tpu.memory_space<vmem>>, vector<1x128xf32>
    %57 = vector.broadcast %56 : vector<1x128xf32> to vector<16x128xf32>
    %58 = arith.addf %55, %57 : vector<16x128xf32>
    %59 = arith.addf %7, %58 : vector<16x128xf32>
    %c0_30 = arith.constant 0 : index
    %c0_31 = arith.constant 0 : index
    %60 = vector.load %arg11[%c0_30, %c0_31] : memref<16x128xf32, #tpu.memory_space<vmem>>, vector<16x128xf32>
    tpu.vector_store %arg11[%c0_30, %c0_31], %59 {strides = array<i32>} : memref<16x128xf32, #tpu.memory_space<vmem>>, vector<16x128xf32>,
    return
  }
  func.func @transform_0(%arg0: i32) -> (i32, i32) {
    %c0_i32 = arith.constant 0 : i32
    %c0_i32_0 = arith.constant 0 : i32
    return %arg0, %c0_i32 : i32, i32
  }
  func.func @transform_1(%arg0: i32) -> (i32, i32) {
    %c0_i32 = arith.constant 0 : i32
    %c0_i32_0 = arith.constant 0 : i32
    return %arg0, %c0_i32 : i32, i32
  }
  func.func @transform_2(%arg0: i32) -> (i32, i32) {
    %c0_i32 = arith.constant 0 : i32
    %c0_i32_0 = arith.constant 0 : i32
    %c0_i32_1 = arith.constant 0 : i32
    return %c0_i32, %c0_i32_0 : i32, i32
  }
  func.func @transform_3(%arg0: i32) -> (i32, i32) {
    %c0_i32 = arith.constant 0 : i32
    %c0_i32_0 = arith.constant 0 : i32
    %c0_i32_1 = arith.constant 0 : i32
    return %c0_i32, %c0_i32_0 : i32, i32
  }
  func.func @transform_4(%arg0: i32) -> (i32, i32) {
    %c0_i32 = arith.constant 0 : i32
    %c0_i32_0 = arith.constant 0 : i32
    %c0_i32_1 = arith.constant 0 : i32
    return %c0_i32, %c0_i32_0 : i32, i32
  }
  func.func @transform_5(%arg0: i32) -> (i32, i32) {
    %c0_i32 = arith.constant 0 : i32
    %c0_i32_0 = arith.constant 0 : i32
    %c0_i32_1 = arith.constant 0 : i32
    return %c0_i32, %c0_i32_0 : i32, i32
  }
  func.func @transform_6(%arg0: i32) -> (i32, i32) {
    %c0_i32 = arith.constant 0 : i32
    %c0_i32_0 = arith.constant 0 : i32
    %c0_i32_1 = arith.constant 0 : i32
    return %c0_i32, %c0_i32_0 : i32, i32
  }
  func.func @transform_7(%arg0: i32) -> (i32, i32) {
    %c0_i32 = arith.constant 0 : i32
    %c0_i32_0 = arith.constant 0 : i32
    %c0_i32_1 = arith.constant 0 : i32
    return %c0_i32, %c0_i32_0 : i32, i32
  }
  func.func @transform_8(%arg0: i32) -> (i32, i32) {
    %c0_i32 = arith.constant 0 : i32
    %c0_i32_0 = arith.constant 0 : i32
    %c0_i32_1 = arith.constant 0 : i32
    return %c0_i32, %c0_i32_0 : i32, i32
  }
  func.func @transform_9(%arg0: i32) -> (i32, i32) {
    %c0_i32 = arith.constant 0 : i32
    %c0_i32_0 = arith.constant 0 : i32
    %c0_i32_1 = arith.constant 0 : i32
    return %c0_i32, %c0_i32_0 : i32, i32
  }
  func.func @transform_10(%arg0: i32) -> (i32, i32) {
    %c0_i32 = arith.constant 0 : i32
    %c0_i32_0 = arith.constant 0 : i32
    return %arg0, %c0_i32 : i32, i32
  }
}

</mosaic_0001>

<bundles_post_ra>
// kernel: _gpt2_block_impl.3
= control target key start
LH: loop header
LB: loop body
LE: loop exit
PB: predicated region body
PF: predicated region fallthrough
CT: control target
= control target key end

     0   :  { %s966_s24 = smov 0   ;;  %s1093_s0 = inlined_call_operand.vmem [shape: f32[64,128], index: 0, kind: input, shape index: {}]   ;;  %s1094_s1 = inlined_call_operand.vmem [shape: f32[1,128], index: 1, kind: input, shape index: {}]   ;;  %s1095_s2 = inlined_call_operand.vmem [shape: f32[1,128], index: 2, kind: input, shape index: {}]   ;;  %s1096_s3 = inlined_call_operand.vmem [shape: bf16[128,384], index: 3, kind: input, shape index: {}]   ;;  %s1097_s4 = inlined_call_operand.vmem [shape: f32[1,384], index: 4, kind: input, shape index: {}]   ;;  %s1098_s5 = inlined_call_operand.vmem [shape: bf16[64,128], index: 5, kind: output, shape index: {0}]   ;;  %s1099_s6 = inlined_call_operand.vmem [shape: bf16[64,128], index: 6, kind: output, shape index: {1}]   ;;  %s1100_s7 = inlined_call_operand.vmem [shape: bf16[64,128], index: 7, kind: output, shape index: {2}]  }
   0x1 LB: > { %s771_s25 = sadd.s32 4294967295, %s921_s24   ;;  %p775_p0 = scmp.ge.s32.totalorder %s921_s24, 1  ;;  %s921_s24 = sphi %s966_s24, %s18_s24  }
   0x2   : > { %p243_p1 = scmp.lt.s32.totalorder %s921_s24, 5 }
   0x4   : > { %p244_p2 = pnand %p775_p0, %p243_p1 }
   0x5   : > { %s776_s26 = sshll.u32 (!%p244_p2), %s771_s25, 1  ;;  %v879_v2 = vld [vmem:[%s1096_s3 + $0x4] ss:$12 sps:$4 sm:$0xff] (!%p244_p2)   ;;  %v881_v3 = vld [vmem:[%s1096_s3] ss:$12 sps:$4 sm:$0xff] (!%p244_p2)   ;;  %v923_v4 = vmov (!%p244_p2), 0.0   ;;  %v388_v53 = vlaneseq (!%p244_p2) }
   0x6   : > { %247 = sbr.rel (%p244_p2) target bundleno = 555 (0x22b), region = 40  ;;  %p286_p3 = scmp.lt.s32.totalorder (!%p244_p2), %s776_s26, 7  ;;  %848 = vmatprep.subr.bf16.mxu1 (!%p244_p2), %v923_v4  ;;  %v882_v5 = vld [vmem:[%s1096_s3 + $0x8] ss:$12 sps:$4 sm:$0xff] (!%p244_p2)   ;;  %531 = vmatprep.subr.bf16.mxu0 (!%p244_p2), %v879_v2  ;;  %v885_v15 = vld [vmem:[%s1096_s3 + $0x18] ss:$12 sps:$4 sm:$0xff] (!%p244_p2)  }
   0x7   : > { %v883_v6 = vld [vmem:[%s1096_s3 + $0x1c] ss:$12 sps:$4 sm:$0xff] (!%p244_p2)   ;;  %532 = vmatpush1.bf16.msra.mxu0 (!%p244_p2), %v881_v3  ;;  %849 = vmatpush3.bf16.msra.mxu1 (!%p244_p2), %v882_v5  ;;  %v886_v16 = vld [vmem:[%s1096_s3 + $0x20] ss:$12 sps:$4 sm:$0xff] (!%p244_p2)   ;;  %v890_v19 = vld [vmem:[%s1096_s3 + $0x38] ss:$12 sps:$4 sm:$0xff] (!%p244_p2)  }
   0x8   : > { %533 = vmatprep.subr.bf16.mxu0 (!%p244_p2), %v883_v6  ;;  %850 = vmatprep.subr.bf16.mxu1 (!%p244_p2), %v923_v4  ;;  %v887_v17 = vld [vmem:[%s1096_s3 + $0x34] ss:$12 sps:$4 sm:$0xff] (!%p244_p2)   ;;  %v889_v18 = vld [vmem:[%s1096_s3 + $0x30] ss:$12 sps:$4 sm:$0xff] (!%p244_p2)   ;;  %v891_v20 = vld [vmem:[%s1096_s3 + $0x4c] ss:$12 sps:$4 sm:$0xff] (!%p244_p2)  }
   0x9   : > { %v893_v21 = vld [vmem:[%s1096_s3 + $0x48] ss:$12 sps:$4 sm:$0xff] (!%p244_p2)   ;;  %v894_v22 = vld [vmem:[%s1096_s3 + $0x50] ss:$12 sps:$4 sm:$0xff] (!%p244_p2)   ;;  %v897_v24 = vld [vmem:[%s1096_s3 + $0x60] ss:$12 sps:$4 sm:$0xff] (!%p244_p2)  }
   0xa   : > { %v895_v23 = vld [vmem:[%s1096_s3 + $0x64] ss:$12 sps:$4 sm:$0xff] (!%p244_p2)   ;;  %v898_v25 = vld [vmem:[%s1096_s3 + $0x68] ss:$12 sps:$4 sm:$0xff] (!%p244_p2)   ;;  %v902_v28 = vld [vmem:[%s1096_s3 + $0x80] ss:$12 sps:$4 sm:$0xff] (!%p244_p2)  }
   0xb   : > { %534 = vmatpush1.bf16.msra.mxu0 (!%p244_p2), %v885_v15  ;;  %851 = vmatpush3.bf16.msra.mxu1 (!%p244_p2), %v886_v16  ;;  %v899_v26 = vld [vmem:[%s1096_s3 + $0x7c] ss:$12 sps:$4 sm:$0xff] (!%p244_p2)   ;;  %v901_v27 = vld [vmem:[%s1096_s3 + $0x78] ss:$12 sps:$4 sm:$0xff] (!%p244_p2)   ;;  %v903_v29 = vld [vmem:[%s1096_s3 + $0x94] ss:$12 sps:$4 sm:$0xff] (!%p244_p2)  }
   0xc   : > { %852 = vmatprep.subr.bf16.mxu1 (!%p244_p2), %v923_v4  ;;  %535 = vmatprep.subr.bf16.mxu0 (!%p244_p2), %v887_v17  ;;  %v924_v30 = vmov (!%p244_p2), 0   ;;  %vm925_vm0 = vmmov (!%p244_p2), 0   ;;  %v905_v31 = vld [vmem:[%s1096_s3 + $0x90] ss:$12 sps:$4 sm:$0xff] (!%p244_p2)   ;;  %v906_v32 = vld [vmem:[%s1096_s3 + $0x98] ss:$12 sps:$4 sm:$0xff] (!%p244_p2)  }
   0xd   : > { %s1102_s26 = smov (!%p286_p3, %s776_s26), 7  ;;  %563 = vmatprep.mubr.bf16.mxu0 %v924_v30  ;;  %864 = vmatprep.mubr.msk.bf16.mxu1 %vm925_vm0, %v923_v4  ;;  %v907_v33 = vld [vmem:[%s1096_s3 + $0xac] ss:$12 sps:$4 sm:$0xff]   ;;  %v909_v34 = vld [vmem:[%s1096_s3 + $0xa8] ss:$12 sps:$4 sm:$0xff]   ;;  %v389_v54 = vshrl.u32 %v388_v53, 7 }
   0xe   : > { %s777_s27 = sshll.u32 %s1102_s26, 3  ;;  %v910_v35 = vld [vmem:[%s1096_s3 + $0xb0] ss:$12 sps:$4 sm:$0xff]   ;;  %v784_v44 = vld [vmem:[%s1094_s1] ss:$0 sm:$0xff]  ;;  %s779_s20 = sshll.u32 %s1102_s26, 2 }
   0xf   : > { %s289_s30 = scalar_lea.vmem %s1093_s0, %s777_s27  ;;  %536 = vmatpush1.bf16.msra.mxu0 %v889_v18  ;;  %853 = vmatpush3.bf16.msra.mxu1 %v890_v19  ;;  %v785_v48 = vld [vmem:[%s1095_s2] ss:$0 sm:$0xff]  ;;  %v390_v55 = vsub.s32 0, %v389_v54  ;;  %v398_v57 = vsub.s32 2, %v389_v54  ;;  %v394_v58 = vsub.s32 1, %v389_v54  ;;  %s307_s23 = scalar_lea.vmem %s1100_s7, %s779_s20 }
  0x10   : > { %v310_v0 = vld [vmem:[%s289_s30] sm:$0xff]  ;;  %v311_v1 = vld [vmem:[%s289_s30 + $0x8] sm:$0xff]  ;;  %854 = vmatprep.subr.bf16.mxu1 %v923_v4  ;;  %537 = vmatprep.subr.bf16.mxu0 %v891_v20  ;;  %s301_s27 = scalar_lea.vmem %s1099_s6, %s779_s20  ;;  %s295_s30 = scalar_lea.vmem %s1098_s5, %s779_s20 }
  0x11   : > { %314 = vadd.xlane.f32.xlu0 %v310_v0  ;;  %v386_v56 = vld [vmem:[%s1097_s4] sm:$0x7] }
  0x12   : > { %v391_v59 = vrot.slane %v386_v56, %v390_v55  ;;  %v399_v60 = vrot.slane %v386_v56, %v398_v57  ;;  %v395_v63 = vrot.slane %v386_v56, %v394_v58 }
  0x13   : > { %538 = vmatpush1.bf16.msra.mxu0 %v893_v21  ;;  %855 = vmatpush3.bf16.msra.mxu1 %v894_v22 }
  0x14   : > { %856 = vmatprep.subr.bf16.mxu1 %v923_v4  ;;  %539 = vmatprep.subr.bf16.mxu0 %v895_v23 }
  0x15   : > { %316 = vadd.xlane.f32.xlu0 %v311_v1 }
  0x17   : > { %540 = vmatpush1.bf16.msra.mxu0 %v897_v24  ;;  %857 = vmatpush3.bf16.msra.mxu1 %v898_v25 }
  0x18   : > { %541 = vmatprep.subr.bf16.mxu0 %v899_v26  ;;  %858 = vmatprep.subr.bf16.mxu1 %v923_v4 }
  0x1b   : > { %542 = vmatpush1.bf16.msra.mxu0 %v901_v27  ;;  %859 = vmatpush3.bf16.msra.mxu1 %v902_v28 }
  0x1c   : > { %543 = vmatprep.subr.bf16.mxu0 %v903_v29  ;;  %860 = vmatprep.subr.bf16.mxu1 %v923_v4 }
  0x1f   : > { %544 = vmatpush1.bf16.msra.mxu0 %v905_v31  ;;  %861 = vmatpush3.bf16.msra.mxu1 %v906_v32 }
  0x20   : > { %545 = vmatprep.subr.bf16.mxu0 %v907_v33  ;;  %862 = vmatprep.subr.bf16.mxu1 %v923_v4 }
  0x23   : > { %546 = vmatpush1.bf16.msra.mxu0 %v909_v34  ;;  %863 = vmatpush3.bf16.msra.mxu1 %v910_v35 }
  0x9e   : > { %v315_v7 = vpop.xlane.xlu0 %314 }
  0x9f   : > { %v319_v8 = vmul.f32 0.0078125, %v315_v7 }
  0xa1   : > { %v994_v9 = vsub.f32 %v310_v0, %v319_v8 }
  0xa2   : > { %v317_v10 = vpop.xlane.xlu0 %316 }
  0xa3   : > { %v320_v11 = vmul.f32 0.0078125, %v317_v10  ;;  %v323_v12 = vmul.f32 %v994_v9, %v994_v9 }
  0xa5   : > { %v998_v13 = vsub.f32 %v311_v1, %v320_v11  ;;  %325 = vadd.xlane.f32.xlu1 %v323_v12 }
  0xa7   : > { %v324_v14 = vmul.f32 %v998_v13, %v998_v13 }
  0xa9   : > { %327 = vadd.xlane.f32.xlu1 %v324_v14 }
 0x132   : > { %v326_v36 = vpop.xlane.xlu1 %325 }
 0x133   : > { %v329_v37 = vmul.f32 0.0078125, %v326_v36 }
 0x135   : > { %v331_v38 = vadd.f32 1e-05, %v329_v37 }
 0x136   : > { %v328_v39 = vpop.xlane.xlu1 %327 }
 0x137   : > { %911 = vrsqrt.f32 %v331_v38  ;;  %v330_v40 = vmul.f32 0.0078125, %v328_v39 }
 0x139   : > { %v332_v41 = vadd.f32 1e-05, %v330_v40 }
 0x13b   : > { %913 = vrsqrt.f32 %v332_v41 }
 0x141   : > { %v912_v42 = vpop.eup %911 }
 0x142   : > { %v335_v43 = vmul.f32 %v912_v42, %v994_v9 }
 0x144   : > { %v343_v47 = vmul.f32 %v784_v44, %v335_v43 }
 0x145   : > { %v914_v45 = vpop.eup %913 }
 0x146   : > { %v336_v46 = vmul.f32 %v914_v45, %v998_v13  ;;  %v351_v50 = vadd.f32 %v785_v48, %v343_v47 }
 0x148   : > { %v344_v49 = vmul.f32 %v784_v44, %v336_v46 }
 0x14a   : > { %v352_v51 = vadd.f32 %v785_v48, %v344_v49 }
 0x14c   : > { %v353_v52 = vpack.c.bf16 %v352_v51, %v351_v50 }
 0x14e   : > { %564 = vmatmul.mubr.bf16.vlgmr.msra.gmra.mrb[0].mxu0 %v353_v52  ;;  %865 = vmatmul.mubr.bf16.vlgmr.msra.gmra.mrb[0].mxu1 %v353_v52 }
 0x221   : > { %v565_v61 = vpop.f32.mrb[0].mxu0  ;;  %v608_v62 = vpop.f32.mrb[0].mxu1 }
 0x222   : > { %v566_v0 = vadd.f32 %v565_v61, %v391_v59  ;;  %v567_v1 = vpop.f32.mrb[1].mxu0  ;;  %v866_v2 = vpop.f32.mrb[1].mxu1  ;;  %v609_v5 = vadd.f32 %v608_v62, %v399_v60 }
 0x223   : > { %v569_v3 = vpop.f32.mrb[2].mxu0  ;;  %v611_v4 = vpop.f32.mrb[2].mxu1  ;;  %v568_v10 = vadd.f32 %v567_v1, %v395_v63 }
 0x224   : > { %v570_v6 = vadd.f32 %v569_v3, %v391_v59  ;;  %v612_v7 = vadd.f32 %v611_v4, %v399_v60  ;;  %v571_v8 = vpop.f32.mrb[3].mxu0  ;;  %v867_v9 = vpop.f32.mrb[3].mxu1  ;;  %v615_v12 = vmul.f32 0.17677669, %v566_v0 }
 0x225   : > { %v572_v11 = vadd.f32 %v571_v8, %v395_v63 }
 0x226   : > { %v616_v13 = vmul.f32 0.17677669, %v570_v6  ;;  %v837_v14 = vpack.c.bf16 %v612_v7, %v609_v5 }
 0x227   : > { %v832_v15 = vpack.c.bf16 %v572_v11, %v568_v10 }
 0x228   : > { %v827_v16 = vpack.c.bf16 %v616_v13, %v615_v12  ;;  %838 = vst [vmem:[%s307_s23] sm:$0xff] %v837_v14  }
 0x229   : > { %833 = vst [vmem:[%s301_s27] sm:$0xff] %v832_v15  }
 0x22a   : > { %828 = vst [vmem:[%s295_s30] sm:$0xff] %v827_v16  }
 0x22b PF: > { %s18_s24 = sadd.s32 1, %s921_s24  }
 0x22c   : > { %p15_p4 = scmp.ge.s32.totalorder %s18_s24, 6  }
 0x22e   :  { %17 = sbr.rel (!%p15_p4) target bundleno = 1 (0x1), region = 94 }

// kernel: _gpt2_block_impl.4
= control target key start
LH: loop header
LB: loop body
LE: loop exit
PB: predicated region body
PF: predicated region fallthrough
CT: control target
= control target key end

     0   :  { %s2756_s12 = smov 0   ;;  %s2758_s13 = smov 0   ;;  %s3326_s0 = inlined_call_operand.vmem [shape: bf16[4,64,32], index: 0, kind: input, shape index: {}]   ;;  %s3327_s1 = inlined_call_operand.vmem [shape: bf16[4,64,32], index: 1, kind: input, shape index: {}]   ;;  %s3328_s2 = inlined_call_operand.vmem [shape: bf16[4,64,32], index: 2, kind: input, shape index: {}]   ;;  %s3329_s3 = inlined_call_operand.vmem [shape: bf16[4,64,32], index: 3, kind: output, shape index: {}]  }
   0x1   :  { %s2760_s14 = smov 0   ;;  %s2762_s15 = smov 0  }
   0x2   :  { %s2764_s16 = smov 0   ;;  %s2766_s17 = smov 0  }
   0x3   :  { %s2768_s18 = smov 0   ;;  %s2770_s19 = smov 0  }
   0x4   :  { %s2772_s20 = smov 0  }
   0x5 LB: > { %s2249_s21 = sadd.s32 4294967295, %s2725_s20   ;;  %s22_s22 = sadd.s32 1, %s2717_s18  ;;  %s2725_s20 = sphi %s2772_s20, %s13_s20   ;;  %s2721_s19 = sphi %s2770_s19, %s3340_s19   ;;  %s2717_s18 = sphi %s2768_s18, %s3339_s18   ;;  %s2713_s17 = sphi %s2766_s17, %s3338_s17   ;;  %s2709_s16 = sphi %s2764_s16, %s3337_s16   ;;  %s2705_s15 = sphi %s2762_s15, %s3336_s15   ;;  %s2701_s14 = sphi %s2760_s14, %s3335_s14   ;;  %s2697_s13 = sphi %s2758_s13, %s3334_s13   ;;  %s2693_s12 = sphi %s2756_s12, %s3333_s12  }
   0x6   : > { %p23_p0 = scmp.ge.s32.totalorder %s22_s22, 4  ;;  %s25_s23 = sadd.s32 1, %s2721_s19 }
   0x7   : > { %s32_s24 = sadd.s32 1, %s2705_s15  ;;  %p39_p1 = scmp.ne.s32.totalorder %s2705_s15, %s2701_s14 }
   0x8   : > { %s3342_s22 = smov (%p23_p0, %s22_s22), 0  ;;  %s3344_s23 = smov (!%p23_p0, %s25_s23), %s2721_s19 }
   0x9   : > { %p40_p2 = scmp.eq.s32.totalorder %s2725_s20, 0  ;;  %p55_p3 = scmp.lt.s32.totalorder %s2717_s18, %s2721_s19 }
   0xa   : > { %p27_p4 = scmp.ge.s32.totalorder %s3344_s23, 4  ;;  %s62_s25 = sadd.s32 1, %s2697_s13 }
   0xb   : > { %p2817_p5 = por %p40_p2, %p39_p1  ;;  %p69_p6 = scmp.ne.s32.totalorder %s2697_s13, %s2693_s12 }
   0xc   : > { %s3346_s23 = smov (%p27_p4, %s3344_s23), 0  ;;  %p129_p10 = scmp.eq.s32.totalorder %s2249_s21, 15 }
   0xd   : > { %s2827_s27 = scalar_select %p55_p3, %s2717_s18, %s2721_s19 }
   0xe   : > { %s29_s28 = ssub.s32 %s2721_s19, %s3346_s23  ;;  %p57_p7 = scmp.lt.s32.totalorder %s3342_s22, %s3346_s23 }
   0xf   : > { %p30_p8 = scmp.eq.s32.totalorder %s29_s28, 0  ;;  %p2833_p9 = por %p69_p6, %p40_p2 }
  0x10   : > { %s58_s30 = scalar_select %p57_p7, %s3342_s22, %s3346_s23 }
  0x11   : > { %s2840_s4 = scalar_select %p30_p8, %s2705_s15, %s32_s24  }
  0x12   : > { %s59_s5 = ssub.s32 %s2827_s27, %s58_s30  ;;  %p2846_p12 = por %p129_p10, %p39_p1 }
  0x13   : > { %p60_p11 = scmp.eq.s32.totalorder %s59_s5, 0  ;;  %p2252_p13 = scmp.ge.s32.totalorder %s2725_s20, 16 }
  0x15   : > { %s2851_s7 = scalar_select %p60_p11, %s2697_s13, %s62_s25  }
  0x16   : > { %151 = sbr.rel (%p2252_p13) target bundleno = 53 (0x35), region = 16 }
  0x1d   : > { %154 = sbr.rel (!%p2817_p5) target bundleno = 37 (0x25), region = 20  ;;  %s156_s8 = sand.u32 (%p2817_p5), 1, %s2705_s15  }
  0x1e   : > { %s2324_s9 = sshll.u32 (%p2817_p5), %s2721_s19, 3  ;;  %s2253_s10 = sshll.u32 (%p2817_p5), %s156_s8, 5 }
  0x1f   : > { %s161_s24 = scalar_lea.vmem (%p2817_p5), %s3326_s0, %s2324_s9  ;;  %s158_s25 = scalar_lea.vmem (%p2817_p5), [#allocation5], %s2253_s10 }
  0x20   : > { %v177_v0 = vld [vmem:[%s161_s24] sm:$0xff] (%p2817_p5)  }
  0x21   : > { %v181_v1 = vld [vmem:[%s161_s24 + $0x20] sm:$0xff] (%p2817_p5)   ;;  %178 = vst [vmem:[%s158_s25] sm:$0xff] (%p2817_p5), %v177_v0  }
  0x22   : > { %v185_v2 = vld [vmem:[%s161_s24 + $0x40] sm:$0xff] (%p2817_p5)   ;;  %182 = vst [vmem:[%s158_s25 + $0x8] sm:$0xff] (%p2817_p5), %v181_v1  }
  0x23   : > { %186 = vst [vmem:[%s158_s25 + $0x10] sm:$0xff] (%p2817_p5), %v185_v2   ;;  %v189_v3 = vld [vmem:[%s161_s24 + $0x60] sm:$0xff] (%p2817_p5)  }
  0x24   : > { %190 = vst [vmem:[%s158_s25 + $0x18] sm:$0xff] %v189_v3  }
  0x25 PF: > { %231 = sbr.rel (!%p2833_p9) target bundleno = 45 (0x2d), region = 61  ;;  %s233_s26 = sand.u32 (%p2833_p9), 1, %s2697_s13  }
  0x26   : > { %s2325_s28 = sshll.u32 (%p2833_p9), %s2827_s27, 3  ;;  %s2256_s30 = sshll.u32 (%p2833_p9), %s233_s26, 5 }
  0x27   : > { %s240_s9 = scalar_lea.vmem (%p2833_p9), %s3327_s1, %s2325_s28  ;;  %s235_s10 = scalar_lea.vmem (%p2833_p9), [#allocation6], %s2256_s30 }
  0x28   : > { %v256_v4 = vld [vmem:[%s240_s9] sm:$0xff] (%p2833_p9)  }
  0x29   : > { %v260_v5 = vld [vmem:[%s240_s9 + $0x20] sm:$0xff] (%p2833_p9)   ;;  %257 = vst [vmem:[%s235_s10] sm:$0xff] (%p2833_p9), %v256_v4  }
  0x2a   : > { %v264_v6 = vld [vmem:[%s240_s9 + $0x40] sm:$0xff] (%p2833_p9)   ;;  %261 = vst [vmem:[%s235_s10 + $0x8] sm:$0xff] (%p2833_p9), %v260_v5  }
  0x2b   : > { %265 = vst [vmem:[%s235_s10 + $0x10] sm:$0xff] (%p2833_p9), %v264_v6   ;;  %v268_v7 = vld [vmem:[%s240_s9 + $0x60] sm:$0xff] (%p2833_p9)  }
  0x2c   : > { %269 = vst [vmem:[%s235_s10 + $0x18] sm:$0xff] %v268_v7  }
  0x2d PF: > { %310 = sbr.rel (!%p2833_p9) target bundleno = 53 (0x35), region = 102  ;;  %s312_s11 = sand.u32 (%p2833_p9), 1, %s2697_s13  }
  0x2e   : > { %s2326_s21 = sshll.u32 (%p2833_p9), %s2827_s27, 3  ;;  %s2259_s24 = sshll.u32 (%p2833_p9), %s312_s11, 5 }
  0x2f   : > { %s319_s28 = scalar_lea.vmem (%p2833_p9), %s3328_s2, %s2326_s21  ;;  %s314_s30 = scalar_lea.vmem (%p2833_p9), [#allocation7], %s2259_s24 }
  0x30   : > { %v335_v8 = vld [vmem:[%s319_s28] sm:$0xff] (%p2833_p9)  }
  0x31   : > { %v339_v9 = vld [vmem:[%s319_s28 + $0x20] sm:$0xff] (%p2833_p9)   ;;  %336 = vst [vmem:[%s314_s30] sm:$0xff] (%p2833_p9), %v335_v8  }
  0x32   : > { %v343_v10 = vld [vmem:[%s319_s28 + $0x40] sm:$0xff] (%p2833_p9)   ;;  %340 = vst [vmem:[%s314_s30 + $0x8] sm:$0xff] (%p2833_p9), %v339_v9  }
  0x33   : > { %344 = vst [vmem:[%s314_s30 + $0x10] sm:$0xff] (%p2833_p9), %v343_v10   ;;  %v347_v11 = vld [vmem:[%s319_s28 + $0x60] sm:$0xff] (%p2833_p9)  }
  0x34   : > { %348 = vst [vmem:[%s314_s30 + $0x18] sm:$0xff] %v347_v11  }
  0x35 PF: > { %p2262_p0 = scmp.ge.s32.totalorder %s2725_s20, 1  ;;  %p388_p1 = scmp.lt.s32.totalorder %s2725_s20, 17 }
  0x37   : > { %p389_p2 = pnand %p2262_p0, %p388_p1 }
  0x38   : > { %s395_s27 = sand.u32 (!%p389_p2), 1, %s2701_s14   ;;  %s402_s29 = sand.u32 (!%p389_p2), 1, %s2693_s12  }
  0x39   : > { %392 = sbr.rel (%p389_p2) target bundleno = 1753 (0x6d9), region = 143  ;;  %s2263_s5 = sshll.u32 (!%p389_p2), %s395_s27, 5 }
  0x3a   : > { %s2264_s8 = sshll.u32 (!%p389_p2), %s402_s29, 5  ;;  %s2879_s9 = scalar_lea.vmem (!%p389_p2), [#allocation5], %s2263_s5 }
  0x3b   : > { %s2881_s10 = scalar_lea.vmem (!%p389_p2), [#allocation6], %s2264_s8  ;;  %s2883_s11 = scalar_lea.vmem (!%p389_p2), [#allocation7], %s2264_s8 }
  0x3c   : > { %s2885_s21 = scalar_lea.vmem (!%p389_p2), [#allocation8], %s2263_s5  ;;  %p2267_p3 = scmp.ne.s32.totalorder (!%p389_p2), %s2709_s16, 0 }
  0x40   : > { %451 = sbr.rel (%p2267_p3) target bundleno = 77 (0x4d), region = 159  ;;  %vm452_vm0 = vcmask (!%p2267_p3), 7168   ;;  %vm469_vm1 = vcmask (!%p2267_p3), 261120   ;;  %v2727_v12 = vmov (!%p2267_p3), -inf   ;;  %v2728_v13 = vmov (!%p2267_p3), 0.0  }
  0x41   : > { %453 = vst.msk [vmem:[#allocation2] sm:$0xff] (!%p2267_p3), %vm452_vm0, %v2727_v12  ;;  %454 = vst.msk [vmem:[#allocation2 + $0x8] sm:$0xff] (!%p2267_p3), %vm452_vm0, %v2727_v12 }
  0x42   : > { %455 = vst.msk [vmem:[#allocation2 + $0x10] sm:$0xff] (!%p2267_p3), %vm452_vm0, %v2727_v12  ;;  %456 = vst.msk [vmem:[#allocation2 + $0x18] sm:$0xff] (!%p2267_p3), %vm452_vm0, %v2727_v12 }
  0x43   : > { %457 = vst.msk [vmem:[#allocation2 + $0x20] sm:$0xff] (!%p2267_p3), %vm452_vm0, %v2727_v12  ;;  %458 = vst.msk [vmem:[#allocation2 + $0x28] sm:$0xff] (!%p2267_p3), %vm452_vm0, %v2727_v12 }
  0x44   : > { %459 = vst.msk [vmem:[#allocation2 + $0x30] sm:$0xff] (!%p2267_p3), %vm452_vm0, %v2727_v12  ;;  %460 = vst.msk [vmem:[#allocation2 + $0x38] sm:$0xff] (!%p2267_p3), %vm452_vm0, %v2727_v12 }
  0x45   : > { %461 = vst.msk [vmem:[#allocation3] sm:$0xff] (!%p2267_p3), %vm452_vm0, %v2728_v13  ;;  %462 = vst.msk [vmem:[#allocation3 + $0x8] sm:$0xff] (!%p2267_p3), %vm452_vm0, %v2728_v13 }
  0x46   : > { %463 = vst.msk [vmem:[#allocation3 + $0x10] sm:$0xff] (!%p2267_p3), %vm452_vm0, %v2728_v13  ;;  %464 = vst.msk [vmem:[#allocation3 + $0x18] sm:$0xff] (!%p2267_p3), %vm452_vm0, %v2728_v13 }
  0x47   : > { %465 = vst.msk [vmem:[#allocation3 + $0x20] sm:$0xff] %vm452_vm0, %v2728_v13  ;;  %466 = vst.msk [vmem:[#allocation3 + $0x28] sm:$0xff] %vm452_vm0, %v2728_v13 }
  0x48   : > { %467 = vst.msk [vmem:[#allocation3 + $0x30] sm:$0xff] %vm452_vm0, %v2728_v13  ;;  %468 = vst.msk [vmem:[#allocation3 + $0x38] sm:$0xff] %vm452_vm0, %v2728_v13 }
  0x49   : > { %470 = vst.msk [vmem:[#allocation4] sm:$0xff] %vm469_vm1, %v2728_v13  ;;  %471 = vst.msk [vmem:[#allocation4 + $0x8] sm:$0xff] %vm469_vm1, %v2728_v13 }
  0x4a   : > { %472 = vst.msk [vmem:[#allocation4 + $0x10] sm:$0xff] %vm469_vm1, %v2728_v13  ;;  %473 = vst.msk [vmem:[#allocation4 + $0x18] sm:$0xff] %vm469_vm1, %v2728_v13 }
  0x4b   : > { %474 = vst.msk [vmem:[#allocation4 + $0x20] sm:$0xff] %vm469_vm1, %v2728_v13  ;;  %475 = vst.msk [vmem:[#allocation4 + $0x28] sm:$0xff] %vm469_vm1, %v2728_v13 }
  0x4c   : > { %476 = vst.msk [vmem:[#allocation4 + $0x30] sm:$0xff] %vm469_vm1, %v2728_v13  ;;  %477 = vst.msk [vmem:[#allocation4 + $0x38] sm:$0xff] %vm469_vm1, %v2728_v13 }
  0x4d PF: > { %p2268_p4 = scmp.ge.s32.totalorder %s2709_s16, %s2713_s17 }
  0x4e   : > { %v2547_v14 = vld [vmem:[%s2881_s10] sm:$0xff] (!%p2268_p4)   ;;  %v2729_v15 = vmov (!%p2268_p4), 0.0   ;;  %vm508_vm2 = vcmask (!%p2268_p4), 261120   ;;  %v2548_v16 = vld [vmem:[%s2881_s10 + $0x8] sm:$0xff] (!%p2268_p4)   ;;  %vm2730_vm3 = vmmov (!%p2268_p4), 0   ;;  %v2551_v20 = vld [vmem:[%s2881_s10 + $0x10] sm:$0xff] (!%p2268_p4)  }
  0x4f   : > { %481 = sbr.rel (%p2268_p4) target bundleno = 831 (0x33f), region = 163  ;;  %2368 = vmatprep.subr.bf16.mxu0 (!%p2268_p4), %v2729_v15  ;;  %2374 = vmatprep.subr.bf16.mxu1 (!%p2268_p4), %v2729_v15  ;;  %v513_v17 = vsel (!%p2268_p4), %vm508_vm2, %v2547_v14, 0  ;;  %v570_v18 = vsel (!%p2268_p4), %vm508_vm2, %v2548_v16, 0  ;;  %v2549_v19 = vld [vmem:[%s2879_s9] sm:$0xff] (!%p2268_p4)   ;;  %v2552_v21 = vld [vmem:[%s2881_s10 + $0x18] sm:$0xff] (!%p2268_p4)   ;;  %v2550_v22 = vld [vmem:[%s2879_s9 + $0x8] sm:$0xff] (!%p2268_p4)  }
  0x50   : > { %2369 = vmatpush3.bf16.xpose.msra.mxu0 (!%p2268_p4), %v513_v17  ;;  %2370 = vmatprep.mubr.msk.bf16.mxu0 (!%p2268_p4), %vm2730_vm3, %v2729_v15  ;;  %v627_v23 = vsel (!%p2268_p4), %vm508_vm2, %v2551_v20, 0  ;;  %v684_v24 = vsel (!%p2268_p4), %vm508_vm2, %v2552_v21, 0  ;;  %v2553_v25 = vld [vmem:[%s2879_s9 + $0x10] sm:$0xff] (!%p2268_p4)   ;;  %v2554_v26 = vld [vmem:[%s2879_s9 + $0x18] sm:$0xff] (!%p2268_p4)   ;;  %vm735_vm4 = vcmask (!%p2268_p4), 130048   ;;  %v2731_v51 = vmov (!%p2268_p4), 0  }
  0x51   : > { %2375 = vmatpush3.bf16.xpose.msra.mxu1 (!%p2268_p4), %v570_v18  ;;  %2376 = vmatprep.mubr.msk.bf16.mxu1 (!%p2268_p4), %vm2730_vm3, %v2729_v15  ;;  %v727_v52 = vld [vmem:[#allocation2] sm:$0xff] (!%p2268_p4)  ;;  %v729_v53 = vld [vmem:[#allocation2 + $0x10] sm:$0xff] (!%p2268_p4)  ;;  %vm904_vm5 = vcmask (!%p2268_p4), 7168   ;;  %v728_v58 = vld [vmem:[#allocation2 + $0x8] sm:$0xff] (!%p2268_p4) }
  0x52   : > { %2380 = vmatprep.subr.bf16.mxu0 (!%p2268_p4), %v2729_v15  ;;  %2386 = vmatprep.subr.bf16.mxu1 (!%p2268_p4), %v2729_v15  ;;  %v730_v60 = vld [vmem:[#allocation2 + $0x18] sm:$0xff] (!%p2268_p4)  ;;  %v731_v2 = vld [vmem:[#allocation2 + $0x20] sm:$0xff] (!%p2268_p4)  ;;  %v732_v4 = vld [vmem:[#allocation2 + $0x28] sm:$0xff] (!%p2268_p4) }
  0x53   : > { %2546 = vset.pattern.permute.xlu1 (!%p2268_p4), %v2731_v51  ;;  %2545 = vset.pattern.permute.xlu0 (!%p2268_p4), %v2731_v51  ;;  %v2984_v9 = vld [vmem:[#allocation2 + $0x30] sm:$0xff] (!%p2268_p4)  ;;  %v2987_v12 = vld [vmem:[#allocation2 + $0x38] sm:$0xff] (!%p2268_p4) }
  0x57   : > { %2371 = vmatmul.mubr.msk.bf16.vlgmr.msra.gmra.mrb[0].mxu0 %vm508_vm2, %v2549_v19 }
  0x58   : > { %2377 = vmatmul.mubr.msk.bf16.vlgmr.msra.gmra.mrb[0].mxu1 %vm508_vm2, %v2550_v22  ;;  %2381 = vmatpush3.bf16.xpose.msra.mxu0 %v627_v23 }
  0x59   : > { %2387 = vmatpush3.bf16.xpose.msra.mxu1 %v684_v24  ;;  %2382 = vmatprep.mubr.msk.bf16.mxu0 %vm2730_vm3, %v2729_v15 }
  0x5a   : > { %2388 = vmatprep.mubr.msk.bf16.mxu1 %vm2730_vm3, %v2729_v15  ;;  %2392 = vmatprep.subr.bf16.mxu0 %v2729_v15 }
  0x5b   : > { %2398 = vmatprep.subr.bf16.mxu1 %v2729_v15 }
  0x5f   : > { %2383 = vmatmul.mubr.msk.bf16.vlgmr.msra.gmra.mrb[4].mxu0 %vm508_vm2, %v2553_v25  ;;  %v2555_v25 = vld [vmem:[%s2883_s11] sm:$0xff]  }
  0x60   : > { %2389 = vmatmul.mubr.msk.bf16.vlgmr.msra.gmra.mrb[4].mxu1 %vm508_vm2, %v2554_v26  ;;  %2394 = vmatprep.mubr.msk.bf16.mxu0 %vm2730_vm3, %v2729_v15 }
  0x61   : > { %2400 = vmatprep.mubr.msk.bf16.mxu1 %vm2730_vm3, %v2729_v15  ;;  %2393 = vmatpush3.bf16.msra.mxu0 %v2555_v25 }
  0x62   : > { %2404 = vmatprep.subr.bf16.mxu0 %v2729_v15 }
 0x12a   : > { %v2948_v27 = vpop.f32.mrb[0].mxu0 }
 0x12b   : > { %v2950_v28 = vpop.f32.mrb[0].mxu1  ;;  %v2372_v29 = vpop.f32.mrb[1].mxu0  ;;  %v736_v30 = vsel %vm735_vm4, %v2948_v27, -inf }
 0x12c   : > { %v2378_v31 = vpop.f32.mrb[1].mxu1  ;;  %v742_v32 = vsel %vm735_vm4, %v2950_v28, -inf  ;;  %737 = vmax.xlane.f32.xlu0 %v736_v30  ;;  %v2956_v33 = vpop.f32.mrb[2].mxu0 }
 0x12d   : > { %743 = vmax.xlane.f32.xlu1 %v742_v32  ;;  %v2958_v34 = vpop.f32.mrb[2].mxu1  ;;  %v2373_v35 = vpop.f32.mrb[3].mxu0  ;;  %v739_v37 = vsel %vm735_vm4, %v2956_v33, -inf  ;;  %v2556_v31 = vld [vmem:[%s2883_s11 + $0x8] sm:$0xff]  }
 0x12e   : > { %v2379_v36 = vpop.f32.mrb[3].mxu1  ;;  %v745_v38 = vsel %vm735_vm4, %v2958_v34, -inf  ;;  %2399 = vmatpush3.bf16.msra.mxu1 %v2556_v31 }
 0x12f   : > { %2410 = vmatprep.subr.bf16.mxu1 %v2729_v15 }
 0x130   : > { %740 = vmax.xlane.f32.xlu0 %v739_v37 }
 0x131   : > { %746 = vmax.xlane.f32.xlu1 %v745_v38 }
 0x132   : > { %v2964_v39 = vpop.f32.mrb[4].mxu0 }
 0x133   : > { %v2384_v40 = vpop.f32.mrb[5].mxu0  ;;  %v2966_v41 = vpop.f32.mrb[4].mxu1  ;;  %v748_v42 = vsel %vm735_vm4, %v2964_v39, -inf }
 0x134   : > { %v2970_v43 = vpop.f32.mrb[6].mxu0  ;;  %v2390_v44 = vpop.f32.mrb[5].mxu1  ;;  %749 = vmax.xlane.f32.xlu0 %v748_v42  ;;  %v754_v48 = vsel %vm735_vm4, %v2966_v41, -inf }
 0x135   : > { %v751_v45 = vsel %vm735_vm4, %v2970_v43, -inf  ;;  %v2385_v46 = vpop.f32.mrb[7].mxu0  ;;  %v2974_v47 = vpop.f32.mrb[6].mxu1 }
 0x136   : > { %752 = vmax.xlane.f32.xlu1 %v751_v45  ;;  %v2391_v49 = vpop.f32.mrb[7].mxu1  ;;  %v757_v50 = vsel %vm735_vm4, %v2974_v47, -inf }
 0x138   : > { %755 = vmax.xlane.f32.xlu0 %v754_v48 }
 0x13a   : > { %758 = vmax.xlane.f32.xlu1 %v757_v50 }
 0x1b9   : > { %v738_v54 = vpop.xlane.xlu0 %737 }
 0x1ba   : > { %v744_v55 = vpop.xlane.xlu1 %743  ;;  %v760_v56 = vmax.f32 %v727_v52, %v738_v54 }
 0x1bb   : > { %v762_v57 = vmax.f32 %v729_v53, %v744_v55 }
 0x1bc   : > { %v768_v59 = vsub.f32 %v727_v52, %v760_v56  ;;  %1197 = vst.msk [vmem:[#allocation2] sm:$0xff] %vm904_vm5, %v760_v56  ;;  %794 = vperm.xlu0 %2545, %v760_v56  }
 0x1bd   : > { %1199 = vst.msk [vmem:[#allocation2 + $0x10] sm:$0xff] %vm904_vm5, %v762_v57  ;;  %804 = vperm.xlu1 %2546, %v762_v57   ;;  %v741_v61 = vpop.xlane.xlu0 %740  ;;  %v770_v13 = vsub.f32 %v729_v53, %v762_v57 }
 0x1be   : > { %v776_v62 = vmul.f32 1.442695, %v768_v59  ;;  %v747_v63 = vpop.xlane.xlu1 %746  ;;  %v761_v0 = vmax.f32 %v728_v58, %v741_v61 }
 0x1bf   : > { %v763_v1 = vmax.f32 %v730_v60, %v747_v63  ;;  %v780_v22 = vmul.f32 1.442695, %v770_v13 }
 0x1c0   : > { %2559 = vpow2.f32 %v776_v62  ;;  %1198 = vst.msk [vmem:[#allocation2 + $0x8] sm:$0xff] %vm904_vm5, %v761_v0  ;;  %v769_v23 = vsub.f32 %v728_v58, %v761_v0  ;;  %v2557_v62 = vld [vmem:[%s2883_s11 + $0x10] sm:$0xff]  }
 0x1c1   : > { %v771_v3 = vsub.f32 %v730_v60, %v763_v1  ;;  %1200 = vst.msk [vmem:[#allocation2 + $0x18] sm:$0xff] %vm904_vm5, %v763_v1  ;;  %799 = vperm.xlu1 %2546, %v761_v0   ;;  %v750_v5 = vpop.xlane.xlu0 %749 }
 0x1c2   : > { %v764_v6 = vmax.f32 %v731_v2, %v750_v5  ;;  %v778_v26 = vmul.f32 1.442695, %v769_v23 }
 0x1c3   : > { %v782_v7 = vmul.f32 1.442695, %v771_v3  ;;  %v753_v8 = vpop.xlane.xlu1 %752 }
 0x1c4   : > { %v765_v10 = vmax.f32 %v732_v4, %v753_v8  ;;  %1201 = vst.msk [vmem:[#allocation2 + $0x20] sm:$0xff] %vm904_vm5, %v764_v6  ;;  %v772_v29 = vsub.f32 %v731_v2, %v764_v6 }
 0x1c5   : > { %2561 = vpow2.f32 %v782_v7  ;;  %809 = vperm.xlu1 %2546, %v763_v1   ;;  %v756_v11 = vpop.xlane.xlu0 %755 }
 0x1c6   : > { %v773_v14 = vsub.f32 %v732_v4, %v765_v10  ;;  %1202 = vst.msk [vmem:[#allocation2 + $0x28] sm:$0xff] %vm904_vm5, %v765_v10  ;;  %v2991_v16 = vmax.f32 %v2984_v9, %v756_v11  ;;  %v784_v32 = vmul.f32 1.442695, %v772_v29  ;;  %v2558_v4 = vld [vmem:[%s2883_s11 + $0x18] sm:$0xff]  }
 0x1c7   : > { %v759_v17 = vpop.xlane.xlu1 %758 }
 0x1c8   : > { %v786_v18 = vmul.f32 1.442695, %v773_v14  ;;  %v774_v19 = vsub.f32 %v2984_v9, %v2991_v16  ;;  %1203 = vst.msk [vmem:[#allocation2 + $0x30] sm:$0xff] %vm904_vm5, %v2991_v16  ;;  %v2998_v20 = vmax.f32 %v2987_v12, %v759_v17 }
 0x1c9   : > { %814 = vperm.xlu1 %2546, %v764_v6  }
 0x1ca   : > { %v3000_v21 = vpop.eup %2559  ;;  %2563 = vpow2.f32 %v786_v18  ;;  %v775_v24 = vsub.f32 %v2987_v12, %v2998_v20  ;;  %1204 = vst.msk [vmem:[#allocation2 + $0x38] sm:$0xff] %vm904_vm5, %v2998_v20  ;;  %v788_v25 = vmul.f32 1.442695, %v774_v19 }
 0x1cb   : > { %923 = vperm.xlu0 %2545, %v3000_v21   ;;  %2565 = vpow2.f32 %v780_v22 }
 0x1cc   : > { %2567 = vpow2.f32 %v778_v26 }
 0x1cd   : > { %824 = vperm.xlu1 %2546, %v2991_v16   ;;  %2569 = vpow2.f32 %v784_v32 }
 0x1cf   : > { %v3009_v30 = vpop.eup %2561 }
 0x1d0   : > { %938 = vperm.xlu0 %2545, %v3009_v30  }
 0x1d1   : > { %819 = vperm.xlu1 %2546, %v765_v10  }
 0x1d4   : > { %v3014_v35 = vpop.eup %2563 }
 0x1d5   : > { %829 = vperm.xlu1 %2546, %v2998_v20   ;;  %948 = vperm.xlu0 %2545, %v3014_v35   ;;  %v3019_v36 = vpop.eup %2565 }
 0x1d6   : > { %v3022_v37 = vpop.eup %2567 }
 0x1d7   : > { %v3025_v38 = vpop.eup %2569 }
 0x1d9   : > { %933 = vperm.xlu1 %2546, %v3019_v36  }
 0x1dd   : > { %928 = vperm.xlu1 %2546, %v3022_v37  }
 0x1e1   : > { %943 = vperm.xlu1 %2546, %v3025_v38  }
 0x23b   : > { %v795_v40 = vpop.permute.xlu0 %794 }
 0x23c   : > { %v832_v42 = vsub.f32 %v2948_v27, %v795_v40  ;;  %v805_v44 = vpop.permute.xlu1 %804  ;;  %v856_v40 = vld [vmem:[#allocation3] sm:$0xff] }
 0x23d   : > { %v834_v45 = vsub.f32 %v2950_v28, %v805_v44  ;;  %v858_v44 = vld [vmem:[#allocation3 + $0x10] sm:$0xff] }
 0x23e   : > { %v840_v46 = vmul.f32 1.442695, %v832_v42  ;;  %v866_v9 = vmul.f32 %v3019_v36, %v858_v44  ;;  %v860_v36 = vld [vmem:[#allocation3 + $0x20] sm:$0xff] }
 0x23f   : > { %v844_v48 = vmul.f32 1.442695, %v834_v45  ;;  %v864_v45 = vmul.f32 %v3000_v21, %v856_v40 }
 0x240   : > { %2571 = vpow2.f32 %v840_v46  ;;  %v800_v49 = vpop.permute.xlu1 %799 }
 0x241   : > { %2573 = vpow2.f32 %v844_v48  ;;  %v833_v50 = vsub.f32 %v2956_v33, %v800_v49  ;;  %v857_v48 = vld [vmem:[#allocation3 + $0x8] sm:$0xff] }
 0x243   : > { %v842_v51 = vmul.f32 1.442695, %v833_v50  ;;  %v865_v50 = vmul.f32 %v3022_v37, %v857_v48 }
 0x244   : > { %v810_v52 = vpop.permute.xlu1 %809 }
 0x245   : > { %2575 = vpow2.f32 %v842_v51  ;;  %v835_v53 = vsub.f32 %v2958_v34, %v810_v52  ;;  %v859_v52 = vld [vmem:[#allocation3 + $0x18] sm:$0xff] }
 0x246   : > { %v867_v21 = vmul.f32 %v3009_v30, %v859_v52 }
 0x247   : > { %v846_v54 = vmul.f32 1.442695, %v835_v53 }
 0x248   : > { %v815_v55 = vpop.permute.xlu1 %814 }
 0x249   : > { %2577 = vpow2.f32 %v846_v54  ;;  %v836_v27 = vsub.f32 %v2964_v39, %v815_v55 }
 0x24a   : > { %v2572_v56 = vpop.eup %2571  ;;  %v924_v32 = vpop.permute.xlu0 %923 }
 0x24b   : > { %v2574_v28 = vpop.eup %2573  ;;  %v848_v57 = vmul.f32 1.442695, %v836_v27  ;;  %v872_v58 = vsel %vm735_vm4, %v2572_v56, 0.0  ;;  %v868_v27 = vmul.f32 %v3025_v38, %v860_v36 }
 0x24c   : > { %v825_v59 = vpop.permute.xlu1 %824  ;;  %873 = vadd.xlane.f32.xlu1 %v872_v58  ;;  %v878_v33 = vsel %vm735_vm4, %v2574_v28, 0.0 }
 0x24d   : > { %2579 = vpow2.f32 %v848_v57  ;;  %v838_v60 = vsub.f32 %v2966_v41, %v825_v59  ;;  %879 = vadd.xlane.f32.xlu0 %v878_v33  ;;  %v861_v59 = vld [vmem:[#allocation3 + $0x28] sm:$0xff] }
 0x24e   : > { %v869_v30 = vmul.f32 %v3014_v35, %v861_v59 }
 0x24f   : > { %v2576_v34 = vpop.eup %2575  ;;  %v852_v61 = vmul.f32 1.442695, %v838_v60  ;;  %v939_v20 = vpop.permute.xlu0 %938 }
 0x250   : > { %v820_v63 = vpop.permute.xlu1 %819  ;;  %v875_v39 = vsel %vm735_vm4, %v2576_v34, 0.0  ;;  %v969_v0 = vpack.c.bf16 %v2576_v34, %v2572_v56  ;;  %v863_v34 = vld [vmem:[#allocation3 + $0x38] sm:$0xff] }
 0x251   : > { %2581 = vpow2.f32 %v852_v61  ;;  %v837_v1 = vsub.f32 %v2970_v43, %v820_v63  ;;  %876 = vadd.xlane.f32.xlu0 %v875_v39  ;;  %v913_v39 = vld [vmem:[#allocation4] sm:$0xff] }
 0x252   : > { %2395 = vmatmul.mubr.msk.bf16.vlgmr.msra.gmra.mrb[8].mxu0 %vm735_vm4, %v969_v0  ;;  %v914_v0 = vld [vmem:[#allocation4 + $0x8] sm:$0xff] }
 0x253   : > { %v2578_v2 = vpop.eup %2577  ;;  %v850_v3 = vmul.f32 1.442695, %v837_v1  ;;  %2405 = vmatpush3.bf16.msra.mxu0 %v2557_v62  ;;  %2406 = vmatprep.mubr.msk.bf16.mxu0 %vm2730_vm3, %v2729_v15  ;;  %v961_v1 = vmul.f32 %v924_v32, %v913_v39 }
 0x254   : > { %v830_v41 = vpop.permute.xlu1 %829  ;;  %v881_v5 = vsel %vm735_vm4, %v2578_v2, 0.0  ;;  %v970_v6 = vpack.c.bf16 %v2578_v2, %v2574_v28  ;;  %v3062_v42 = vpop.permute.xlu0 %948  ;;  %v862_v28 = vld [vmem:[#allocation3 + $0x30] sm:$0xff] }
 0x255   : > { %2583 = vpow2.f32 %v850_v3  ;;  %v839_v7 = vsub.f32 %v2974_v47, %v830_v41  ;;  %882 = vadd.xlane.f32.xlu1 %v881_v5  ;;  %v915_v2 = vld [vmem:[#allocation4 + $0x10] sm:$0xff] }
 0x256   : > { %2401 = vmatmul.mubr.msk.bf16.vlgmr.msra.gmra.mrb[8].mxu1 %vm735_vm4, %v970_v6  ;;  %v916_v6 = vld [vmem:[#allocation4 + $0x18] sm:$0xff] }
 0x257   : > { %v2580_v43 = vpop.eup %2579  ;;  %v854_v8 = vmul.f32 1.442695, %v839_v7  ;;  %2411 = vmatpush3.bf16.msra.mxu1 %v2558_v4  ;;  %2412 = vmatprep.mubr.msk.bf16.mxu1 %vm2730_vm3, %v2729_v15  ;;  %v790_v15 = vmul.f32 1.442695, %v775_v24 }
 0x258   : > { %v884_v10 = vsel %vm735_vm4, %v2580_v43, 0.0  ;;  %v934_v31 = vpop.permute.xlu1 %933 }
 0x259   : > { %2585 = vpow2.f32 %v854_v8  ;;  %885 = vadd.xlane.f32.xlu0 %v884_v10  ;;  %v963_v7 = vmul.f32 %v934_v31, %v915_v2 }
 0x25a   : > { %2587 = vpow2.f32 %v790_v15  ;;  %v917_v15 = vld [vmem:[#allocation4 + $0x20] sm:$0xff] }
 0x25b   : > { %v2582_v11 = vpop.eup %2581  ;;  %2589 = vpow2.f32 %v788_v25  ;;  %v919_v25 = vld [vmem:[#allocation4 + $0x30] sm:$0xff] }
 0x25c   : > { %v890_v13 = vsel %vm735_vm4, %v2582_v11, 0.0  ;;  %v929_v12 = vpop.permute.xlu1 %928 }
 0x25d   : > { %891 = vadd.xlane.f32.xlu0 %v890_v13  ;;  %v962_v4 = vmul.f32 %v929_v12, %v914_v0 }
 0x25f   : > { %v2584_v14 = vpop.eup %2583 }
 0x260   : > { %v887_v47 = vsel %vm735_vm4, %v2584_v14, 0.0  ;;  %v971_v17 = vpack.c.bf16 %v2584_v14, %v2580_v43  ;;  %v3060_v24 = vpop.permute.xlu1 %943 }
 0x261   : > { %888 = vadd.xlane.f32.xlu1 %v887_v47 }
 0x262   : > { %2407 = vmatmul.mubr.msk.bf16.vlgmr.msra.gmra.mrb[12].mxu0 %vm735_vm4, %v971_v17 }
 0x263   : > { %v2586_v18 = vpop.eup %2585 }
 0x264   : > { %v893_v22 = vsel %vm735_vm4, %v2586_v18, 0.0  ;;  %v972_v23 = vpack.c.bf16 %v2586_v18, %v2582_v11  ;;  %v2588_v26 = vpop.eup %2587  ;;  %v964_v11 = vmul.f32 %v939_v20, %v916_v6  ;;  %v920_v20 = vld [vmem:[#allocation4 + $0x38] sm:$0xff] }
 0x265   : > { %894 = vadd.xlane.f32.xlu1 %v893_v22  ;;  %v2590_v29 = vpop.eup %2589  ;;  %v871_v62 = vmul.f32 %v2588_v26, %v863_v34  ;;  %v918_v22 = vld [vmem:[#allocation4 + $0x28] sm:$0xff] }
 0x266   : > { %2413 = vmatmul.mubr.msk.bf16.vlgmr.msra.gmra.mrb[12].mxu1 %vm735_vm4, %v972_v23  ;;  %v870_v37 = vmul.f32 %v2590_v29, %v862_v28  ;;  %v965_v23 = vmul.f32 %v3060_v24, %v917_v15  ;;  %v966_v31 = vmul.f32 %v3062_v42, %v918_v22 }
 0x273   : > { %958 = vperm.xlu0 %2545, %v2588_v26  }
 0x276   : > { %953 = vperm.xlu1 %2546, %v2590_v29  }
 0x2d9   : > { %v874_v16 = vpop.xlane.xlu1 %873 }
 0x2da   : > { %v880_v19 = vpop.xlane.xlu0 %879  ;;  %v896_v46 = vadd.f32 %v874_v16, %v864_v45 }
 0x2db   : > { %v898_v49 = vadd.f32 %v880_v19, %v866_v9 }
 0x2dc   : > { %905 = vst.msk [vmem:[#allocation3] sm:$0xff] %vm904_vm5, %v896_v46 }
 0x2dd   : > { %907 = vst.msk [vmem:[#allocation3 + $0x10] sm:$0xff] %vm904_vm5, %v898_v49 }
 0x2de   : > { %v877_v51 = vpop.xlane.xlu0 %876 }
 0x2df   : > { %v897_v53 = vadd.f32 %v877_v51, %v865_v50 }
 0x2e1   : > { %906 = vst.msk [vmem:[#allocation3 + $0x8] sm:$0xff] %vm904_vm5, %v897_v53 }
 0x2e2   : > { %v883_v54 = vpop.xlane.xlu1 %882 }
 0x2e3   : > { %v899_v55 = vadd.f32 %v883_v54, %v867_v21 }
 0x2e5   : > { %908 = vst.msk [vmem:[#allocation3 + $0x18] sm:$0xff] %vm904_vm5, %v899_v55 }
 0x2e6   : > { %v886_v56 = vpop.xlane.xlu0 %885 }
 0x2e7   : > { %v900_v57 = vadd.f32 %v886_v56, %v868_v27 }
 0x2e9   : > { %909 = vst.msk [vmem:[#allocation3 + $0x20] sm:$0xff] %vm904_vm5, %v900_v57 }
 0x2ea   : > { %v892_v58 = vpop.xlane.xlu0 %891 }
 0x2eb   : > { %v902_v33 = vadd.f32 %v892_v58, %v870_v37 }
 0x2ed   : > { %911 = vst.msk [vmem:[#allocation3 + $0x30] sm:$0xff] %vm904_vm5, %v902_v33 }
 0x2ee   : > { %v889_v60 = vpop.xlane.xlu1 %888 }
 0x2ef   : > { %v901_v61 = vadd.f32 %v889_v60, %v869_v30 }
 0x2f1   : > { %910 = vst.msk [vmem:[#allocation3 + $0x28] sm:$0xff] %vm904_vm5, %v901_v61 }
 0x2f2   : > { %v895_v38 = vpop.xlane.xlu1 %894  ;;  %v959_v40 = vpop.permute.xlu0 %958 }
 0x2f3   : > { %v903_v63 = vadd.f32 %v895_v38, %v871_v62  ;;  %v968_v46 = vmul.f32 %v959_v40, %v920_v20 }
 0x2f5   : > { %912 = vst.msk [vmem:[#allocation3 + $0x38] sm:$0xff] %vm904_vm5, %v903_v63 }
 0x2f6   : > { %v954_v26 = vpop.permute.xlu1 %953 }
 0x2f7   : > { %v967_v45 = vmul.f32 %v954_v26, %v919_v25 }
 0x325   : > { %v1024_v3 = vpop.f32.mrb[8].mxu0 }
 0x326   : > { %v1181_v41 = vadd.f32 %v1024_v3, %v961_v1  ;;  %v2396_v5 = vpop.f32.mrb[9].mxu0 }
 0x327   : > { %v1027_v35 = vpop.f32.mrb[10].mxu0 }
 0x328   : > { %1189 = vst.msk [vmem:[#allocation4] sm:$0xff] %vm508_vm2, %v1181_v41  ;;  %v1182_v43 = vadd.f32 %v1027_v35, %v962_v4  ;;  %v2397_v8 = vpop.f32.mrb[11].mxu0 }
 0x329   : > { %v1074_v10 = vpop.f32.mrb[8].mxu1 }
 0x32a   : > { %1190 = vst.msk [vmem:[#allocation4 + $0x8] sm:$0xff] %vm508_vm2, %v1182_v43  ;;  %v1183_v13 = vadd.f32 %v1074_v10, %v963_v7  ;;  %v2402_v14 = vpop.f32.mrb[9].mxu1 }
 0x32b   : > { %v1077_v47 = vpop.f32.mrb[10].mxu1 }
 0x32c   : > { %1191 = vst.msk [vmem:[#allocation4 + $0x10] sm:$0xff] %vm508_vm2, %v1183_v13  ;;  %v1184_v17 = vadd.f32 %v1077_v47, %v964_v11  ;;  %v2403_v18 = vpop.f32.mrb[11].mxu1 }
 0x32e   : > { %1192 = vst.msk [vmem:[#allocation4 + $0x18] sm:$0xff] %vm508_vm2, %v1184_v17 }
 0x335   : > { %v1124_v29 = vpop.f32.mrb[12].mxu0 }
 0x336   : > { %v1185_v32 = vadd.f32 %v1124_v29, %v965_v23  ;;  %v2408_v12 = vpop.f32.mrb[13].mxu0 }
 0x337   : > { %v1127_v44 = vpop.f32.mrb[14].mxu0 }
 0x338   : > { %1193 = vst.msk [vmem:[#allocation4 + $0x20] sm:$0xff] %vm508_vm2, %v1185_v32  ;;  %v1186_v9 = vadd.f32 %v1127_v44, %v966_v31  ;;  %v2409_v16 = vpop.f32.mrb[15].mxu0 }
 0x339   : > { %v1174_v19 = vpop.f32.mrb[12].mxu1 }
 0x33a   : > { %1194 = vst.msk [vmem:[#allocation4 + $0x28] sm:$0xff] %vm508_vm2, %v1186_v9  ;;  %v1187_v24 = vadd.f32 %v1174_v19, %v967_v45  ;;  %v2414_v48 = vpop.f32.mrb[13].mxu1 }
 0x33b   : > { %v1177_v49 = vpop.f32.mrb[14].mxu1 }
 0x33c   : > { %1195 = vst.msk [vmem:[#allocation4 + $0x30] sm:$0xff] %vm508_vm2, %v1187_v24  ;;  %v1188_v42 = vadd.f32 %v1177_v49, %v968_v46  ;;  %v2415_v50 = vpop.f32.mrb[15].mxu1 }
 0x33e   : > { %1196 = vst.msk [vmem:[#allocation4 + $0x38] sm:$0xff] %vm508_vm2, %v1188_v42 }
 0x33f PF: > { %p2289_p5 = scmp.ne.s32.totalorder %s2709_s16, %s2713_s17 }
 0x340   : > { %v2593_v51 = vld [vmem:[%s2881_s10] sm:$0xff] (!%p2289_p5)   ;;  %v2732_v52 = vmov (!%p2289_p5), 0.0   ;;  %vm1235_vm6 = vcmask (!%p2289_p5), 261120   ;;  %v2594_v53 = vld [vmem:[%s2881_s10 + $0x8] sm:$0xff] (!%p2289_p5)   ;;  %vm2733_vm7 = vmmov (!%p2289_p5), 0   ;;  %v2597_v55 = vld [vmem:[%s2881_s10 + $0x10] sm:$0xff] (!%p2289_p5)   ;;  %v1454_v59 = vlaneseq (!%p2289_p5) }
 0x341   : > { %1208 = sbr.rel (%p2289_p5) target bundleno = 1586 (0x632), region = 167  ;;  %2416 = vmatprep.subr.bf16.mxu0 (!%p2289_p5), %v2732_v52  ;;  %2422 = vmatprep.subr.bf16.mxu1 (!%p2289_p5), %v2732_v52  ;;  %v1240_v21 = vsel (!%p2289_p5), %vm1235_vm6, %v2593_v51, 0  ;;  %v1297_v54 = vsel (!%p2289_p5), %vm1235_vm6, %v2594_v53, 0  ;;  %v2595_v36 = vld [vmem:[%s2879_s9] sm:$0xff] (!%p2289_p5)   ;;  %v2598_v27 = vld [vmem:[%s2881_s10 + $0x18] sm:$0xff] (!%p2289_p5)   ;;  %v2596_v56 = vld [vmem:[%s2879_s9 + $0x8] sm:$0xff] (!%p2289_p5)  }
 0x342   : > { %2417 = vmatpush3.bf16.xpose.msra.mxu0 (!%p2289_p5), %v1240_v21  ;;  %2418 = vmatprep.mubr.msk.bf16.mxu0 (!%p2289_p5), %vm2733_vm7, %v2732_v52  ;;  %v1354_v28 = vsel (!%p2289_p5), %vm1235_vm6, %v2597_v55, 0  ;;  %v1411_v57 = vsel (!%p2289_p5), %vm1235_vm6, %v2598_v27, 0  ;;  %v2599_v37 = vld [vmem:[%s2879_s9 + $0x10] sm:$0xff] (!%p2289_p5)   ;;  %v2600_v58 = vld [vmem:[%s2879_s9 + $0x18] sm:$0xff] (!%p2289_p5)   ;;  %v1455_v33 = vshrl.u32 (!%p2289_p5), %v1454_v59, 7  ;;  %v1458_v30 = vand.u32 (!%p2289_p5), 127, %v1454_v59 }
 0x343   : > { %2423 = vmatpush3.bf16.xpose.msra.mxu1 (!%p2289_p5), %v1297_v54  ;;  %2424 = vmatprep.mubr.msk.bf16.mxu1 (!%p2289_p5), %vm2733_vm7, %v2732_v52  ;;  %vm1481_vm9 = vcmask (!%p2289_p5), 130048   ;;  %v2734_v32 = vmov (!%p2289_p5), 0   ;;  %v1473_v12 = vld [vmem:[#allocation2] sm:$0xff] (!%p2289_p5)  ;;  %v1475_v20 = vld [vmem:[#allocation2 + $0x10] sm:$0xff] (!%p2289_p5)  ;;  %vm1650_vm11 = vcmask (!%p2289_p5), 7168   ;;  %v1474_v16 = vld [vmem:[#allocation2 + $0x8] sm:$0xff] (!%p2289_p5) }
 0x344   : > { %2428 = vmatprep.subr.bf16.mxu0 (!%p2289_p5), %v2732_v52  ;;  %2434 = vmatprep.subr.bf16.mxu1 (!%p2289_p5), %v2732_v52  ;;  %v1456_v60 = vadd.s32 (!%p2289_p5), 8, %v1455_v33  ;;  %vm1459_vm8 = vcmp.le.s32.totalorder (!%p2289_p5), %v1458_v30, %v1455_v33  ;;  %v1476_v46 = vld [vmem:[#allocation2 + $0x18] sm:$0xff] (!%p2289_p5)  ;;  %v1477_v51 = vld [vmem:[#allocation2 + $0x20] sm:$0xff] (!%p2289_p5)  ;;  %v1478_v21 = vld [vmem:[#allocation2 + $0x28] sm:$0xff] (!%p2289_p5) }
 0x345   : > { %2592 = vset.pattern.permute.xlu1 (!%p2289_p5), %v2734_v32  ;;  %2591 = vset.pattern.permute.xlu0 (!%p2289_p5), %v2734_v32 }
 0x346   : > { %vm1460_vm10 = vcmp.le.s32.totalorder (!%p2289_p5), %v1458_v30, %v1456_v60 }
 0x349   : > { %2419 = vmatmul.mubr.msk.bf16.vlgmr.msra.gmra.mrb[0].mxu0 %vm1235_vm6, %v2595_v36 }
 0x34a   : > { %2425 = vmatmul.mubr.msk.bf16.vlgmr.msra.gmra.mrb[0].mxu1 %vm1235_vm6, %v2596_v56  ;;  %2429 = vmatpush3.bf16.xpose.msra.mxu0 %v1354_v28  ;;  %v3168_v56 = vld [vmem:[#allocation2 + $0x30] sm:$0xff] }
 0x34b   : > { %2435 = vmatpush3.bf16.xpose.msra.mxu1 %v1411_v57  ;;  %2430 = vmatprep.mubr.msk.bf16.mxu0 %vm2733_vm7, %v2732_v52 }
 0x34c   : > { %2436 = vmatprep.mubr.msk.bf16.mxu1 %vm2733_vm7, %v2732_v52  ;;  %2440 = vmatprep.subr.bf16.mxu0 %v2732_v52 }
 0x34d   : > { %2446 = vmatprep.subr.bf16.mxu1 %v2732_v52 }
 0x351   : > { %2431 = vmatmul.mubr.msk.bf16.vlgmr.msra.gmra.mrb[4].mxu0 %vm1235_vm6, %v2599_v37  ;;  %v3171_v37 = vld [vmem:[#allocation2 + $0x38] sm:$0xff] }
 0x352   : > { %2437 = vmatmul.mubr.msk.bf16.vlgmr.msra.gmra.mrb[4].mxu1 %vm1235_vm6, %v2600_v58  ;;  %2442 = vmatprep.mubr.msk.bf16.mxu0 %vm2733_vm7, %v2732_v52 }
 0x353   : > { %2448 = vmatprep.mubr.msk.bf16.mxu1 %vm2733_vm7, %v2732_v52 }
 0x41c   : > { %v1276_v34 = vpop.f32.mrb[0].mxu0 }
 0x41d   : > { %v3125_v61 = vsel %vm1459_vm8, %v1276_v34, -1e+30  ;;  %v1333_v62 = vpop.f32.mrb[0].mxu1  ;;  %v2420_v38 = vpop.f32.mrb[1].mxu0 }
 0x41e   : > { %v3128_v63 = vsel %vm1459_vm8, %v1333_v62, -1e+30  ;;  %v2426_v39 = vpop.f32.mrb[1].mxu1  ;;  %v1279_v0 = vpop.f32.mrb[2].mxu0  ;;  %v1482_v1 = vsel %vm1481_vm9, %v3125_v61, -inf }
 0x41f   : > { %v3133_v2 = vsel %vm1460_vm10, %v1279_v0, -1e+30  ;;  %v1336_v3 = vpop.f32.mrb[2].mxu1  ;;  %v1488_v4 = vsel %vm1481_vm9, %v3128_v63, -inf  ;;  %1483 = vmax.xlane.f32.xlu0 %v1482_v1  ;;  %v2421_v41 = vpop.f32.mrb[3].mxu0 }
 0x420   : > { %v3138_v5 = vsel %vm1460_vm10, %v1336_v3, -1e+30  ;;  %1489 = vmax.xlane.f32.xlu1 %v1488_v4  ;;  %v2427_v6 = vpop.f32.mrb[3].mxu1  ;;  %v1485_v35 = vsel %vm1481_vm9, %v3133_v2, -inf  ;;  %v2601_v3 = vld [vmem:[%s2883_s11] sm:$0xff]  }
 0x421   : > { %v1491_v7 = vsel %vm1481_vm9, %v3138_v5, -inf  ;;  %2441 = vmatpush3.bf16.msra.mxu0 %v2601_v3 }
 0x422   : > { %2452 = vmatprep.subr.bf16.mxu0 %v2732_v52 }
 0x423   : > { %1486 = vmax.xlane.f32.xlu0 %v1485_v35  ;;  %v2602_v35 = vld [vmem:[%s2883_s11 + $0x8] sm:$0xff]  }
 0x424   : > { %1492 = vmax.xlane.f32.xlu1 %v1491_v7  ;;  %v1390_v43 = vpop.f32.mrb[4].mxu0  ;;  %2447 = vmatpush3.bf16.msra.mxu1 %v2602_v35 }
 0x425   : > { %v3145_v8 = vsel %vm1459_vm8, %v1390_v43, -1e+30  ;;  %v2432_v10 = vpop.f32.mrb[5].mxu0  ;;  %v1447_v11 = vpop.f32.mrb[4].mxu1  ;;  %2458 = vmatprep.subr.bf16.mxu1 %v2732_v52 }
 0x426   : > { %v1393_v13 = vpop.f32.mrb[6].mxu0  ;;  %v3148_v14 = vsel %vm1459_vm8, %v1447_v11, -1e+30  ;;  %v2438_v47 = vpop.f32.mrb[5].mxu1  ;;  %v1494_v17 = vsel %vm1481_vm9, %v3145_v8, -inf }
 0x427   : > { %v3153_v18 = vsel %vm1460_vm10, %v1393_v13, -1e+30  ;;  %v2433_v15 = vpop.f32.mrb[7].mxu0  ;;  %v1450_v22 = vpop.f32.mrb[6].mxu1  ;;  %1495 = vmax.xlane.f32.xlu0 %v1494_v17  ;;  %v1500_v29 = vsel %vm1481_vm9, %v3148_v14, -inf }
 0x428   : > { %v1497_v23 = vsel %vm1481_vm9, %v3153_v18, -inf  ;;  %v3158_v25 = vsel %vm1460_vm10, %v1450_v22, -1e+30  ;;  %v2439_v26 = vpop.f32.mrb[7].mxu1 }
 0x429   : > { %1498 = vmax.xlane.f32.xlu1 %v1497_v23  ;;  %v1503_v31 = vsel %vm1481_vm9, %v3158_v25, -inf }
 0x42b   : > { %1501 = vmax.xlane.f32.xlu0 %v1500_v29 }
 0x42d   : > { %1504 = vmax.xlane.f32.xlu1 %v1503_v31 }
 0x4ac   : > { %v1484_v40 = vpop.xlane.xlu0 %1483 }
 0x4ad   : > { %v1490_v44 = vpop.xlane.xlu1 %1489  ;;  %v1506_v45 = vmax.f32 %v1473_v12, %v1484_v40 }
 0x4ae   : > { %v1508_v9 = vmax.f32 %v1475_v20, %v1490_v44 }
 0x4af   : > { %v1514_v19 = vsub.f32 %v1473_v12, %v1506_v45  ;;  %1943 = vst.msk [vmem:[#allocation2] sm:$0xff] %vm1650_vm11, %v1506_v45  ;;  %1540 = vperm.xlu0 %2591, %v1506_v45  }
 0x4b0   : > { %1945 = vst.msk [vmem:[#allocation2 + $0x10] sm:$0xff] %vm1650_vm11, %v1508_v9  ;;  %1550 = vperm.xlu1 %2592, %v1508_v9   ;;  %v1487_v24 = vpop.xlane.xlu0 %1486  ;;  %v1516_v58 = vsub.f32 %v1475_v20, %v1508_v9 }
 0x4b1   : > { %v1522_v48 = vmul.f32 1.442695, %v1514_v19  ;;  %v1493_v49 = vpop.xlane.xlu1 %1492  ;;  %v1507_v42 = vmax.f32 %v1474_v16, %v1487_v24 }
 0x4b2   : > { %v1509_v50 = vmax.f32 %v1476_v46, %v1493_v49  ;;  %v1526_v39 = vmul.f32 1.442695, %v1516_v58 }
 0x4b3   : > { %2605 = vpow2.f32 %v1522_v48  ;;  %1944 = vst.msk [vmem:[#allocation2 + $0x8] sm:$0xff] %vm1650_vm11, %v1507_v42  ;;  %v1515_v0 = vsub.f32 %v1474_v16, %v1507_v42  ;;  %v2603_v48 = vld [vmem:[%s2883_s11 + $0x10] sm:$0xff]  }
 0x4b4   : > { %v1517_v53 = vsub.f32 %v1476_v46, %v1509_v50  ;;  %1946 = vst.msk [vmem:[#allocation2 + $0x18] sm:$0xff] %vm1650_vm11, %v1509_v50  ;;  %1545 = vperm.xlu1 %2592, %v1507_v42   ;;  %v1496_v54 = vpop.xlane.xlu0 %1495 }
 0x4b5   : > { %v1510_v36 = vmax.f32 %v1477_v51, %v1496_v54  ;;  %v1524_v4 = vmul.f32 1.442695, %v1515_v0 }
 0x4b6   : > { %v1528_v55 = vmul.f32 1.442695, %v1517_v53  ;;  %v1499_v27 = vpop.xlane.xlu1 %1498 }
 0x4b7   : > { %v1511_v28 = vmax.f32 %v1478_v21, %v1499_v27  ;;  %1947 = vst.msk [vmem:[#allocation2 + $0x20] sm:$0xff] %vm1650_vm11, %v1510_v36  ;;  %v1518_v41 = vsub.f32 %v1477_v51, %v1510_v36 }
 0x4b8   : > { %2607 = vpow2.f32 %v1528_v55  ;;  %1555 = vperm.xlu1 %2592, %v1509_v50   ;;  %v1502_v57 = vpop.xlane.xlu0 %1501 }
 0x4b9   : > { %v1519_v59 = vsub.f32 %v1478_v21, %v1511_v28  ;;  %1948 = vst.msk [vmem:[#allocation2 + $0x28] sm:$0xff] %vm1650_vm11, %v1511_v28  ;;  %v3175_v33 = vmax.f32 %v3168_v56, %v1502_v57  ;;  %v1530_v7 = vmul.f32 1.442695, %v1518_v41  ;;  %v2604_v21 = vld [vmem:[%s2883_s11 + $0x18] sm:$0xff]  }
 0x4ba   : > { %v1505_v30 = vpop.xlane.xlu1 %1504 }
 0x4bb   : > { %v1532_v60 = vmul.f32 1.442695, %v1519_v59  ;;  %v1520_v34 = vsub.f32 %v3168_v56, %v3175_v33  ;;  %1949 = vst.msk [vmem:[#allocation2 + $0x30] sm:$0xff] %vm1650_vm11, %v3175_v33  ;;  %v3182_v62 = vmax.f32 %v3171_v37, %v1505_v30 }
 0x4bc   : > { %1560 = vperm.xlu1 %2592, %v1510_v36  }
 0x4bd   : > { %v3184_v38 = vpop.eup %2605  ;;  %2609 = vpow2.f32 %v1532_v60  ;;  %v1521_v1 = vsub.f32 %v3171_v37, %v3182_v62  ;;  %1950 = vst.msk [vmem:[#allocation2 + $0x38] sm:$0xff] %vm1650_vm11, %v3182_v62  ;;  %v1534_v3 = vmul.f32 1.442695, %v1520_v34 }
 0x4be   : > { %1669 = vperm.xlu0 %2591, %v3184_v38   ;;  %2611 = vpow2.f32 %v1526_v39 }
 0x4bf   : > { %2613 = vpow2.f32 %v1524_v4 }
 0x4c0   : > { %1570 = vperm.xlu1 %2592, %v3175_v33   ;;  %2615 = vpow2.f32 %v1530_v7 }
 0x4c2   : > { %v3193_v6 = vpop.eup %2607 }
 0x4c3   : > { %1684 = vperm.xlu0 %2591, %v3193_v6  }
 0x4c4   : > { %1565 = vperm.xlu1 %2592, %v1511_v28  }
 0x4c7   : > { %v3198_v43 = vpop.eup %2609 }
 0x4c8   : > { %1575 = vperm.xlu1 %2592, %v3182_v62   ;;  %1694 = vperm.xlu0 %2591, %v3198_v43   ;;  %v3203_v10 = vpop.eup %2611 }
 0x4c9   : > { %v3206_v11 = vpop.eup %2613 }
 0x4ca   : > { %v3209_v13 = vpop.eup %2615 }
 0x4cc   : > { %1679 = vperm.xlu1 %2592, %v3203_v10  }
 0x4d0   : > { %1674 = vperm.xlu1 %2592, %v3206_v11  }
 0x4d4   : > { %1689 = vperm.xlu1 %2592, %v3209_v13  }
 0x52e   : > { %v1541_v47 = vpop.permute.xlu0 %1540 }
 0x52f   : > { %v1578_v17 = vsub.f32 %v3125_v61, %v1541_v47  ;;  %v1551_v15 = vpop.permute.xlu1 %1550  ;;  %v1602_v47 = vld [vmem:[#allocation3] sm:$0xff] }
 0x530   : > { %v1580_v22 = vsub.f32 %v3128_v63, %v1551_v15  ;;  %v1604_v15 = vld [vmem:[#allocation3 + $0x10] sm:$0xff] }
 0x531   : > { %v1586_v23 = vmul.f32 1.442695, %v1578_v17  ;;  %v1612_v56 = vmul.f32 %v3203_v10, %v1604_v15  ;;  %v1606_v10 = vld [vmem:[#allocation3 + $0x20] sm:$0xff] }
 0x532   : > { %v1590_v26 = vmul.f32 1.442695, %v1580_v22  ;;  %v1610_v22 = vmul.f32 %v3184_v38, %v1602_v47 }
 0x533   : > { %2617 = vpow2.f32 %v1586_v23  ;;  %v1546_v29 = vpop.permute.xlu1 %1545 }
 0x534   : > { %2619 = vpow2.f32 %v1590_v26  ;;  %v1579_v31 = vsub.f32 %v3133_v2, %v1546_v29  ;;  %v1603_v26 = vld [vmem:[#allocation3 + $0x8] sm:$0xff] }
 0x536   : > { %v1588_v32 = vmul.f32 1.442695, %v1579_v31  ;;  %v1611_v31 = vmul.f32 %v3206_v11, %v1603_v26 }
 0x537   : > { %v1556_v12 = vpop.permute.xlu1 %1555 }
 0x538   : > { %2621 = vpow2.f32 %v1588_v32  ;;  %v1581_v20 = vsub.f32 %v3138_v5, %v1556_v12  ;;  %v1605_v12 = vld [vmem:[#allocation3 + $0x18] sm:$0xff] }
 0x539   : > { %v1613_v38 = vmul.f32 %v3193_v6, %v1605_v12 }
 0x53a   : > { %v1592_v40 = vmul.f32 1.442695, %v1581_v20 }
 0x53b   : > { %v1561_v44 = vpop.permute.xlu1 %1560 }
 0x53c   : > { %2623 = vpow2.f32 %v1592_v40  ;;  %v1582_v61 = vsub.f32 %v3145_v8, %v1561_v44 }
 0x53d   : > { %v2618_v45 = vpop.eup %2617  ;;  %v1670_v7 = vpop.permute.xlu0 %1669 }
 0x53e   : > { %v2620_v63 = vpop.eup %2619  ;;  %v1594_v9 = vmul.f32 1.442695, %v1582_v61  ;;  %v1618_v16 = vsel %vm1481_vm9, %v2618_v45, 0.0  ;;  %v1614_v61 = vmul.f32 %v3209_v13, %v1606_v10 }
 0x53f   : > { %v1571_v19 = vpop.permute.xlu1 %1570  ;;  %1619 = vadd.xlane.f32.xlu1 %v1618_v16  ;;  %v1624_v2 = vsel %vm1481_vm9, %v2620_v63, 0.0 }
 0x540   : > { %2625 = vpow2.f32 %v1594_v9  ;;  %v1584_v46 = vsub.f32 %v3148_v14, %v1571_v19  ;;  %1625 = vadd.xlane.f32.xlu0 %v1624_v2  ;;  %v1607_v19 = vld [vmem:[#allocation3 + $0x28] sm:$0xff] }
 0x541   : > { %v1615_v6 = vmul.f32 %v3198_v43, %v1607_v19 }
 0x542   : > { %v2622_v5 = vpop.eup %2621  ;;  %v1598_v24 = vmul.f32 1.442695, %v1584_v46  ;;  %v1685_v62 = vpop.permute.xlu0 %1684 }
 0x543   : > { %v1566_v49 = vpop.permute.xlu1 %1565  ;;  %v1621_v8 = vsel %vm1481_vm9, %v2622_v5, 0.0  ;;  %v1715_v42 = vpack.c.bf16 %v2622_v5, %v2618_v45  ;;  %v1609_v5 = vld [vmem:[#allocation3 + $0x38] sm:$0xff] }
 0x544   : > { %2627 = vpow2.f32 %v1598_v24  ;;  %v1583_v50 = vsub.f32 %v3153_v18, %v1566_v49  ;;  %1622 = vadd.xlane.f32.xlu0 %v1621_v8  ;;  %v1659_v8 = vld [vmem:[#allocation4] sm:$0xff] }
 0x545   : > { %2443 = vmatmul.mubr.msk.bf16.vlgmr.msra.gmra.mrb[8].mxu0 %vm1481_vm9, %v1715_v42  ;;  %v1660_v42 = vld [vmem:[#allocation4 + $0x8] sm:$0xff] }
 0x546   : > { %v2624_v51 = vpop.eup %2623  ;;  %v1596_v53 = vmul.f32 1.442695, %v1583_v50  ;;  %2453 = vmatpush3.bf16.msra.mxu0 %v2603_v48  ;;  %2454 = vmatprep.mubr.msk.bf16.mxu0 %vm2733_vm7, %v2732_v52  ;;  %v1707_v50 = vmul.f32 %v1670_v7, %v1659_v8 }
 0x547   : > { %v1576_v14 = vpop.permute.xlu1 %1575  ;;  %v1627_v54 = vsel %vm1481_vm9, %v2624_v51, 0.0  ;;  %v1716_v36 = vpack.c.bf16 %v2624_v51, %v2620_v63  ;;  %v3246_v17 = vpop.permute.xlu0 %1694  ;;  %v1608_v63 = vld [vmem:[#allocation3 + $0x30] sm:$0xff] }
 0x548   : > { %2629 = vpow2.f32 %v1596_v53  ;;  %v1585_v55 = vsub.f32 %v3158_v25, %v1576_v14  ;;  %1628 = vadd.xlane.f32.xlu1 %v1627_v54  ;;  %v1661_v51 = vld [vmem:[#allocation4 + $0x10] sm:$0xff] }
 0x549   : > { %2449 = vmatmul.mubr.msk.bf16.vlgmr.msra.gmra.mrb[8].mxu1 %vm1481_vm9, %v1716_v36  ;;  %v1662_v36 = vld [vmem:[#allocation4 + $0x18] sm:$0xff] }
 0x54a   : > { %v2626_v18 = vpop.eup %2625  ;;  %v1600_v27 = vmul.f32 1.442695, %v1585_v55  ;;  %2459 = vmatpush3.bf16.msra.mxu1 %v2604_v21  ;;  %2460 = vmatprep.mubr.msk.bf16.mxu1 %vm2733_vm7, %v2732_v52  ;;  %v1536_v52 = vmul.f32 1.442695, %v1521_v1 }
 0x54b   : > { %v1630_v28 = vsel %vm1481_vm9, %v2626_v18, 0.0  ;;  %v1680_v35 = vpop.permute.xlu1 %1679 }
 0x54c   : > { %2631 = vpow2.f32 %v1600_v27  ;;  %1631 = vadd.xlane.f32.xlu0 %v1630_v28  ;;  %v1709_v55 = vmul.f32 %v1680_v35, %v1661_v51 }
 0x54d   : > { %2633 = vpow2.f32 %v1536_v52  ;;  %v1663_v52 = vld [vmem:[#allocation4 + $0x20] sm:$0xff] }
 0x54e   : > { %v2628_v57 = vpop.eup %2627  ;;  %2635 = vpow2.f32 %v1534_v3  ;;  %v1665_v3 = vld [vmem:[#allocation4 + $0x30] sm:$0xff] }
 0x54f   : > { %v1636_v58 = vsel %vm1481_vm9, %v2628_v57, 0.0  ;;  %v1675_v37 = vpop.permute.xlu1 %1674 }
 0x550   : > { %1637 = vadd.xlane.f32.xlu0 %v1636_v58  ;;  %v1708_v21 = vmul.f32 %v1675_v37, %v1660_v42 }
 0x552   : > { %v2630_v59 = vpop.eup %2629 }
 0x553   : > { %v1633_v25 = vsel %vm1481_vm9, %v2630_v59, 0.0  ;;  %v1717_v30 = vpack.c.bf16 %v2630_v59, %v2626_v18  ;;  %v3244_v1 = vpop.permute.xlu1 %1689 }
 0x554   : > { %1634 = vadd.xlane.f32.xlu1 %v1633_v25 }
 0x555   : > { %2455 = vmatmul.mubr.msk.bf16.vlgmr.msra.gmra.mrb[12].mxu0 %vm1481_vm9, %v1717_v30 }
 0x556   : > { %v2632_v60 = vpop.eup %2631 }
 0x557   : > { %v1639_v39 = vsel %vm1481_vm9, %v2632_v60, 0.0  ;;  %v1718_v0 = vpack.c.bf16 %v2632_v60, %v2628_v57  ;;  %v2634_v4 = vpop.eup %2633  ;;  %v1710_v57 = vmul.f32 %v1685_v62, %v1662_v36  ;;  %v1666_v62 = vld [vmem:[#allocation4 + $0x38] sm:$0xff] }
 0x558   : > { %1640 = vadd.xlane.f32.xlu1 %v1639_v39  ;;  %v2636_v41 = vpop.eup %2635  ;;  %v1617_v48 = vmul.f32 %v2634_v4, %v1609_v5  ;;  %v1664_v39 = vld [vmem:[#allocation4 + $0x28] sm:$0xff] }
 0x559   : > { %2461 = vmatmul.mubr.msk.bf16.vlgmr.msra.gmra.mrb[12].mxu1 %vm1481_vm9, %v1718_v0  ;;  %v1616_v11 = vmul.f32 %v2636_v41, %v1608_v63  ;;  %v1711_v0 = vmul.f32 %v3244_v1, %v1663_v52  ;;  %v1712_v35 = vmul.f32 %v3246_v17, %v1664_v39 }
 0x566   : > { %1704 = vperm.xlu0 %2591, %v2634_v4  }
 0x569   : > { %1699 = vperm.xlu1 %2592, %v2636_v41  }
 0x5cc   : > { %v1620_v33 = vpop.xlane.xlu1 %1619 }
 0x5cd   : > { %v1626_v34 = vpop.xlane.xlu0 %1625  ;;  %v1642_v23 = vadd.f32 %v1620_v33, %v1610_v22 }
 0x5ce   : > { %v1644_v29 = vadd.f32 %v1626_v34, %v1612_v56 }
 0x5cf   : > { %1651 = vst.msk [vmem:[#allocation3] sm:$0xff] %vm1650_vm11, %v1642_v23 }
 0x5d0   : > { %1653 = vst.msk [vmem:[#allocation3 + $0x10] sm:$0xff] %vm1650_vm11, %v1644_v29 }
 0x5d1   : > { %v1623_v32 = vpop.xlane.xlu0 %1622 }
 0x5d2   : > { %v1643_v20 = vadd.f32 %v1623_v32, %v1611_v31 }
 0x5d4   : > { %1652 = vst.msk [vmem:[#allocation3 + $0x8] sm:$0xff] %vm1650_vm11, %v1643_v20 }
 0x5d5   : > { %v1629_v40 = vpop.xlane.xlu1 %1628 }
 0x5d6   : > { %v1645_v44 = vadd.f32 %v1629_v40, %v1613_v38 }
 0x5d8   : > { %1654 = vst.msk [vmem:[#allocation3 + $0x18] sm:$0xff] %vm1650_vm11, %v1645_v44 }
 0x5d9   : > { %v1632_v45 = vpop.xlane.xlu0 %1631 }
 0x5da   : > { %v1646_v9 = vadd.f32 %v1632_v45, %v1614_v61 }
 0x5dc   : > { %1655 = vst.msk [vmem:[#allocation3 + $0x20] sm:$0xff] %vm1650_vm11, %v1646_v9 }
 0x5dd   : > { %v1638_v16 = vpop.xlane.xlu0 %1637 }
 0x5de   : > { %v1648_v2 = vadd.f32 %v1638_v16, %v1616_v11 }
 0x5e0   : > { %1657 = vst.msk [vmem:[#allocation3 + $0x30] sm:$0xff] %vm1650_vm11, %v1648_v2 }
 0x5e1   : > { %v1635_v46 = vpop.xlane.xlu1 %1634 }
 0x5e2   : > { %v1647_v24 = vadd.f32 %v1635_v46, %v1615_v6 }
 0x5e4   : > { %1656 = vst.msk [vmem:[#allocation3 + $0x28] sm:$0xff] %vm1650_vm11, %v1647_v24 }
 0x5e5   : > { %v1641_v13 = vpop.xlane.xlu1 %1640  ;;  %v1705_v47 = vpop.permute.xlu0 %1704 }
 0x5e6   : > { %v1649_v49 = vadd.f32 %v1641_v13, %v1617_v48  ;;  %v1714_v23 = vmul.f32 %v1705_v47, %v1666_v62 }
 0x5e8   : > { %1658 = vst.msk [vmem:[#allocation3 + $0x38] sm:$0xff] %vm1650_vm11, %v1649_v49 }
 0x5e9   : > { %v1700_v4 = vpop.permute.xlu1 %1699 }
 0x5ea   : > { %v1713_v22 = vmul.f32 %v1700_v4, %v1665_v3 }
 0x618   : > { %v1770_v53 = vpop.f32.mrb[8].mxu0 }
 0x619   : > { %v1927_v14 = vadd.f32 %v1770_v53, %v1707_v50  ;;  %v2444_v54 = vpop.f32.mrb[9].mxu0 }
 0x61a   : > { %v1773_v43 = vpop.f32.mrb[10].mxu0 }
 0x61b   : > { %1935 = vst.msk [vmem:[#allocation4] sm:$0xff] %vm1235_vm6, %v1927_v14  ;;  %v1928_v18 = vadd.f32 %v1773_v43, %v1708_v21  ;;  %v2445_v27 = vpop.f32.mrb[11].mxu0 }
 0x61c   : > { %v1820_v28 = vpop.f32.mrb[8].mxu1 }
 0x61d   : > { %1936 = vst.msk [vmem:[#allocation4 + $0x8] sm:$0xff] %vm1235_vm6, %v1928_v18  ;;  %v1929_v58 = vadd.f32 %v1820_v28, %v1709_v55  ;;  %v2450_v59 = vpop.f32.mrb[9].mxu1 }
 0x61e   : > { %v1823_v25 = vpop.f32.mrb[10].mxu1 }
 0x61f   : > { %1937 = vst.msk [vmem:[#allocation4 + $0x10] sm:$0xff] %vm1235_vm6, %v1929_v58  ;;  %v1930_v30 = vadd.f32 %v1823_v25, %v1710_v57  ;;  %v2451_v60 = vpop.f32.mrb[11].mxu1 }
 0x621   : > { %1938 = vst.msk [vmem:[#allocation4 + $0x18] sm:$0xff] %vm1235_vm6, %v1930_v30 }
 0x628   : > { %v1870_v41 = vpop.f32.mrb[12].mxu0 }
 0x629   : > { %v1931_v7 = vadd.f32 %v1870_v41, %v1711_v0  ;;  %v2456_v37 = vpop.f32.mrb[13].mxu0 }
 0x62a   : > { %v1873_v15 = vpop.f32.mrb[14].mxu0 }
 0x62b   : > { %1939 = vst.msk [vmem:[#allocation4 + $0x20] sm:$0xff] %vm1235_vm6, %v1931_v7  ;;  %v1932_v56 = vadd.f32 %v1873_v15, %v1712_v35  ;;  %v2457_v33 = vpop.f32.mrb[15].mxu0 }
 0x62c   : > { %v1920_v34 = vpop.f32.mrb[12].mxu1 }
 0x62d   : > { %1940 = vst.msk [vmem:[#allocation4 + $0x28] sm:$0xff] %vm1235_vm6, %v1932_v56  ;;  %v1933_v1 = vadd.f32 %v1920_v34, %v1713_v22  ;;  %v2462_v26 = vpop.f32.mrb[13].mxu1 }
 0x62e   : > { %v1923_v29 = vpop.f32.mrb[14].mxu1 }
 0x62f   : > { %1941 = vst.msk [vmem:[#allocation4 + $0x30] sm:$0xff] %vm1235_vm6, %v1933_v1  ;;  %v1934_v17 = vadd.f32 %v1923_v29, %v1714_v23  ;;  %v2463_v31 = vpop.f32.mrb[15].mxu1 }
 0x631   : > { %1942 = vst.msk [vmem:[#allocation4 + $0x38] sm:$0xff] %vm1235_vm6, %v1934_v17 }
 0x632 PF: > { %p2310_p6 = scmp.ne.s32.totalorder %s2709_s16, 3 }
 0x633   : > { %v1957_v32 = vld [vmem:[#allocation3 + $0x10] sm:$0xff] (!%p2310_p6)  ;;  %v1955_v12 = vld [vmem:[#allocation3] sm:$0xff] (!%p2310_p6)  ;;  %v1958_v20 = vld [vmem:[#allocation3 + $0x18] sm:$0xff] (!%p2310_p6)  ;;  %v2735_v38 = vmov (!%p2310_p6), 0   ;;  %vm2059_vm12 = vcmask (!%p2310_p6), 257024  }
 0x634   : > { %1954 = sbr.rel (%p2310_p6) target bundleno = 1745 (0x6d1), region = 171  ;;  %2638 = vset.pattern.permute.xlu1 (!%p2310_p6), %v2735_v38  ;;  %2637 = vset.pattern.permute.xlu0 (!%p2310_p6), %v2735_v38  ;;  %2639 = vrcp.f32 (!%p2310_p6), %v1957_v32  ;;  %v1956_v40 = vld [vmem:[#allocation3 + $0x8] sm:$0xff] (!%p2310_p6)  ;;  %v1959_v44 = vld [vmem:[#allocation3 + $0x20] sm:$0xff] (!%p2310_p6)  ;;  %v1962_v61 = vld [vmem:[#allocation3 + $0x38] sm:$0xff] (!%p2310_p6) }
 0x635   : > { %2641 = vrcp.f32 (!%p2310_p6), %v1955_v12  ;;  %v1960_v10 = vld [vmem:[#allocation3 + $0x28] sm:$0xff] (!%p2310_p6)  ;;  %v1961_v45 = vld [vmem:[#allocation3 + $0x30] sm:$0xff] (!%p2310_p6)  ;;  %v1971_v24 = vld [vmem:[#allocation4] sm:$0xff] (!%p2310_p6) }
 0x636   : > { %2643 = vrcp.f32 (!%p2310_p6), %v1958_v20  ;;  %v1973_v5 = vld [vmem:[#allocation4 + $0x10] sm:$0xff] (!%p2310_p6)  ;;  %v1974_v42 = vld [vmem:[#allocation4 + $0x18] sm:$0xff] (!%p2310_p6)  ;;  %v1972_v51 = vld [vmem:[#allocation4 + $0x8] sm:$0xff] (!%p2310_p6) }
 0x637   : > { %2645 = vrcp.f32 (!%p2310_p6), %v1956_v40  ;;  %v1976_v43 = vld [vmem:[#allocation4 + $0x28] sm:$0xff] (!%p2310_p6)  ;;  %v1975_v18 = vld [vmem:[#allocation4 + $0x20] sm:$0xff] (!%p2310_p6)  ;;  %v1977_v60 = vld [vmem:[#allocation4 + $0x30] sm:$0xff] (!%p2310_p6) }
 0x638   : > { %2647 = vrcp.f32 (!%p2310_p6), %v1960_v10  ;;  %v1978_v25 = vld [vmem:[#allocation4 + $0x38] sm:$0xff] (!%p2310_p6) }
 0x639   : > { %2649 = vrcp.f32 (!%p2310_p6), %v1959_v44 }
 0x63a   : > { %2651 = vrcp.f32 (!%p2310_p6), %v1962_v61 }
 0x63b   : > { %2653 = vrcp.f32 %v1961_v45 }
 0x63e   : > { %v2640_v63 = vpop.eup %2639 }
 0x63f   : > { %v2642_v9 = vpop.eup %2641  ;;  %1991 = vperm.xlu1 %2638, %v2640_v63  }
 0x640   : > { %v2644_v11 = vpop.eup %2643  ;;  %1981 = vperm.xlu0 %2637, %v2642_v9  }
 0x641   : > { %v2646_v16 = vpop.eup %2645 }
 0x642   : > { %v2648_v19 = vpop.eup %2647 }
 0x643   : > { %1996 = vperm.xlu1 %2638, %v2644_v11   ;;  %v2650_v2 = vpop.eup %2649 }
 0x644   : > { %1986 = vperm.xlu0 %2637, %v2646_v16   ;;  %v2652_v6 = vpop.eup %2651 }
 0x645   : > { %v2654_v46 = vpop.eup %2653 }
 0x647   : > { %2006 = vperm.xlu1 %2638, %v2648_v19  }
 0x648   : > { %2001 = vperm.xlu0 %2637, %v2650_v2  }
 0x64b   : > { %2016 = vperm.xlu1 %2638, %v2652_v6  }
 0x64c   : > { %2011 = vperm.xlu0 %2637, %v2654_v46  }
 0x6be   : > { %v1992_v48 = vpop.permute.xlu1 %1991 }
 0x6bf   : > { %v2021_v13 = vmul.f32 %v1992_v48, %v1973_v5  ;;  %v1982_v49 = vpop.permute.xlu0 %1981 }
 0x6c0   : > { %v2019_v8 = vmul.f32 %v1982_v49, %v1971_v24 }
 0x6c1   : > { %v2329_v50 = vpack.c.bf16 %v2021_v13, %v2021_v13 }
 0x6c2   : > { %v2327_v53 = vpack.c.bf16 %v2019_v8, %v2019_v8  ;;  %v1997_v21 = vpop.permute.xlu1 %1996 }
 0x6c3   : > { %2062 = vst.msk [vmem:[%s2885_s21 + $0x8] sm:$0xf] %vm2059_vm12, %v2329_v50  ;;  %v2022_v14 = vmul.f32 %v1997_v21, %v1974_v42  ;;  %v1987_v54 = vpop.permute.xlu0 %1986 }
 0x6c4   : > { %2060 = vst.msk [vmem:[%s2885_s21] sm:$0xf] %vm2059_vm12, %v2327_v53  ;;  %v2020_v36 = vmul.f32 %v1987_v54, %v1972_v51 }
 0x6c5   : > { %v2330_v55 = vpack.c.bf16 %v2022_v14, %v2022_v14 }
 0x6c6   : > { %v2328_v27 = vpack.c.bf16 %v2020_v36, %v2020_v36  ;;  %v2007_v28 = vpop.permute.xlu1 %2006 }
 0x6c7   : > { %2063 = vst.msk [vmem:[%s2885_s21 + $0xc] sm:$0xf] %vm2059_vm12, %v2330_v55  ;;  %v2024_v57 = vmul.f32 %v2007_v28, %v1976_v43  ;;  %v2002_v58 = vpop.permute.xlu0 %2001 }
 0x6c8   : > { %2061 = vst.msk [vmem:[%s2885_s21 + $0x4] sm:$0xf] %vm2059_vm12, %v2328_v27  ;;  %v2023_v59 = vmul.f32 %v2002_v58, %v1975_v18 }
 0x6c9   : > { %v2332_v30 = vpack.c.bf16 %v2024_v57, %v2024_v57 }
 0x6ca   : > { %v2331_v52 = vpack.c.bf16 %v2023_v59, %v2023_v59  ;;  %v2017_v39 = vpop.permute.xlu1 %2016 }
 0x6cb   : > { %2065 = vst.msk [vmem:[%s2885_s21 + $0x14] sm:$0xf] %vm2059_vm12, %v2332_v30  ;;  %v2026_v0 = vmul.f32 %v2017_v39, %v1978_v25  ;;  %v2012_v3 = vpop.permute.xlu0 %2011 }
 0x6cc   : > { %2064 = vst.msk [vmem:[%s2885_s21 + $0x10] sm:$0xf] %vm2059_vm12, %v2331_v52  ;;  %v2025_v4 = vmul.f32 %v2012_v3, %v1977_v60 }
 0x6cd   : > { %v2334_v41 = vpack.c.bf16 %v2026_v0, %v2026_v0 }
 0x6ce   : > { %v2333_v35 = vpack.c.bf16 %v2025_v4, %v2025_v4 }
 0x6cf   : > { %2067 = vst.msk [vmem:[%s2885_s21 + $0x1c] sm:$0xf] %vm2059_vm12, %v2334_v41 }
 0x6d0   : > { %2066 = vst.msk [vmem:[%s2885_s21 + $0x18] sm:$0xf] %vm2059_vm12, %v2333_v35 }
 0x6d1 PF: > { %2074 = sbr.rel (!%p2846_p12) target bundleno = 1753 (0x6d9), region = 175  ;;  %s2335_s12 = sshll.u32 (%p2846_p12), %s2713_s17, 3  ;;  %v2093_v7 = vld [vmem:[%s2885_s21] sm:$0xff] (%p2846_p12)   ;;  %v2097_v37 = vld [vmem:[%s2885_s21 + $0x8] sm:$0xff] (%p2846_p12)  }
 0x6d2   : > { %s2077_s24 = scalar_lea.vmem (%p2846_p12), %s3329_s3, %s2335_s12 }
 0x6d3   : > { %v2101_v62 = vld [vmem:[%s2885_s21 + $0x10] sm:$0xff] (%p2846_p12)   ;;  %2094 = vst [vmem:[%s2077_s24] sm:$0xff] (%p2846_p12), %v2093_v7   ;;  %2098 = vst [vmem:[%s2077_s24 + $0x20] sm:$0xff] (%p2846_p12), %v2097_v37  }
 0x6d4   : > { %2102 = vst [vmem:[%s2077_s24 + $0x40] sm:$0xff] (%p2846_p12), %v2101_v62  }
 0x6d7   : > { %v2105_v47 = vld [vmem:[%s2885_s21 + $0x18] sm:$0xff] (%p2846_p12)  }
 0x6d8   : > { %2106 = vst [vmem:[%s2077_s24 + $0x60] sm:$0xff] %v2105_v47  }
 0x6d9 PF: > { %s13_s20 = sadd.s32 1, %s2725_s20   ;;  %s3333_s12 = smov %s2697_s13 }
 0x6da   : > { %p10_p7 = scmp.ge.s32.totalorder %s13_s20, 18   ;;  %s3334_s13 = smov %s2851_s7 }
 0x6db   : > { %s3335_s14 = smov %s2705_s15  ;;  %s3336_s15 = smov %s2840_s4 }
 0x6dc   : > { %s3337_s16 = smov %s2717_s18  ;;  %s3338_s17 = smov %s2721_s19 }
 0x6dd   : > { %s3339_s18 = smov %s3342_s22  ;;  %s3340_s19 = smov %s3346_s23 }
 0x6de   :  { %12 = sbr.rel (!%p10_p7) target bundleno = 5 (0x5), region = 263 }

// kernel: _gpt2_block_impl.5
= control target key start
LH: loop header
LB: loop body
LE: loop exit
PB: predicated region body
PF: predicated region fallthrough
CT: control target
= control target key end

     0   :  { %s2204_s0 = inlined_call_operand.vmem [shape: bf16[64,128], index: 0, kind: input, shape index: {}]   ;;  %s2205_s1 = inlined_call_operand.vmem [shape: f32[64,128], index: 1, kind: input, shape index: {}]   ;;  %s2206_s2 = inlined_call_operand.vmem [shape: bf16[128,128], index: 2, kind: input, shape index: {}]   ;;  %s2207_s3 = inlined_call_operand.vmem [shape: f32[1,128], index: 3, kind: input, shape index: {}]   ;;  %s2208_s4 = inlined_call_operand.vmem [shape: f32[1,128], index: 4, kind: input, shape index: {}]   ;;  %s2209_s5 = inlined_call_operand.vmem [shape: f32[1,128], index: 5, kind: input, shape index: {}]   ;;  %s2210_s6 = inlined_call_operand.vmem [shape: bf16[128,512], index: 6, kind: input, shape index: {}]   ;;  %s2211_s7 = inlined_call_operand.vmem [shape: f32[1,512], index: 7, kind: input, shape index: {}]   ;;  %s2212_s8 = inlined_call_operand.vmem [shape: bf16[512,128], index: 8, kind: input, shape index: {}]   ;;  %s2213_s9 = inlined_call_operand.vmem [shape: f32[1,128], index: 9, kind: input, shape index: {}]   ;;  %s2214_s10 = inlined_call_operand.hbm [shape: f32[64,128], index: 10, kind: output, shape index: {}]  }
   0x1   :  { %2215 = sst [smem:[#allocation5_spill]] %s2204_s0 }
   0x2   :  { %15 = vsyncpa [#allocation3], 0 }
   0x3   :  { %17 = vsyncpa [#allocation3 + $0x1], 0  ;;  %s1806_s13 = smov 0   ;;  %s1808_s14 = smov 0  }
   0x4   :  { %s1810_s15 = smov 0   ;;  %s1812_s16 = smov 0  }
   0x5 LB: > { %s1827_s17 = sadd.s32 4294967295, %s1743_s16   ;;  %s1363_s18 = sadd.s32 4294967294, %s1743_s16   ;;  %s1743_s16 = sphi %s1812_s16, %s2222_s16   ;;  %s1739_s15 = sphi %s1810_s15, %s2221_s15   ;;  %s1735_s14 = sphi %s1808_s14, %s2220_s14   ;;  %s1731_s13 = sphi %s1806_s13, %s2219_s13  }
   0x6   : > { %s1831_s19 = sadd.s32 1, %s1743_s16   ;;  %s250_s20 = sadd.s32 1, %s1739_s15 }
   0x7   : > { %s247_s21 = ssub.s32 %s1743_s16, %s1831_s19  ;;  %p260_p0 = scmp.ne.s32.totalorder %s1739_s15, %s1735_s14 }
   0x8   : > { %p248_p1 = scmp.eq.s32.totalorder %s247_s21, 0  ;;  %p261_p2 = scmp.eq.s32.totalorder %s1827_s17, 3 }
   0x9   : > { %p266_p3 = scmp.ne.s32.totalorder %s1735_s14, %s1731_s13  ;;  %p267_p4 = scmp.eq.s32.totalorder %s1363_s18, 3 }
   0xa   : > { %s1842_s22 = scalar_select %p248_p1, %s1739_s15, %s250_s20  }
   0xb   : > { %p1844_p5 = por %p261_p2, %p260_p0  ;;  %p1848_p6 = por %p267_p4, %p266_p3 }
   0xc   : > { %p1366_p7 = scmp.ge.s32.totalorder %s1743_s16, 1  ;;  %p327_p8 = scmp.lt.s32.totalorder %s1743_s16, 5 }
   0xe   : > { %p328_p9 = pnand %p1366_p7, %p327_p8 }
   0xf   : > { %v1572_v0 = vld [vmem:[%s2206_s2] sm:$0xff] (!%p328_p9)   ;;  %v1745_v1 = vmov (!%p328_p9), 0.0   ;;  %v1573_v2 = vld [vmem:[%s2206_s2 + $0x8] sm:$0xff] (!%p328_p9)   ;;  %vm1746_vm0 = vmmov (!%p328_p9), 0   ;;  %s1368_s29 = sshll.u32 (!%p328_p9), %s1827_s17, 1  ;;  %v1574_v3 = vld [vmem:[%s2206_s2 + $0x10] sm:$0xff] (!%p328_p9)  }
  0x10   : > { %331 = sbr.rel (%p328_p9) target bundleno = 1066 (0x42a), region = 60  ;;  %1508 = vmatprep.subr.bf16.mxu0 (!%p328_p9), %v1745_v1  ;;  %1524 = vmatprep.mubr.msk.bf16.mxu0 (!%p328_p9), %vm1746_vm0, %v1745_v1  ;;  %p371_p10 = scmp.lt.s32.totalorder (!%p328_p9), %s1368_s29, 7  ;;  %v1575_v4 = vld [vmem:[%s2206_s2 + $0x18] sm:$0xff] (!%p328_p9)   ;;  %v1576_v5 = vld [vmem:[%s2206_s2 + $0x20] sm:$0xff] (!%p328_p9)   ;;  %v1577_v6 = vld [vmem:[%s2206_s2 + $0x28] sm:$0xff] (!%p328_p9)   ;;  %v1747_v55 = vmov (!%p328_p9), 0  }
  0x11   : > { %1509 = vmatpush3.bf16.msra.mxu0 (!%p328_p9), %v1572_v0  ;;  %s2218_s0 = sld [smem:[#allocation5_spill]] (!%p328_p9)  ;;  %v1578_v7 = vld [vmem:[%s2206_s2 + $0x30] sm:$0xff] (!%p328_p9)   ;;  %v1579_v8 = vld [vmem:[%s2206_s2 + $0x38] sm:$0xff] (!%p328_p9)   ;;  %v1372_v10 = vld [vmem:[%s2207_s3] ss:$0 sm:$0xff] (!%p328_p9)  ;;  %796 = vmatprep.mubr.bf16.mxu1 (!%p328_p9), %v1747_v55  ;;  %s1454_s27 = sshll.u32 (!%p328_p9), %s1827_s17, 8 }
  0x12   : > { %1510 = vmatprep.subr.bf16.mxu0 (!%p328_p9), %v1745_v1  ;;  %v1581_v21 = vld [vmem:[%s2210_s6 + $0x4] ss:$16 sps:$4 sm:$0xff] (!%p328_p9)   ;;  %v1583_v22 = vld [vmem:[%s2210_s6 + $0x8] ss:$16 sps:$4 sm:$0xff] (!%p328_p9)   ;;  %v1585_v23 = vld [vmem:[%s2210_s6 + $0xc] ss:$16 sps:$4 sm:$0xff] (!%p328_p9)   ;;  %s2161_s11 = scalar_lea.hbm (!%p328_p9), %s2214_s10, %s1454_s27 }
  0x13   : > { %v1586_v24 = vld [vmem:[%s2210_s6] ss:$16 sps:$4 sm:$0xff] (!%p328_p9)   ;;  %v1587_v25 = vld [vmem:[%s2210_s6 + $0x24] ss:$16 sps:$4 sm:$0xff] (!%p328_p9)   ;;  %764 = vmatprep.subr.bf16.mxu1 (!%p328_p9), %v1581_v21  ;;  %v1591_v26 = vld [vmem:[%s2210_s6 + $0x2c] ss:$16 sps:$4 sm:$0xff] (!%p328_p9)  }
  0x14   : > { %765 = vmatpush1.bf16.msra.mxu1 (!%p328_p9), %v1586_v24  ;;  %v1589_v27 = vld [vmem:[%s2210_s6 + $0x28] ss:$16 sps:$4 sm:$0xff] (!%p328_p9)   ;;  %v1592_v36 = vld [vmem:[%s2210_s6 + $0x20] ss:$16 sps:$4 sm:$0xff] (!%p328_p9)   ;;  %v1593_v37 = vld [vmem:[%s2210_s6 + $0x44] ss:$16 sps:$4 sm:$0xff] (!%p328_p9)  }
  0x15   : > { %1511 = vmatpush3.bf16.msra.mxu0 (!%p328_p9), %v1573_v2  ;;  %766 = vmatprep.subr.bf16.mxu1 (!%p328_p9), %v1587_v25  ;;  %v1597_v38 = vld [vmem:[%s2210_s6 + $0x4c] ss:$16 sps:$4 sm:$0xff] (!%p328_p9)   ;;  %v1595_v39 = vld [vmem:[%s2210_s6 + $0x48] ss:$16 sps:$4 sm:$0xff] (!%p328_p9)   ;;  %v1598_v40 = vld [vmem:[%s2210_s6 + $0x40] ss:$16 sps:$4 sm:$0xff] (!%p328_p9)  }
  0x16   : > { %1512 = vmatprep.subr.bf16.mxu0 (!%p328_p9), %v1745_v1  ;;  %v1599_v41 = vld [vmem:[%s2210_s6 + $0x64] ss:$16 sps:$4 sm:$0xff] (!%p328_p9)   ;;  %v1603_v42 = vld [vmem:[%s2210_s6 + $0x6c] ss:$16 sps:$4 sm:$0xff] (!%p328_p9)   ;;  %v1601_v43 = vld [vmem:[%s2210_s6 + $0x68] ss:$16 sps:$4 sm:$0xff] (!%p328_p9)  }
  0x17   : > { %s2224_s29 = smov (!%p371_p10, %s1368_s29), 7  ;;  %v1604_v44 = vld [vmem:[%s2210_s6 + $0x60] ss:$16 sps:$4 sm:$0xff]   ;;  %v1605_v45 = vld [vmem:[%s2210_s6 + $0x84] ss:$16 sps:$4 sm:$0xff]   ;;  %v1633_v21 = vld [vmem:[%s2212_s8 + $0x48] sm:$0xff]  }
  0x18   : > { %s1369_s12 = sshll.u32 %s2224_s29, 2  ;;  %s1371_s26 = sshll.u32 %s2224_s29, 3  ;;  %767 = vmatpush1.bf16.msra.mxu1 %v1592_v36  ;;  %v1607_v46 = vld [vmem:[%s2210_s6 + $0x88] ss:$16 sps:$4 sm:$0xff]   ;;  %v1609_v47 = vld [vmem:[%s2210_s6 + $0x8c] ss:$16 sps:$4 sm:$0xff]  }
  0x19   : > { %s374_s21 = scalar_lea.vmem %s2218_s0, %s1369_s12  ;;  %1513 = vmatpush3.bf16.msra.mxu0 %v1574_v3  ;;  %s380_s30 = scalar_lea.vmem %s2205_s1, %s1371_s26  ;;  %768 = vmatprep.subr.bf16.mxu1 %v1593_v37  ;;  %v1610_v48 = vld [vmem:[%s2210_s6 + $0x80] ss:$16 sps:$4 sm:$0xff]   ;;  %v1611_v49 = vld [vmem:[%s2210_s6 + $0xa4] ss:$16 sps:$4 sm:$0xff]   ;;  %v1615_v50 = vld [vmem:[%s2210_s6 + $0xac] ss:$16 sps:$4 sm:$0xff]  }
  0x1a   : > { %1514 = vmatprep.subr.bf16.mxu0 %v1745_v1  ;;  %v1580_v9 = vld [vmem:[%s374_s21] sm:$0xff]   ;;  %v505_v16 = vld [vmem:[%s380_s30 + $0x8] sm:$0xff]  ;;  %v1637_v25 = vld [vmem:[%s2212_s8 + $0x50] sm:$0xff]   ;;  %s367_s0 = sand.u32 1, %s1735_s14   ;;  %s1748_s21 = smov [#allocation2]  }
  0x1b   : > { %v504_v12 = vld [vmem:[%s380_s30] sm:$0xff]  ;;  %v1613_v51 = vld [vmem:[%s2210_s6 + $0xa8] ss:$16 sps:$4 sm:$0xff]   ;;  %v1621_v54 = vld [vmem:[%s2210_s6 + $0xcc] ss:$16 sps:$4 sm:$0xff]   ;;  %s1367_s18 = sshll.u32 %s367_s0, 4 }
  0x1c   : > { %769 = vmatpush1.bf16.msra.mxu1 %v1598_v40  ;;  %v1616_v52 = vld [vmem:[%s2210_s6 + $0xa0] ss:$16 sps:$4 sm:$0xff]   ;;  %v1617_v53 = vld [vmem:[%s2210_s6 + $0xc4] ss:$16 sps:$4 sm:$0xff]   ;;  %v1619_v56 = vld [vmem:[%s2210_s6 + $0xc8] ss:$16 sps:$4 sm:$0xff]  }
  0x1d   : > { %1515 = vmatpush3.bf16.msra.mxu0 %v1575_v4  ;;  %770 = vmatprep.subr.bf16.mxu1 %v1599_v41  ;;  %v1622_v57 = vld [vmem:[%s2210_s6 + $0xc0] ss:$16 sps:$4 sm:$0xff]   ;;  %v1623_v58 = vld [vmem:[%s2210_s6 + $0xe4] ss:$16 sps:$4 sm:$0xff]   ;;  %v1627_v59 = vld [vmem:[%s2210_s6 + $0xec] ss:$16 sps:$4 sm:$0xff]  }
  0x1e   : > { %1516 = vmatprep.subr.bf16.mxu0 %v1745_v1  ;;  %v1625_v60 = vld [vmem:[%s2210_s6 + $0xe8] ss:$16 sps:$4 sm:$0xff]   ;;  %v1628_v61 = vld [vmem:[%s2210_s6 + $0xe0] ss:$16 sps:$4 sm:$0xff]   ;;  %s369_s25 = scalar_lea.vmem [#allocation2], %s1367_s18  ;;  %s2163_s29 = scalar_lea.sflag [#allocation3], %s367_s0 }
  0x1f   : > { %v1636_v24 = vld [vmem:[%s2212_s8 + $0x88] sm:$0xff]   ;;  %v1648_v36 = vld [vmem:[%s2212_s8 + $0xa0] sm:$0xff]   ;;  %v1653_v41 = vld [vmem:[%s2212_s8 + $0x70] sm:$0xff]   ;;  %s1289_s26 = sshll.u32 %s369_s25, 4  ;;  %s1685_s18 = sshll.u32 %s1748_s21, 4  ;;  %s2155_s26 = int_to_ptr.vmem [resolvable:$true] %s1289_s26  ;;  %s1686_s18 = int_to_ptr.vmem [resolvable:$false] %s1685_s18 }
  0x20   : > { %771 = vmatpush1.bf16.msra.mxu1 %v1604_v44  ;;  %v1649_v37 = vld [vmem:[%s2212_s8 + $0x68] sm:$0xff]   ;;  %v1656_v44 = vld [vmem:[%s2212_s8 + $0xb0] sm:$0xff]   ;;  %s1681_s17 = scalar_lea.vmem %s2155_s26, 256  ;;  %s1687_s12 = scalar_lea.vmem %s1686_s18, 512 }
  0x21   : > { %1517 = vmatpush3.bf16.msra.mxu0 %v1576_v5  ;;  %772 = vmatprep.subr.bf16.mxu1 %v1605_v45  ;;  %v1652_v40 = vld [vmem:[%s2212_s8 + $0xa8] sm:$0xff]   ;;  %v1657_v45 = vld [vmem:[%s2212_s8 + $0x78] sm:$0xff]   ;;  %p1682_p11 = scmp.ne.s32.totalorder %s2155_s26, %s1681_s17  ;;  %p1688_p0 = scmp.lt.s32.totalorder %s2155_s26, %s1686_s18 }
  0x22   : > { %1518 = vmatprep.subr.bf16.mxu0 %v1745_v1  ;;  %p1689_p1 = scmp.lt.s32.totalorder %s1687_s12, %s1681_s17 }
  0x23   : > { %p1683_p12 = pnand %p1682_p11, %p1844_p5 }
  0x24   : > { %773 = vmatpush1.bf16.msra.mxu1 %v1610_v48  ;;  %v1660_v48 = vld [vmem:[%s2212_s8 + $0xb8] sm:$0xff]   ;;  %p1690_p2 = por %p1689_p1, %p1688_p0 }
  0x25   : > { %1519 = vmatpush3.bf16.msra.mxu0 %v1577_v6  ;;  %774 = vmatprep.subr.bf16.mxu1 %v1611_v49  ;;  %v1382_v6 = vld [vmem:[%s2208_s4] ss:$0 sm:$0xff]  ;;  %v584_v49 = vlaneseq  ;;  %p1684_p13 = pneg %p1683_p12 }
  0x26   : > { %1520 = vmatprep.subr.bf16.mxu0 %v1745_v1 }
  0x27   : > { %p1691_p3 = pnand %p1690_p2, %p1684_p13 }
  0x28   : > { %775 = vmatpush1.bf16.msra.mxu1 %v1616_v52 }
  0x29   : > { %1521 = vmatpush3.bf16.msra.mxu0 %v1578_v7  ;;  %776 = vmatprep.subr.bf16.mxu1 %v1617_v53  ;;  %v582_v53 = vld [vmem:[%s2211_s7] sm:$0xf] }
  0x2a   : > { %1522 = vmatprep.subr.bf16.mxu0 %v1745_v1 }
  0x2c   : > { %777 = vmatpush1.bf16.msra.mxu1 %v1622_v57 }
  0x2d   : > { %1523 = vmatpush3.bf16.msra.mxu0 %v1579_v8  ;;  %778 = vmatprep.subr.bf16.mxu1 %v1623_v58 }
  0x2e   : > { %807 = vmatprep.subr.bf16.mxu0 %v1585_v23  ;;  %v1635_v23 = vld [vmem:[%s2212_s8 + $0x8] sm:$0xff]  }
  0x30   : > { %1525 = vmatmul.mubr.bf16.vlgmr.msra.gmra.mrb[0].mxu0 %v1580_v9  ;;  %779 = vmatpush1.bf16.msra.mxu1 %v1628_v61 }
  0x31   : > { %808 = vmatpush1.bf16.msra.mxu0 %v1583_v22  ;;  %839 = vmatprep.mubr.bf16.mxu0 %v1747_v55  ;;  %v1634_v22 = vld [vmem:[%s2212_s8 + $0xc8] sm:$0xff]  }
  0x32   : > { %809 = vmatprep.subr.bf16.mxu0 %v1591_v26  ;;  %v1638_v26 = vld [vmem:[%s2212_s8 + $0xd0] sm:$0xff]  }
  0x35   : > { %810 = vmatpush1.bf16.msra.mxu0 %v1589_v27  ;;  %v1639_v27 = vld [vmem:[%s2212_s8 + $0x10] sm:$0xff]  }
  0x36   : > { %811 = vmatprep.subr.bf16.mxu0 %v1597_v38  ;;  %v1650_v38 = vld [vmem:[%s2212_s8 + $0xe8] sm:$0xff]  }
  0x39   : > { %812 = vmatpush1.bf16.msra.mxu0 %v1595_v39  ;;  %v1651_v39 = vld [vmem:[%s2212_s8 + $0x28] sm:$0xff]  }
  0x3a   : > { %813 = vmatprep.subr.bf16.mxu0 %v1603_v42  ;;  %v1654_v42 = vld [vmem:[%s2212_s8 + $0xf0] sm:$0xff]  }
  0x3d   : > { %814 = vmatpush1.bf16.msra.mxu0 %v1601_v43  ;;  %v1655_v43 = vld [vmem:[%s2212_s8 + $0x30] sm:$0xff]  }
  0x3e   : > { %815 = vmatprep.subr.bf16.mxu0 %v1609_v47  ;;  %v1659_v47 = vld [vmem:[%s2212_s8 + $0x38] sm:$0xff]  }
  0x41   : > { %816 = vmatpush1.bf16.msra.mxu0 %v1607_v46  ;;  %v1658_v46 = vld [vmem:[%s2212_s8 + $0xf8] sm:$0xff]  }
  0x42   : > { %817 = vmatprep.subr.bf16.mxu0 %v1615_v50  ;;  %v585_v50 = vshrl.u32 %v584_v49, 7 }
  0x44   : > { %v594_v52 = vsub.s32 2, %v585_v50  ;;  %v598_v55 = vsub.s32 3, %v585_v50 }
  0x45   : > { %818 = vmatpush1.bf16.msra.mxu0 %v1613_v51  ;;  %v586_v51 = vsub.s32 0, %v585_v50 }
  0x46   : > { %819 = vmatprep.subr.bf16.mxu0 %v1621_v54  ;;  %v590_v54 = vsub.s32 1, %v585_v50  ;;  %v595_v57 = vrot.slane %v582_v53, %v594_v52 }
  0x48   : > { %v591_v58 = vrot.slane %v582_v53, %v590_v54 }
  0x49   : > { %820 = vmatpush1.bf16.msra.mxu0 %v1619_v56  ;;  %v587_v56 = vrot.slane %v582_v53, %v586_v51 }
  0x4a   : > { %821 = vmatprep.subr.bf16.mxu0 %v1627_v59  ;;  %v599_v59 = vrot.slane %v582_v53, %v598_v55 }
  0x4d   : > { %822 = vmatpush1.bf16.msra.mxu0 %v1625_v60 }
 0x103   : > { %v497_v11 = vpop.f32.mrb[0].mxu0 }
 0x104   : > { %v498_v13 = vadd.f32 %v1372_v10, %v497_v11  ;;  %v1526_v14 = vpop.f32.mrb[1].mxu0 }
 0x105   : > { %v500_v15 = vpop.f32.mrb[2].mxu0 }
 0x106   : > { %v1888_v17 = vadd.f32 %v504_v12, %v498_v13  ;;  %v501_v18 = vadd.f32 %v1372_v10, %v500_v15  ;;  %v1527_v19 = vpop.f32.mrb[3].mxu0  ;;  %v1383_v10 = vld [vmem:[%s2209_s5] ss:$0 sm:$0xff] }
 0x107   : > { %v1629_v15 = vld [vmem:[%s2212_s8 + $0x40] sm:$0xff]  }
 0x108   : > { %v1890_v20 = vadd.f32 %v505_v16, %v501_v18  ;;  %510 = vadd.xlane.f32.xlu0 %v1888_v17  ;;  %v1630_v16 = vld [vmem:[%s2212_s8 + $0xc0] sm:$0xff]   ;;  %1464 = vmatprep.subr.bf16.mxu1 %v1629_v15 }
 0x109   : > { %v1631_v18 = vld [vmem:[%s2212_s8] sm:$0xff]   ;;  %1486 = vmatprep.subr.bf16.mxu0 %v1630_v16 }
 0x10a   : > { %v1632_v19 = vld [vmem:[%s2212_s8 + $0x80] sm:$0xff]  }
 0x10c   : > { %512 = vadd.xlane.f32.xlu0 %v1890_v20 }
 0x195   : > { %v511_v28 = vpop.xlane.xlu0 %510 }
 0x196   : > { %v515_v29 = vmul.f32 0.0078125, %v511_v28  ;;  %v1640_v28 = vld [vmem:[%s2212_s8 + $0x90] sm:$0xff]  }
 0x198   : > { %v1916_v30 = vsub.f32 %v1888_v17, %v515_v29  ;;  %v1641_v29 = vld [vmem:[%s2212_s8 + $0x58] sm:$0xff]  }
 0x199   : > { %v513_v31 = vpop.xlane.xlu0 %512 }
 0x19a   : > { %v516_v32 = vmul.f32 0.0078125, %v513_v31  ;;  %v519_v33 = vmul.f32 %v1916_v30, %v1916_v30  ;;  %v1643_v31 = vld [vmem:[%s2212_s8 + $0x18] sm:$0xff]  }
 0x19c   : > { %v1921_v34 = vsub.f32 %v1890_v20, %v516_v32  ;;  %521 = vadd.xlane.f32.xlu1 %v519_v33  ;;  %v1644_v32 = vld [vmem:[%s2212_s8 + $0x98] sm:$0xff]   ;;  %v1645_v33 = vld [vmem:[%s2212_s8 + $0x60] sm:$0xff]  }
 0x19e   : > { %v520_v35 = vmul.f32 %v1921_v34, %v1921_v34 }
 0x1a0   : > { %523 = vadd.xlane.f32.xlu1 %v520_v35  ;;  %v1647_v35 = vld [vmem:[%s2212_s8 + $0x20] sm:$0xff]  }
 0x229   : > { %v522_v62 = vpop.xlane.xlu1 %521 }
 0x22a   : > { %v525_v63 = vmul.f32 0.0078125, %v522_v62 }
 0x22c   : > { %v527_v0 = vadd.f32 1e-05, %v525_v63 }
 0x22d   : > { %v524_v1 = vpop.xlane.xlu1 %523 }
 0x22e   : > { %1661 = vrsqrt.f32 %v527_v0  ;;  %v526_v2 = vmul.f32 0.0078125, %v524_v1 }
 0x230   : > { %v528_v3 = vadd.f32 1e-05, %v526_v2 }
 0x232   : > { %1663 = vrsqrt.f32 %v528_v3 }
 0x238   : > { %v1662_v4 = vpop.eup %1661 }
 0x239   : > { %v531_v5 = vmul.f32 %v1662_v4, %v1916_v30  ;;  %v1642_v30 = vld [vmem:[%s2212_s8 + $0xd8] sm:$0xff]  }
 0x23b   : > { %v539_v9 = vmul.f32 %v1382_v6, %v531_v5 }
 0x23c   : > { %v1664_v7 = vpop.eup %1663 }
 0x23d   : > { %v532_v8 = vmul.f32 %v1664_v7, %v1921_v34  ;;  %v547_v12 = vadd.f32 %v1383_v10, %v539_v9  ;;  %v1646_v34 = vld [vmem:[%s2212_s8 + $0xe0] sm:$0xff]  }
 0x23f   : > { %v540_v11 = vmul.f32 %v1382_v6, %v532_v8 }
 0x241   : > { %v548_v13 = vadd.f32 %v1383_v10, %v540_v11 }
 0x243   : > { %v549_v14 = vpack.c.bf16 %v548_v13, %v547_v12 }
 0x245   : > { %797 = vmatmul.mubr.bf16.vlgmr.msra.gmra.mrb[0].mxu1 %v549_v14  ;;  %840 = vmatmul.mubr.bf16.vlgmr.msra.gmra.mrb[4].mxu0 %v549_v14 }
 0x246   : > { %1465 = vmatpush3.bf16.msra.mxu1 %v1631_v18  ;;  %1487 = vmatpush3.bf16.msra.mxu0 %v1632_v19 }
 0x247   : > { %1466 = vmatprep.subr.bf16.mxu1 %v1633_v21  ;;  %1488 = vmatprep.subr.bf16.mxu0 %v1634_v22 }
 0x24a   : > { %1467 = vmatpush3.bf16.msra.mxu1 %v1635_v23  ;;  %1489 = vmatpush3.bf16.msra.mxu0 %v1636_v24 }
 0x24b   : > { %1468 = vmatprep.subr.bf16.mxu1 %v1637_v25  ;;  %1490 = vmatprep.subr.bf16.mxu0 %v1638_v26 }
 0x24e   : > { %1469 = vmatpush3.bf16.msra.mxu1 %v1639_v27  ;;  %1491 = vmatpush3.bf16.msra.mxu0 %v1640_v28 }
 0x24f   : > { %1470 = vmatprep.subr.bf16.mxu1 %v1641_v29  ;;  %1492 = vmatprep.subr.bf16.mxu0 %v1642_v30 }
 0x252   : > { %1471 = vmatpush3.bf16.msra.mxu1 %v1643_v31  ;;  %1493 = vmatpush3.bf16.msra.mxu0 %v1644_v32 }
 0x253   : > { %1472 = vmatprep.subr.bf16.mxu1 %v1645_v33  ;;  %1494 = vmatprep.subr.bf16.mxu0 %v1646_v34 }
 0x256   : > { %1473 = vmatpush3.bf16.msra.mxu1 %v1647_v35  ;;  %1495 = vmatpush3.bf16.msra.mxu0 %v1648_v36 }
 0x257   : > { %1474 = vmatprep.subr.bf16.mxu1 %v1649_v37  ;;  %1496 = vmatprep.subr.bf16.mxu0 %v1650_v38 }
 0x25a   : > { %1475 = vmatpush3.bf16.msra.mxu1 %v1651_v39  ;;  %1497 = vmatpush3.bf16.msra.mxu0 %v1652_v40 }
 0x25b   : > { %1476 = vmatprep.subr.bf16.mxu1 %v1653_v41  ;;  %1498 = vmatprep.subr.bf16.mxu0 %v1654_v42 }
 0x25e   : > { %1477 = vmatpush3.bf16.msra.mxu1 %v1655_v43  ;;  %1499 = vmatpush3.bf16.msra.mxu0 %v1656_v44 }
 0x25f   : > { %1478 = vmatprep.subr.bf16.mxu1 %v1657_v45  ;;  %1500 = vmatprep.subr.bf16.mxu0 %v1658_v46 }
 0x262   : > { %1479 = vmatpush3.bf16.msra.mxu1 %v1659_v47  ;;  %1501 = vmatpush3.bf16.msra.mxu0 %v1660_v48 }
 0x318   : > { %v798_v60 = vpop.f32.mrb[0].mxu1  ;;  %v841_v61 = vpop.f32.mrb[4].mxu0 }
 0x319   : > { %v2107_v62 = vadd.f32 %v798_v60, %v587_v56  ;;  %v2109_v63 = vadd.f32 %v841_v61, %v595_v57  ;;  %v800_v0 = vpop.f32.mrb[1].mxu1  ;;  %v843_v1 = vpop.f32.mrb[5].mxu0 }
 0x31a   : > { %v2111_v2 = vadd.f32 %v800_v0, %v591_v58  ;;  %v2113_v3 = vadd.f32 %v843_v1, %v599_v59  ;;  %v802_v4 = vpop.f32.mrb[2].mxu1  ;;  %v845_v5 = vpop.f32.mrb[6].mxu0 }
 0x31b   : > { %v858_v6 = vmul.f32 0.044715, %v2107_v62  ;;  %v860_v7 = vmul.f32 0.044715, %v2109_v63  ;;  %v803_v8 = vadd.f32 %v802_v4, %v587_v56  ;;  %v846_v9 = vadd.f32 %v845_v5, %v595_v57  ;;  %v804_v10 = vpop.f32.mrb[3].mxu1  ;;  %v847_v11 = vpop.f32.mrb[7].mxu0 }
 0x31c   : > { %v859_v12 = vmul.f32 0.044715, %v2111_v2  ;;  %v861_v13 = vmul.f32 0.044715, %v2113_v3  ;;  %v2119_v14 = vadd.f32 %v804_v10, %v591_v58  ;;  %v2121_v15 = vadd.f32 %v847_v11, %v599_v59 }
 0x31d   : > { %v866_v16 = vmul.f32 %v858_v6, %v2107_v62  ;;  %v868_v18 = vmul.f32 %v860_v7, %v2109_v63  ;;  %v862_v19 = vmul.f32 0.044715, %v803_v8  ;;  %v864_v21 = vmul.f32 0.044715, %v846_v9 }
 0x31e   : > { %v867_v22 = vmul.f32 %v859_v12, %v2111_v2  ;;  %v869_v23 = vmul.f32 %v861_v13, %v2113_v3  ;;  %v863_v24 = vmul.f32 0.044715, %v2119_v14  ;;  %v865_v25 = vmul.f32 0.044715, %v2121_v15 }
 0x31f   : > { %v874_v26 = vmul.f32 %v866_v16, %v2107_v62  ;;  %v876_v27 = vmul.f32 %v868_v18, %v2109_v63  ;;  %v870_v28 = vmul.f32 %v862_v19, %v803_v8  ;;  %v872_v29 = vmul.f32 %v864_v21, %v846_v9 }
 0x320   : > { %v875_v30 = vmul.f32 %v867_v22, %v2111_v2  ;;  %v877_v31 = vmul.f32 %v869_v23, %v2113_v3  ;;  %v871_v32 = vmul.f32 %v863_v24, %v2119_v14  ;;  %v873_v33 = vmul.f32 %v865_v25, %v2121_v15 }
 0x321   : > { %v882_v34 = vadd.f32 %v874_v26, %v2107_v62  ;;  %v884_v35 = vadd.f32 %v876_v27, %v2109_v63  ;;  %v878_v36 = vmul.f32 %v870_v28, %v803_v8  ;;  %v880_v37 = vmul.f32 %v872_v29, %v846_v9 }
 0x322   : > { %v879_v38 = vmul.f32 %v871_v32, %v2119_v14  ;;  %v881_v39 = vmul.f32 %v873_v33, %v2121_v15  ;;  %v883_v44 = vadd.f32 %v875_v30, %v2111_v2  ;;  %v885_v48 = vadd.f32 %v877_v31, %v2113_v3 }
 0x323   : > { %v890_v40 = vmul.f32 0.7978846, %v882_v34  ;;  %v892_v41 = vmul.f32 0.7978846, %v884_v35  ;;  %v886_v42 = vadd.f32 %v878_v36, %v803_v8  ;;  %v888_v43 = vadd.f32 %v880_v37, %v846_v9 }
 0x324   : > { %v887_v45 = vadd.f32 %v879_v38, %v2119_v14  ;;  %v891_v49 = vmul.f32 0.7978846, %v883_v44  ;;  %v889_v51 = vadd.f32 %v881_v39, %v2121_v15  ;;  %v893_v52 = vmul.f32 0.7978846, %v885_v48 }
 0x325   : > { %1665 = vtanh.f32 %v890_v40  ;;  %v894_v46 = vmul.f32 0.7978846, %v886_v42  ;;  %v896_v47 = vmul.f32 0.7978846, %v888_v43  ;;  %v850_v60 = vmul.f32 0.5, %v2107_v62 }
 0x326   : > { %1667 = vtanh.f32 %v892_v41  ;;  %v895_v50 = vmul.f32 0.7978846, %v887_v45  ;;  %v897_v53 = vmul.f32 0.7978846, %v889_v51  ;;  %v854_v61 = vmul.f32 0.5, %v803_v8 }
 0x327   : > { %1669 = vtanh.f32 %v894_v46  ;;  %v852_v4 = vmul.f32 0.5, %v2109_v63  ;;  %v856_v5 = vmul.f32 0.5, %v846_v9  ;;  %v851_v10 = vmul.f32 0.5, %v2111_v2 }
 0x328   : > { %1671 = vtanh.f32 %v896_v47  ;;  %v855_v18 = vmul.f32 0.5, %v2119_v14  ;;  %v853_v8 = vmul.f32 0.5, %v2113_v3  ;;  %v857_v63 = vmul.f32 0.5, %v2121_v15  ;;  %v1416_v3 = vld [vmem:[%s2213_s9] ss:$0 sm:$0xff] }
 0x329   : > { %1673 = vtanh.f32 %v891_v49 }
 0x32a   : > { %1675 = vtanh.f32 %v895_v50 }
 0x32b   : > { %1677 = vtanh.f32 %v893_v52 }
 0x32c   : > { %1679 = vtanh.f32 %v897_v53 }
 0x32f   : > { %v1666_v54 = vpop.eup %1665 }
 0x330   : > { %v1668_v55 = vpop.eup %1667  ;;  %v906_v56 = vadd.f32 1.0, %v1666_v54 }
 0x331   : > { %v1670_v57 = vpop.eup %1669  ;;  %v908_v58 = vadd.f32 1.0, %v1668_v55 }
 0x332   : > { %v1672_v59 = vpop.eup %1671  ;;  %v910_v0 = vadd.f32 1.0, %v1670_v57  ;;  %v914_v12 = vmul.f32 %v906_v56, %v850_v60 }
 0x333   : > { %v1674_v1 = vpop.eup %1673  ;;  %v912_v6 = vadd.f32 1.0, %v1672_v59  ;;  %v916_v21 = vmul.f32 %v908_v58, %v852_v4 }
 0x334   : > { %v1676_v7 = vpop.eup %1675  ;;  %v907_v11 = vadd.f32 1.0, %v1674_v1  ;;  %v918_v13 = vmul.f32 %v910_v0, %v854_v61 }
 0x335   : > { %v1678_v16 = vpop.eup %1677  ;;  %v911_v19 = vadd.f32 1.0, %v1676_v7  ;;  %v920_v22 = vmul.f32 %v912_v6, %v856_v5 }
 0x336   : > { %v1680_v62 = vpop.eup %1679  ;;  %v909_v9 = vadd.f32 1.0, %v1678_v16  ;;  %v922_v23 = vpack.c.bf16 %v918_v13, %v914_v12  ;;  %v915_v24 = vmul.f32 %v907_v11, %v851_v10 }
 0x337   : > { %v919_v25 = vmul.f32 %v911_v19, %v855_v18  ;;  %v913_v2 = vadd.f32 1.0, %v1680_v62  ;;  %v924_v26 = vpack.c.bf16 %v920_v22, %v916_v21 }
 0x338   : > { %v917_v28 = vmul.f32 %v909_v9, %v853_v8 }
 0x339   : > { %v923_v27 = vpack.c.bf16 %v919_v25, %v915_v24  ;;  %v921_v29 = vmul.f32 %v913_v2, %v857_v63 }
 0x33b   : > { %1221 = vmatprep.mubr.bf16.mxu1 %v923_v27  ;;  %v925_v14 = vpack.c.bf16 %v921_v29, %v917_v28 }
 0x33c   : > { %1222 = vmatmul.mubr.bf16.vlgmr.msra.gmra.mrb[4].mxu1 %v922_v23 }
 0x33d   : > { %1262 = vmatprep.mubr.bf16.mxu0 %v925_v14 }
 0x33e   : > { %1263 = vmatmul.mubr.bf16.vlgmr.msra.gmra.mrb[8].mxu0 %v924_v26 }
 0x40f   : > { %v1480_v30 = vpop.f32.mrb[4].mxu1 }
 0x410   : > { %v1481_v15 = vpop.f32.mrb[5].mxu1 }
 0x411   : > { %v1502_v31 = vpop.f32.mrb[8].mxu0  ;;  %v1482_v32 = vadd.f32 %v1481_v15, %v1480_v30  ;;  %v1483_v33 = vpop.f32.mrb[6].mxu1 }
 0x412   : > { %v1503_v34 = vpop.f32.mrb[9].mxu0  ;;  %v1484_v35 = vpop.f32.mrb[7].mxu1 }
 0x413   : > { %v1224_v36 = vadd.f32 %v1482_v32, %v1416_v3  ;;  %v1504_v37 = vadd.f32 %v1503_v34, %v1502_v31  ;;  %v1505_v38 = vpop.f32.mrb[10].mxu0  ;;  %v1485_v39 = vadd.f32 %v1484_v35, %v1483_v33 }
 0x414   : > { %v1506_v40 = vpop.f32.mrb[11].mxu0 }
 0x415   : > { %v1265_v41 = vadd.f32 %v1504_v37, %v1224_v36  ;;  %v1227_v42 = vadd.f32 %v1485_v39, %v1416_v3  ;;  %v1507_v43 = vadd.f32 %v1506_v40, %v1505_v38 }
 0x417   : > { %v1271_v44 = vadd.f32 %v1265_v41, %v1888_v17  ;;  %v1268_v45 = vadd.f32 %v1507_v43, %v1227_v42 }
 0x419   : > { %1273 = vst [vmem:[%s369_s25] sm:$0xff] %v1271_v44  ;;  %v1272_v46 = vadd.f32 %v1268_v45, %v1890_v20 }
 0x41b   : > { %1274 = vst [vmem:[%s369_s25 + $0x8] sm:$0xff] %v1272_v46 }
 0x41c   : > { %1694 = shalt.err (!%p1691_p3)
}
 0x41d   : > { %s1695_s0 = scalar_lea.hbm %s2161_s11, 256  ;;  %s1699_s27 = scalar_lea.hbm %s2214_s10, 1024 }
 0x41e   : > { %p1696_p4 = scmp.ne.s32.totalorder %s2161_s11, %s1695_s0  ;;  %p1700_p9 = scmp.lt.u32.totalorder %s2161_s11, %s2214_s10 }
 0x41f   : > { %p1701_p10 = scmp.lt.u32.totalorder %s1699_s27, %s1695_s0  ;;  %p1703_p12 = scmp.lt.u32.totalorder %s1695_s0, %s2161_s11 }
 0x420   : > { %p1697_p7 = pnand %p1696_p4, %p1844_p5 }
 0x421   : > { %p1702_p11 = por %p1701_p10, %p1700_p9 }
 0x422   : > { %p1698_p8 = pneg %p1697_p7 }
 0x423   : > { %p1704_p13 = por %p1703_p12, %p1702_p11 }
 0x425   : > { %p1705_p0 = pnand %p1704_p13, %p1698_p8 }
 0x427   : > { %1708 = shalt.err (!%p1705_p0)
}
 0x428   : > { %s1749_s17 = smov 128   ;;  %s1750_s21 = smov 8  }
 0x429   : > { %1528 = dma.vmem_to_hbm [thread:$0]  (%p1844_p5), %s2155_s26, 256, %s2161_s11, %s2163_s29, %s1749_s17, %s1749_s17, %s1750_s21  }
 0x42a PF: > { %p1534_p1 = scmp.ge.s32.totalorder %s1743_s16, 2  ;;  %s1304_s18 = sand.u32 1, %s1731_s13  }
 0x42b   : > { %s1305_s12 = scalar_lea.sflag [#allocation3], %s1304_s18 }
 0x42c   : > { %p1531_p2 = pnand %p1534_p1, %p1848_p6 }
 0x42e   : > { %1726 = dma.done.wait (!%p1531_p2), %s1305_s12, 256  }
 0x42f   : > { %1728 = vsyncadd (!%p1531_p2), %s1305_s12, 4294967040  ;;  %p20_p3 = scmp.ge.s32.totalorder %s1831_s19, 6   ;;  %s2219_s13 = smov %s1735_s14 }
 0x430   : > { %s2220_s14 = smov %s1739_s15  ;;  %s2221_s15 = smov %s1842_s22 }
 0x431   : > { %s2222_s16 = smov %s1831_s19  ;;  %22 = sbr.rel (!%p20_p3) target bundleno = 5 (0x5), region = 98 }
 0x438   :  { %1310 = vsyncpa [#allocation3], 1 }
 0x439   :  { %1312 = vsyncpa [#allocation3 + $0x1], 1 }

</bundles_post_ra>
